<compile_context>
chip_gen: v7x
topology: tpu7x:2x2x1
jax: 0.10.0
libtpu: 0.0.40
codegen_flags: <defaults>
</compile_context>

<pallas_src>
import functools

import jax
import jax.numpy as jnp
from jax import lax
from jax.experimental import pallas as pl
from jax.experimental.pallas import tpu as pltpu


# ----------------------------------------------------------------------------- kernel


def _sim_cot_kernel(x_ref, y_ref, wp_ref, ps_ref, pb_ref, wk_ref, ksc_ref,
                    ksh_ref, wx_ref, wkc_ref, osc_ref, osh_ref,
                    o_ref, pad_ref, col_ref, *, H, W, ksize, padding):
    HW = H * W
    C = y_ref.shape[2]
    P = padding
    Wp = W + 2 * P
    bf16 = jnp.bfloat16

    # --- FCUUp: tokens 1x1 conv (one MXU matmul) + folded BN(eps=1e-6) + ReLU ----
    tok = y_ref[0].astype(bf16)                                           # (HW, C)
    proj = jnp.dot(tok, wp_ref[...], preferred_element_type=jnp.float32)
    proj = jnp.maximum(proj * ps_ref[...] + pb_ref[...], 0.0)             # (HW, C) f32
    # F.interpolate(nearest) to (H*dw_stride, W*dw_stride) is the identity for dw_stride == 1
    # (the only shape-consistent configuration of this module).

    # --- key_embed: kxk grouped conv as ONE im2col matmul -------------------------
    # Zero only the thin halo ring; the interior is fully overwritten below.  Done every
    # step (cheap strip stores) so the kernel stays correct if the parallel batch axis is
    # sharded across TensorCores (scratch is per-core).
    if P > 0:
        pad_ref[0:P, :, :] = jnp.zeros((P, Wp, C), bf16)
        pad_ref[P + H:P + H + P, :, :] = jnp.zeros((P, Wp, C), bf16)
        pad_ref[P:P + H, 0:P, :] = jnp.zeros((H, P, C), bf16)
        pad_ref[P:P + H, P + W:P + W + P, :] = jnp.zeros((H, P, C), bf16)
    # Interior write: cast to bf16 once (MXU-native); every window read below is bf16.
    pad_ref[P:P + H, P:P + W, :] = proj.astype(bf16).reshape(H, W, C)

    # Build the im2col operand (HW, k*k*C): each shifted window is copied exactly once.
    o = 0
    for dh in range(ksize):
        for dw in range(ksize):
            col_ref[:, o * C:(o + 1) * C] = (
                pad_ref[dh:dh + H, dw:dw + W, :].reshape(HW, C))
            o += 1

    # Single deep-K matmul against the dense block-diagonal grouped weight,
    # then folded BN + ReLU.
    kacc = jnp.dot(col_ref[...], wk_ref[...], preferred_element_type=jnp.float32)
    kfeat = jnp.maximum(kacc * ksc_ref[...] + ksh_ref[...], 0.0)          # (HW, C) f32

    # --- conv1x1 over cat([x, k], channel dim): two matmuls, CHW orientation -----
    x_chw = x_ref[0].astype(bf16)                                         # (C, HW)
    out = jnp.dot(wx_ref[...], x_chw, preferred_element_type=jnp.float32)
    # Contract directly over kfeat's channel axis: no materialized transpose of kfeat.
    out = out + lax.dot_general(
        wkc_ref[...], kfeat.astype(bf16),
        dimension_numbers=(((1,), (1,)), ((), ())),
        preferred_element_type=jnp.float32)
    out = out * osc_ref[...] + osh_ref[...]                               # folded final BN
    o_ref[0] = out.astype(o_ref.dtype)


# ----------------------------------------------------------------------------- wrapper


def _vmem_limit_bytes():
    # Derive the scoped-VMEM cap from the actual chip (64 MiB physical on v7x,
    # 128 MiB on v5e/v6e); fall back to a conservative value if the query is unavailable.
    try:
        cap = int(pltpu.get_tpu_info().vmem_capacity_bytes)
        return int(min(96 * 1024 * 1024, max(32 * 1024 * 1024, cap // 2)))
    except Exception:
        return 32 * 1024 * 1024


def sim_cot_layer(x, y, params, kernel_size, dw_stride):
    """x: (B, C, H, W) CNN map (NCHW), y: (B, H*W, C) transformer tokens."""
    B, C, H, W = x.shape
    Bt, N, Ct = y.shape
    assert Bt == B and Ct == C and N == H * W
    assert kernel_size % 2 == 1
    groups = 4
    assert C % groups == 0
    if dw_stride != 1:
        # TODO(synk): nearest upsample for dw_stride > 1 is not implemented; the module's
        # torch.cat([x, k]) only shape-checks when dw_stride == 1, so other values never run.
        raise NotImplementedError(
            "SimCotLayer forward is only shape-consistent for dw_stride == 1")

    ksz = kernel_size
    pad = ksz // 2
    HW = H * W
    bf16 = jnp.bfloat16
    f32 = jnp.float32

    # ---- fold parameters (tiny one-time math; BatchNorm = inference-mode affine) ----
    # TODO(synk): training-mode BatchNorm (batch statistics) is not modeled; BNs are folded
    # as inference-time scale/shift from running stats.
    wp = params["up_conv_w"].reshape(C, C).T.astype(bf16)                 # (C_in, C_out)
    s1 = params["up_bn_g"] / jnp.sqrt(params["up_bn_var"] + 1e-6)
    b1 = params["up_bn_b"] + (params["up_conv_b"] - params["up_bn_mean"]) * s1
    p_scale = s1.reshape(1, C).astype(f32)
    p_shift = b1.reshape(1, C).astype(f32)

    # Grouped kxk conv weight -> dense block-diagonal im2col weight (k*k*C_in, C_out).
    # TODO(synk): for C//groups >= 128 split into 4 per-group matmuls instead of the dense
    # block-diagonal form (4x useful-FLOP ratio); at small C the dense form is MXU-friendlier.
    wg = params["key_conv_w"]                                             # (C, C//4, k, k)
    Cg = C // groups
    wk_dense = jnp.zeros((ksz, ksz, C, C), f32)
    for g in range(groups):
        blk = wg[g * Cg:(g + 1) * Cg]                                     # (Cg, Cg, k, k)
        wk_dense = wk_dense.at[:, :, g * Cg:(g + 1) * Cg, g * Cg:(g + 1) * Cg].set(
            jnp.transpose(blk, (2, 3, 1, 0)))                             # (k, k, Cin, Cout)
    wk_col = wk_dense.reshape(ksz * ksz * C, C).astype(bf16)
    s2 = params["key_bn_g"] / jnp.sqrt(params["key_bn_var"] + 1e-5)
    b2 = params["key_bn_b"] - params["key_bn_mean"] * s2
    k_scale = s2.reshape(1, C).astype(f32)
    k_shift = b2.reshape(1, C).astype(f32)

    wo = params["out_conv_w"].reshape(C, 2 * C)                           # (C_out, 2C_in)
    wx = wo[:, :C].astype(bf16)
    wkc = wo[:, C:].astype(bf16)
    s3 = params["out_bn_g"] / jnp.sqrt(params["out_bn_var"] + 1e-5)
    b3 = params["out_bn_b"] - params["out_bn_mean"] * s3
    o_scale = s3.reshape(C, 1).astype(f32)
    o_shift = b3.reshape(C, 1).astype(f32)

    x_flat = x.reshape(B, C, HW)                                          # free metadata reshape

    kernel = functools.partial(_sim_cot_kernel, H=H, W=W, ksize=ksz, padding=pad)

    def wspec(shape):
        nd = len(shape)
        # Weights are grid-invariant (constant index map); Pallas keeps them resident.
        return pl.BlockSpec(shape, lambda b, _nd=nd: (0,) * _nd)

    flops = int(2 * B * HW * C * C * (3 + ksz * ksz))
    bytes_accessed = int(4 * (x_flat.size + y.size + B * C * HW)
                         + 2 * (wp.size + wk_col.size + wx.size + wkc.size)
                         + 4 * 8 * C)
    cost = pl.CostEstimate(flops=flops, transcendentals=0,
                           bytes_accessed=bytes_accessed)

    out = pl.pallas_call(
        kernel,
        out_shape=jax.ShapeDtypeStruct((B, C, HW), jnp.float32),
        grid=(B,),
        in_specs=[
            pl.BlockSpec((1, C, HW), lambda b: (b, 0, 0)),                # x (NCHW, flat)
            pl.BlockSpec((1, HW, C), lambda b: (b, 0, 0)),                # y tokens (channel-last)
            wspec((C, C)), wspec((1, C)), wspec((1, C)),                  # FCUUp conv / BN fold
            wspec((ksz * ksz * C, C)), wspec((1, C)), wspec((1, C)),      # key_embed im2col / BN
            wspec((C, C)), wspec((C, C)),                                 # conv1x1 split weights
            wspec((C, 1)), wspec((C, 1)),                                 # final BN fold
        ],
        out_specs=pl.BlockSpec((1, C, HW), lambda b: (b, 0, 0)),          # lane-dense HW last dim
        scratch_shapes=[
            pltpu.VMEM((H + 2 * pad, W + 2 * pad, C), jnp.bfloat16),      # padded halo (bf16)
            pltpu.VMEM((HW, ksz * ksz * C), jnp.bfloat16),                # im2col operand (bf16)
        ],
        compiler_params=pltpu.CompilerParams(
            dimension_semantics=("parallel",),
            vmem_limit_bytes=_vmem_limit_bytes()),
        cost_estimate=cost,
    )(x_flat, y, wp, p_scale, p_shift, wk_col, k_scale, k_shift,
      wx, wkc, o_scale, o_shift)

    return out.reshape(B, C, H, W)


# ----------------------------------------------------------------------------- reference


def _bn_eval(z, g, b, mean, var, eps):
    inv = g / jnp.sqrt(var + eps)
    return z * inv[None, :, None, None] + (b - mean * inv)[None, :, None, None]


def reference(x, y, params, kernel_size, dw_stride):
    """Pure-JAX (f32) reference matching the PyTorch forward (inference-mode BN)."""
    B, C, H, W = x.shape
    # FCUUp: tokens -> NCHW, 1x1 conv (+bias), BN eps=1e-6, ReLU, interpolate (identity)
    y_r = jnp.transpose(y, (0, 2, 1)).reshape(B, C, H, W)
    wp = params["up_conv_w"].reshape(C, C)
    y_r = jnp.einsum("oc,bchw->bohw", wp, y_r) + params["up_conv_b"][None, :, None, None]
    y_r = _bn_eval(y_r, params["up_bn_g"], params["up_bn_b"],
                   params["up_bn_mean"], params["up_bn_var"], 1e-6)
    y_r = jnp.maximum(y_r, 0.0)
    assert dw_stride == 1  # nearest interpolate to same size == identity
    # key_embed: kxk grouped conv (groups=4, no bias), BN, ReLU
    k = lax.conv_general_dilated(
        y_r, params["key_conv_w"], window_strides=(1, 1),
        padding=[(kernel_size // 2, kernel_size // 2)] * 2,
        dimension_numbers=("NCHW", "OIHW", "NCHW"), feature_group_count=4)
    k = _bn_eval(k, params["key_bn_g"], params["key_bn_b"],
                 params["key_bn_mean"], params["key_bn_var"], 1e-5)
    k = jnp.maximum(k, 0.0)
    # cat + conv1x1 (no bias) + BN
    cat = jnp.concatenate([x, k], axis=1)
    wo = params["out_conv_w"].reshape(C, 2 * C)
    out = jnp.einsum("oc,bchw->bohw", wo, cat)
    return _bn_eval(out, params["out_bn_g"], params["out_bn_b"],
                    params["out_bn_mean"], params["out_bn_var"], 1e-5)


# ----------------------------------------------------------------------------- demo


if __name__ == "__main__":
    B, dim, H, W = 2, 32, 16, 16          # HW = 256 -> lane-dense output stores
    kernel_size, dw_stride = 3, 1
    N = H * W

    key = jax.random.PRNGKey(0)
    ks = jax.random.split(key, 8)
    f32 = jnp.float32

    def bn_params(k, c):
        k1, k2, k3, k4 = jax.random.split(k, 4)
        return (1.0 + 0.1 * jax.random.normal(k1, (c,), f32),    # gamma
                0.05 * jax.random.normal(k2, (c,), f32),         # beta
                0.05 * jax.random.normal(k3, (c,), f32),         # running mean
                1.0 + 0.1 * jax.random.uniform(k4, (c,), f32))   # running var (>0)

    g1, b1, m1, v1 = bn_params(ks[0], dim)
    g2, b2, m2, v2 = bn_params(ks[1], dim)
    g3, b3, m3, v3 = bn_params(ks[2], dim)
    params = {
        "up_conv_w": 0.05 * jax.random.normal(ks[3], (dim, dim, 1, 1), f32),
        "up_conv_b": 0.05 * jax.random.normal(ks[4], (dim,), f32),
        "up_bn_g": g1, "up_bn_b": b1, "up_bn_mean": m1, "up_bn_var": v1,
        "key_conv_w": 0.05 * jax.random.normal(ks[5], (dim, dim // 4,
                                                       kernel_size, kernel_size), f32),
        "key_bn_g": g2, "key_bn_b": b2, "key_bn_mean": m2, "key_bn_var": v2,
        "out_conv_w": 0.05 * jax.random.normal(ks[6], (dim, 2 * dim, 1, 1), f32),
        "out_bn_g": g3, "out_bn_b": b3, "out_bn_mean": m3, "out_bn_var": v3,
    }
    kxy = jax.random.split(ks[7], 2)
    x = jax.random.normal(kxy[0], (B, dim, H, W), f32)     # CNN feature map (NCHW)
    y = jax.random.normal(kxy[1], (B, N, dim), f32)        # transformer tokens

    out = sim_cot_layer(x, y, params, kernel_size, dw_stride)
    out = jax.block_until_ready(out)

    ref = reference(x, y, params, kernel_size, dw_stride)
    assert out.shape == (B, dim, H, W)
    assert jnp.allclose(out, ref, rtol=2e-2, atol=2e-2), (
        f"max abs diff {float(jnp.max(jnp.abs(out - ref)))}")
    print("KERNEL_OK")
</pallas_src>

<mosaic_0001>
module attributes {stable_mosaic.version = 11 : i64} {
  func.func @_sim_cot_kernel(%arg0: i32, %arg1: memref<1x32x256xf32, #tpu.memory_space<vmem>>, %arg2: memref<1x256x32xf32, #tpu.memory_space<vmem>>, %arg3: memref<32x32xbf16, #tpu.memory_space<vmem>>, %arg4: memref<1x32xf32, #tpu.memory_space<vmem>>, %arg5: memref<1x32xf32, #tpu.memory_space<vmem>>, %arg6: memref<288x32xbf16, #tpu.memory_space<vmem>>, %arg7: memref<1x32xf32, #tpu.memory_space<vmem>>, %arg8: memref<1x32xf32, #tpu.memory_space<vmem>>, %arg9: memref<32x32xbf16, #tpu.memory_space<vmem>>, %arg10: memref<32x32xbf16, #tpu.memory_space<vmem>>, %arg11: memref<32x1xf32, #tpu.memory_space<vmem>>, %arg12: memref<32x1xf32, #tpu.memory_space<vmem>>, %arg13: memref<1x32x256xf32, #tpu.memory_space<vmem>>, %arg14: memref<18x18x32xbf16, #tpu.memory_space<vmem>>, %arg15: memref<256x288xbf16, #tpu.memory_space<vmem>>) attributes {dimension_semantics = [#tpu.dimension_semantics<parallel>], iteration_bounds = array<i64: 2>, scalar_prefetch = 0 : i64, scratch_operands = 2 : i64, tpu.core_type = #tpu.core_type<tc>, window_params = [{transform_indices = @transform_0, window_bounds = array<i64: 1, 32, 256>}, {transform_indices = @transform_1, window_bounds = array<i64: 1, 256, 32>}, {pipeline_mode = #tpu.pipeline_mode<synchronous>, transform_indices = @transform_2, window_bounds = array<i64: 32, 32>}, {pipeline_mode = #tpu.pipeline_mode<synchronous>, transform_indices = @transform_3, window_bounds = array<i64: 1, 32>}, {pipeline_mode = #tpu.pipeline_mode<synchronous>, transform_indices = @transform_4, window_bounds = array<i64: 1, 32>}, {pipeline_mode = #tpu.pipeline_mode<synchronous>, transform_indices = @transform_5, window_bounds = array<i64: 288, 32>}, {pipeline_mode = #tpu.pipeline_mode<synchronous>, transform_indices = @transform_6, window_bounds = array<i64: 1, 32>}, {pipeline_mode = #tpu.pipeline_mode<synchronous>, transform_indices = @transform_7, window_bounds = array<i64: 1, 32>}, {pipeline_mode = #tpu.pipeline_mode<synchronous>, transform_indices = @transform_8, window_bounds = array<i64: 32, 32>}, {pipeline_mode = #tpu.pipeline_mode<synchronous>, transform_indices = @transform_9, window_bounds = array<i64: 32, 32>}, {pipeline_mode = #tpu.pipeline_mode<synchronous>, transform_indices = @transform_10, window_bounds = array<i64: 32, 1>}, {pipeline_mode = #tpu.pipeline_mode<synchronous>, transform_indices = @transform_11, window_bounds = array<i64: 32, 1>}, {transform_indices = @transform_12, window_bounds = array<i64: 1, 32, 256>}]} {
    %c0 = arith.constant 0 : index
    %c0_0 = arith.constant 0 : index
    %c0_1 = arith.constant 0 : index
    %0 = vector.load %arg2[%c0, %c0_0, %c0_1] : memref<1x256x32xf32, #tpu.memory_space<vmem>>, vector<1x256x32xf32>
    %1 = vector.shape_cast %0 : vector<1x256x32xf32> to vector<256x32xf32>
    %2 = arith.truncf %1 : vector<256x32xf32> to vector<256x32xbf16>
    %c0_2 = arith.constant 0 : index
    %c0_3 = arith.constant 0 : index
    %3 = vector.load %arg3[%c0_2, %c0_3] : memref<32x32xbf16, #tpu.memory_space<vmem>>, vector<32x32xbf16>
    %cst = arith.constant dense<0.000000e+00> : vector<256x32xf32>
    %4 = tpu.matmul %2, %3, %cst {dimension_numbers = #tpu.dot_dimension_numbers<[1], [0], [0], [1], [0, 0, 1, 1], [], []>} : vector<256x32xbf16>, vector<32x32xbf16>, vector<256x32xf32> -> vector<256x32xf32>
    %c0_4 = arith.constant 0 : index
    %c0_5 = arith.constant 0 : index
    %5 = vector.load %arg4[%c0_4, %c0_5] : memref<1x32xf32, #tpu.memory_space<vmem>>, vector<1x32xf32>
    %6 = vector.broadcast %5 : vector<1x32xf32> to vector<256x32xf32>
    %7 = arith.mulf %4, %6 : vector<256x32xf32>
    %c0_6 = arith.constant 0 : index
    %c0_7 = arith.constant 0 : index
    %8 = vector.load %arg5[%c0_6, %c0_7] : memref<1x32xf32, #tpu.memory_space<vmem>>, vector<1x32xf32>
    %9 = vector.broadcast %8 : vector<1x32xf32> to vector<256x32xf32>
    %10 = arith.addf %7, %9 : vector<256x32xf32>
    %cst_8 = arith.constant 0.000000e+00 : f32
    %11 = vector.broadcast %cst_8 : f32 to vector<256x32xf32>
    %12 = arith.maximumf %10, %11 : vector<256x32xf32>
    %cst_9 = arith.constant 0.000000e+00 : bf16
    %13 = vector.broadcast %cst_9 : bf16 to vector<1x18x32xbf16>
    %c0_10 = arith.constant 0 : index
    %c0_11 = arith.constant 0 : index
    %c0_12 = arith.constant 0 : index
    %14 = vector.load %arg14[%c0_10, %c0_11, %c0_12] : memref<18x18x32xbf16, #tpu.memory_space<vmem>>, vector<1x18x32xbf16>
    tpu.vector_store %arg14[%c0_10, %c0_11, %c0_12], %13 {strides = array<i32>} : memref<18x18x32xbf16, #tpu.memory_space<vmem>>, vector<1x18x32xbf16>,
    %cst_13 = arith.constant 0.000000e+00 : bf16
    %15 = vector.broadcast %cst_13 : bf16 to vector<1x18x32xbf16>
    %c17 = arith.constant 17 : index
    %c0_14 = arith.constant 0 : index
    %c0_15 = arith.constant 0 : index
    %16 = vector.load %arg14[%c17, %c0_14, %c0_15] : memref<18x18x32xbf16, #tpu.memory_space<vmem>>, vector<1x18x32xbf16>
    tpu.vector_store %arg14[%c17, %c0_14, %c0_15], %15 {strides = array<i32>} : memref<18x18x32xbf16, #tpu.memory_space<vmem>>, vector<1x18x32xbf16>,
    %cst_16 = arith.constant 0.000000e+00 : bf16
    %17 = vector.broadcast %cst_16 : bf16 to vector<16x1x32xbf16>
    %c1 = arith.constant 1 : index
    %c0_17 = arith.constant 0 : index
    %c0_18 = arith.constant 0 : index
    %18 = vector.load %arg14[%c1, %c0_17, %c0_18] : memref<18x18x32xbf16, #tpu.memory_space<vmem>>, vector<16x1x32xbf16>
    tpu.vector_store %arg14[%c1, %c0_17, %c0_18], %17 {strides = array<i32>} : memref<18x18x32xbf16, #tpu.memory_space<vmem>>, vector<16x1x32xbf16>,
    %cst_19 = arith.constant 0.000000e+00 : bf16
    %19 = vector.broadcast %cst_19 : bf16 to vector<16x1x32xbf16>
    %c1_20 = arith.constant 1 : index
    %c17_21 = arith.constant 17 : index
    %c0_22 = arith.constant 0 : index
    %20 = vector.load %arg14[%c1_20, %c17_21, %c0_22] : memref<18x18x32xbf16, #tpu.memory_space<vmem>>, vector<16x1x32xbf16>
    tpu.vector_store %arg14[%c1_20, %c17_21, %c0_22], %19 {strides = array<i32>} : memref<18x18x32xbf16, #tpu.memory_space<vmem>>, vector<16x1x32xbf16>,
    %21 = arith.truncf %12 : vector<256x32xf32> to vector<256x32xbf16>
    %22 = vector.shape_cast %21 : vector<256x32xbf16> to vector<16x16x32xbf16>
    %c1_23 = arith.constant 1 : index
    %c1_24 = arith.constant 1 : index
    %c0_25 = arith.constant 0 : index
    %23 = vector.load %arg14[%c1_23, %c1_24, %c0_25] : memref<18x18x32xbf16, #tpu.memory_space<vmem>>, vector<16x16x32xbf16>
    tpu.vector_store %arg14[%c1_23, %c1_24, %c0_25], %22 {strides = array<i32>} : memref<18x18x32xbf16, #tpu.memory_space<vmem>>, vector<16x16x32xbf16>,
    %c0_26 = arith.constant 0 : index
    %c0_27 = arith.constant 0 : index
    %c0_28 = arith.constant 0 : index
    %24 = vector.load %arg14[%c0_26, %c0_27, %c0_28] : memref<18x18x32xbf16, #tpu.memory_space<vmem>>, vector<16x16x32xbf16>
    %25 = vector.shape_cast %24 : vector<16x16x32xbf16> to vector<256x32xbf16>
    %c0_29 = arith.constant 0 : index
    %c0_30 = arith.constant 0 : index
    %26 = vector.load %arg15[%c0_29, %c0_30] : memref<256x288xbf16, #tpu.memory_space<vmem>>, vector<256x32xbf16>
    tpu.vector_store %arg15[%c0_29, %c0_30], %25 {strides = array<i32>} : memref<256x288xbf16, #tpu.memory_space<vmem>>, vector<256x32xbf16>,
    %c0_31 = arith.constant 0 : index
    %c1_32 = arith.constant 1 : index
    %c0_33 = arith.constant 0 : index
    %27 = vector.load %arg14[%c0_31, %c1_32, %c0_33] : memref<18x18x32xbf16, #tpu.memory_space<vmem>>, vector<16x16x32xbf16>
    %28 = vector.shape_cast %27 : vector<16x16x32xbf16> to vector<256x32xbf16>
    %c0_34 = arith.constant 0 : index
    %c32 = arith.constant 32 : index
    %29 = vector.load %arg15[%c0_34, %c32] : memref<256x288xbf16, #tpu.memory_space<vmem>>, vector<256x32xbf16>
    tpu.vector_store %arg15[%c0_34, %c32], %28 {strides = array<i32>} : memref<256x288xbf16, #tpu.memory_space<vmem>>, vector<256x32xbf16>,
    %c0_35 = arith.constant 0 : index
    %c2 = arith.constant 2 : index
    %c0_36 = arith.constant 0 : index
    %30 = vector.load %arg14[%c0_35, %c2, %c0_36] : memref<18x18x32xbf16, #tpu.memory_space<vmem>>, vector<16x16x32xbf16>
    %31 = vector.shape_cast %30 : vector<16x16x32xbf16> to vector<256x32xbf16>
    %c0_37 = arith.constant 0 : index
    %c64 = arith.constant 64 : index
    %32 = vector.load %arg15[%c0_37, %c64] : memref<256x288xbf16, #tpu.memory_space<vmem>>, vector<256x32xbf16>
    tpu.vector_store %arg15[%c0_37, %c64], %31 {strides = array<i32>} : memref<256x288xbf16, #tpu.memory_space<vmem>>, vector<256x32xbf16>,
    %c1_38 = arith.constant 1 : index
    %c0_39 = arith.constant 0 : index
    %c0_40 = arith.constant 0 : index
    %33 = vector.load %arg14[%c1_38, %c0_39, %c0_40] : memref<18x18x32xbf16, #tpu.memory_space<vmem>>, vector<16x16x32xbf16>
    %34 = vector.shape_cast %33 : vector<16x16x32xbf16> to vector<256x32xbf16>
    %c0_41 = arith.constant 0 : index
    %c96 = arith.constant 96 : index
    %35 = vector.load %arg15[%c0_41, %c96] : memref<256x288xbf16, #tpu.memory_space<vmem>>, vector<256x32xbf16>
    tpu.vector_store %arg15[%c0_41, %c96], %34 {strides = array<i32>} : memref<256x288xbf16, #tpu.memory_space<vmem>>, vector<256x32xbf16>,
    %c1_42 = arith.constant 1 : index
    %c1_43 = arith.constant 1 : index
    %c0_44 = arith.constant 0 : index
    %36 = vector.load %arg14[%c1_42, %c1_43, %c0_44] : memref<18x18x32xbf16, #tpu.memory_space<vmem>>, vector<16x16x32xbf16>
    %37 = vector.shape_cast %36 : vector<16x16x32xbf16> to vector<256x32xbf16>
    %c0_45 = arith.constant 0 : index
    %c128 = arith.constant 128 : index
    %38 = vector.load %arg15[%c0_45, %c128] : memref<256x288xbf16, #tpu.memory_space<vmem>>, vector<256x32xbf16>
    tpu.vector_store %arg15[%c0_45, %c128], %37 {strides = array<i32>} : memref<256x288xbf16, #tpu.memory_space<vmem>>, vector<256x32xbf16>,
    %c1_46 = arith.constant 1 : index
    %c2_47 = arith.constant 2 : index
    %c0_48 = arith.constant 0 : index
    %39 = vector.load %arg14[%c1_46, %c2_47, %c0_48] : memref<18x18x32xbf16, #tpu.memory_space<vmem>>, vector<16x16x32xbf16>
    %40 = vector.shape_cast %39 : vector<16x16x32xbf16> to vector<256x32xbf16>
    %c0_49 = arith.constant 0 : index
    %c160 = arith.constant 160 : index
    %41 = vector.load %arg15[%c0_49, %c160] : memref<256x288xbf16, #tpu.memory_space<vmem>>, vector<256x32xbf16>
    tpu.vector_store %arg15[%c0_49, %c160], %40 {strides = array<i32>} : memref<256x288xbf16, #tpu.memory_space<vmem>>, vector<256x32xbf16>,
    %c2_50 = arith.constant 2 : index
    %c0_51 = arith.constant 0 : index
    %c0_52 = arith.constant 0 : index
    %42 = vector.load %arg14[%c2_50, %c0_51, %c0_52] : memref<18x18x32xbf16, #tpu.memory_space<vmem>>, vector<16x16x32xbf16>
    %43 = vector.shape_cast %42 : vector<16x16x32xbf16> to vector<256x32xbf16>
    %c0_53 = arith.constant 0 : index
    %c192 = arith.constant 192 : index
    %44 = vector.load %arg15[%c0_53, %c192] : memref<256x288xbf16, #tpu.memory_space<vmem>>, vector<256x32xbf16>
    tpu.vector_store %arg15[%c0_53, %c192], %43 {strides = array<i32>} : memref<256x288xbf16, #tpu.memory_space<vmem>>, vector<256x32xbf16>,
    %c2_54 = arith.constant 2 : index
    %c1_55 = arith.constant 1 : index
    %c0_56 = arith.constant 0 : index
    %45 = vector.load %arg14[%c2_54, %c1_55, %c0_56] : memref<18x18x32xbf16, #tpu.memory_space<vmem>>, vector<16x16x32xbf16>
    %46 = vector.shape_cast %45 : vector<16x16x32xbf16> to vector<256x32xbf16>
    %c0_57 = arith.constant 0 : index
    %c224 = arith.constant 224 : index
    %47 = vector.load %arg15[%c0_57, %c224] : memref<256x288xbf16, #tpu.memory_space<vmem>>, vector<256x32xbf16>
    tpu.vector_store %arg15[%c0_57, %c224], %46 {strides = array<i32>} : memref<256x288xbf16, #tpu.memory_space<vmem>>, vector<256x32xbf16>,
    %c2_58 = arith.constant 2 : index
    %c2_59 = arith.constant 2 : index
    %c0_60 = arith.constant 0 : index
    %48 = vector.load %arg14[%c2_58, %c2_59, %c0_60] : memref<18x18x32xbf16, #tpu.memory_space<vmem>>, vector<16x16x32xbf16>
    %49 = vector.shape_cast %48 : vector<16x16x32xbf16> to vector<256x32xbf16>
    %c0_61 = arith.constant 0 : index
    %c256 = arith.constant 256 : index
    %50 = vector.load %arg15[%c0_61, %c256] : memref<256x288xbf16, #tpu.memory_space<vmem>>, vector<256x32xbf16>
    tpu.vector_store %arg15[%c0_61, %c256], %49 {strides = array<i32>} : memref<256x288xbf16, #tpu.memory_space<vmem>>, vector<256x32xbf16>,
    %c0_62 = arith.constant 0 : index
    %c0_63 = arith.constant 0 : index
    %51 = vector.load %arg15[%c0_62, %c0_63] : memref<256x288xbf16, #tpu.memory_space<vmem>>, vector<256x288xbf16>
    %c0_64 = arith.constant 0 : index
    %c0_65 = arith.constant 0 : index
    %52 = vector.load %arg6[%c0_64, %c0_65] : memref<288x32xbf16, #tpu.memory_space<vmem>>, vector<288x32xbf16>
    %cst_66 = arith.constant dense<0.000000e+00> : vector<256x32xf32>
    %53 = tpu.matmul %51, %52, %cst_66 {dimension_numbers = #tpu.dot_dimension_numbers<[1], [0], [0], [1], [0, 0, 1, 1], [], []>} : vector<256x288xbf16>, vector<288x32xbf16>, vector<256x32xf32> -> vector<256x32xf32>
    %c0_67 = arith.constant 0 : index
    %c0_68 = arith.constant 0 : index
    %54 = vector.load %arg7[%c0_67, %c0_68] : memref<1x32xf32, #tpu.memory_space<vmem>>, vector<1x32xf32>
    %55 = vector.broadcast %54 : vector<1x32xf32> to vector<256x32xf32>
    %56 = arith.mulf %53, %55 : vector<256x32xf32>
    %c0_69 = arith.constant 0 : index
    %c0_70 = arith.constant 0 : index
    %57 = vector.load %arg8[%c0_69, %c0_70] : memref<1x32xf32, #tpu.memory_space<vmem>>, vector<1x32xf32>
    %58 = vector.broadcast %57 : vector<1x32xf32> to vector<256x32xf32>
    %59 = arith.addf %56, %58 : vector<256x32xf32>
    %cst_71 = arith.constant 0.000000e+00 : f32
    %60 = vector.broadcast %cst_71 : f32 to vector<256x32xf32>
    %61 = arith.maximumf %59, %60 : vector<256x32xf32>
    %c0_72 = arith.constant 0 : index
    %c0_73 = arith.constant 0 : index
    %c0_74 = arith.constant 0 : index
    %62 = vector.load %arg1[%c0_72, %c0_73, %c0_74] : memref<1x32x256xf32, #tpu.memory_space<vmem>>, vector<1x32x256xf32>
    %63 = vector.shape_cast %62 : vector<1x32x256xf32> to vector<32x256xf32>
    %64 = arith.truncf %63 : vector<32x256xf32> to vector<32x256xbf16>
    %c0_75 = arith.constant 0 : index
    %c0_76 = arith.constant 0 : index
    %65 = vector.load %arg9[%c0_75, %c0_76] : memref<32x32xbf16, #tpu.memory_space<vmem>>, vector<32x32xbf16>
    %cst_77 = arith.constant dense<0.000000e+00> : vector<32x256xf32>
    %66 = tpu.matmul %65, %64, %cst_77 {dimension_numbers = #tpu.dot_dimension_numbers<[1], [0], [0], [1], [0, 0, 1, 1], [], []>} : vector<32x32xbf16>, vector<32x256xbf16>, vector<32x256xf32> -> vector<32x256xf32>
    %c0_78 = arith.constant 0 : index
    %c0_79 = arith.constant 0 : index
    %67 = vector.load %arg10[%c0_78, %c0_79] : memref<32x32xbf16, #tpu.memory_space<vmem>>, vector<32x32xbf16>
    %68 = arith.truncf %61 : vector<256x32xf32> to vector<256x32xbf16>
    %cst_80 = arith.constant dense<0.000000e+00> : vector<32x256xf32>
    %69 = tpu.matmul %67, %68, %cst_80 {dimension_numbers = #tpu.dot_dimension_numbers<[1], [1], [0], [0], [0, 0, 1, 0], [], []>} : vector<32x32xbf16>, vector<256x32xbf16>, vector<32x256xf32> -> vector<32x256xf32>
    %70 = arith.addf %66, %69 : vector<32x256xf32>
    %c0_81 = arith.constant 0 : index
    %c0_82 = arith.constant 0 : index
    %71 = vector.load %arg11[%c0_81, %c0_82] : memref<32x1xf32, #tpu.memory_space<vmem>>, vector<32x1xf32>
    %72 = vector.broadcast %71 : vector<32x1xf32> to vector<32x256xf32>
    %73 = arith.mulf %70, %72 : vector<32x256xf32>
    %c0_83 = arith.constant 0 : index
    %c0_84 = arith.constant 0 : index
    %74 = vector.load %arg12[%c0_83, %c0_84] : memref<32x1xf32, #tpu.memory_space<vmem>>, vector<32x1xf32>
    %75 = vector.broadcast %74 : vector<32x1xf32> to vector<32x256xf32>
    %76 = arith.addf %73, %75 : vector<32x256xf32>
    %c0_85 = arith.constant 0 : index
    %c0_86 = arith.constant 0 : index
    %c0_87 = arith.constant 0 : index
    %77 = vector.load %arg13[%c0_85, %c0_86, %c0_87] : memref<1x32x256xf32, #tpu.memory_space<vmem>>, vector<1x32x256xf32>
    %78 = vector.shape_cast %77 : vector<1x32x256xf32> to vector<32x256xf32>
    %79 = vector.shape_cast %76 : vector<32x256xf32> to vector<1x32x256xf32>
    tpu.vector_store %arg13[%c0_85, %c0_86, %c0_87], %79 {strides = array<i32>} : memref<1x32x256xf32, #tpu.memory_space<vmem>>, vector<1x32x256xf32>,
    return
  }
  func.func @transform_0(%arg0: i32) -> (i32, i32, i32) {
    %c0_i32 = arith.constant 0 : i32
    %c0_i32_0 = arith.constant 0 : i32
    %c0_i32_1 = arith.constant 0 : i32
    return %arg0, %c0_i32, %c0_i32_0 : i32, i32, i32
  }
  func.func @transform_1(%arg0: i32) -> (i32, i32, i32) {
    %c0_i32 = arith.constant 0 : i32
    %c0_i32_0 = arith.constant 0 : i32
    %c0_i32_1 = arith.constant 0 : i32
    return %arg0, %c0_i32, %c0_i32_0 : i32, i32, i32
  }
  func.func @transform_2(%arg0: i32) -> (i32, i32) {
    %c0_i32 = arith.constant 0 : i32
    %c0_i32_0 = arith.constant 0 : i32
    %c0_i32_1 = arith.constant 0 : i32
    return %c0_i32, %c0_i32_0 : i32, i32
  }
  func.func @transform_3(%arg0: i32) -> (i32, i32) {
    %c0_i32 = arith.constant 0 : i32
    %c0_i32_0 = arith.constant 0 : i32
    %c0_i32_1 = arith.constant 0 : i32
    return %c0_i32, %c0_i32_0 : i32, i32
  }
  func.func @transform_4(%arg0: i32) -> (i32, i32) {
    %c0_i32 = arith.constant 0 : i32
    %c0_i32_0 = arith.constant 0 : i32
    %c0_i32_1 = arith.constant 0 : i32
    return %c0_i32, %c0_i32_0 : i32, i32
  }
  func.func @transform_5(%arg0: i32) -> (i32, i32) {
    %c0_i32 = arith.constant 0 : i32
    %c0_i32_0 = arith.constant 0 : i32
    %c0_i32_1 = arith.constant 0 : i32
    return %c0_i32, %c0_i32_0 : i32, i32
  }
  func.func @transform_6(%arg0: i32) -> (i32, i32) {
    %c0_i32 = arith.constant 0 : i32
    %c0_i32_0 = arith.constant 0 : i32
    %c0_i32_1 = arith.constant 0 : i32
    return %c0_i32, %c0_i32_0 : i32, i32
  }
  func.func @transform_7(%arg0: i32) -> (i32, i32) {
    %c0_i32 = arith.constant 0 : i32
    %c0_i32_0 = arith.constant 0 : i32
    %c0_i32_1 = arith.constant 0 : i32
    return %c0_i32, %c0_i32_0 : i32, i32
  }
  func.func @transform_8(%arg0: i32) -> (i32, i32) {
    %c0_i32 = arith.constant 0 : i32
    %c0_i32_0 = arith.constant 0 : i32
    %c0_i32_1 = arith.constant 0 : i32
    return %c0_i32, %c0_i32_0 : i32, i32
  }
  func.func @transform_9(%arg0: i32) -> (i32, i32) {
    %c0_i32 = arith.constant 0 : i32
    %c0_i32_0 = arith.constant 0 : i32
    %c0_i32_1 = arith.constant 0 : i32
    return %c0_i32, %c0_i32_0 : i32, i32
  }
  func.func @transform_10(%arg0: i32) -> (i32, i32) {
    %c0_i32 = arith.constant 0 : i32
    %c0_i32_0 = arith.constant 0 : i32
    %c0_i32_1 = arith.constant 0 : i32
    return %c0_i32, %c0_i32_0 : i32, i32
  }
  func.func @transform_11(%arg0: i32) -> (i32, i32) {
    %c0_i32 = arith.constant 0 : i32
    %c0_i32_0 = arith.constant 0 : i32
    %c0_i32_1 = arith.constant 0 : i32
    return %c0_i32, %c0_i32_0 : i32, i32
  }
  func.func @transform_12(%arg0: i32) -> (i32, i32, i32) {
    %c0_i32 = arith.constant 0 : i32
    %c0_i32_0 = arith.constant 0 : i32
    %c0_i32_1 = arith.constant 0 : i32
    return %arg0, %c0_i32, %c0_i32_0 : i32, i32, i32
  }
}

</mosaic_0001>

<bundles_post_ra>
// kernel: tpu_custom_call.1
= control target key start
LH: loop header
LB: loop body
LE: loop exit
PB: predicated region body
PF: predicated region fallthrough
CT: control target
= control target key end

     0   :  { %s8119_s0 = inlined_call_operand.vmem [shape: f32[2,32,256], index: 0, kind: input, shape index: {}]   ;;  %s8120_s1 = inlined_call_operand.vmem [shape: f32[2,256,32], index: 1, kind: input, shape index: {}]   ;;  %s8121_s2 = inlined_call_operand.vmem [shape: bf16[32,32], index: 2, kind: input, shape index: {}]   ;;  %s8122_s3 = inlined_call_operand.vmem [shape: f32[1,32], index: 3, kind: input, shape index: {}]   ;;  %s8123_s4 = inlined_call_operand.vmem [shape: f32[1,32], index: 4, kind: input, shape index: {}]   ;;  %s8124_s5 = inlined_call_operand.vmem [shape: bf16[288,32], index: 5, kind: input, shape index: {}]   ;;  %s8125_s6 = inlined_call_operand.vmem [shape: f32[1,32], index: 6, kind: input, shape index: {}]   ;;  %s8126_s7 = inlined_call_operand.vmem [shape: f32[1,32], index: 7, kind: input, shape index: {}]   ;;  %s8127_s8 = inlined_call_operand.vmem [shape: bf16[32,32], index: 8, kind: input, shape index: {}]   ;;  %s8128_s9 = inlined_call_operand.vmem [shape: bf16[32,32], index: 9, kind: input, shape index: {}]   ;;  %s8129_s10 = inlined_call_operand.vmem [shape: f32[32,1], index: 10, kind: input, shape index: {}]   ;;  %s8130_s11 = inlined_call_operand.vmem [shape: f32[32,1], index: 11, kind: input, shape index: {}]   ;;  %s8131_s12 = inlined_call_operand.hbm [shape: f32[2,32,256], index: 12, kind: output, shape index: {}]  }
   0x1   :  { %8132 = sst [smem:[#allocation7_spill]] %s8119_s0 }
   0x2   :  { %17 = vsyncpa [#allocation5], 0 }
   0x3   :  { %19 = vsyncpa [#allocation5 + $0x1], 0  ;;  %s6400_s21 = smov 0   ;;  %s6402_s22 = smov 0  }
   0x4   :  { %s6404_s23 = smov 0   ;;  %s6406_s24 = smov 0  }
   0x5 LB: > { %s6421_s25 = sadd.s32 4294967295, %s6326_s24   ;;  %s5548_s26 = sadd.s32 4294967294, %s6326_s24   ;;  %s6326_s24 = sphi %s6406_s24, %s8151_s24   ;;  %s6322_s23 = sphi %s6404_s23, %s8150_s23   ;;  %s6318_s22 = sphi %s6402_s22, %s8149_s22   ;;  %s6314_s21 = sphi %s6400_s21, %s8148_s21  }
   0x6   : > { %s6425_s27 = sadd.s32 1, %s6326_s24   ;;  %s294_s28 = sadd.s32 1, %s6322_s23 }
   0x7   : > { %s291_s29 = ssub.s32 %s6326_s24, %s6425_s27  ;;  %p304_p0 = scmp.ne.s32.totalorder %s6322_s23, %s6318_s22 }
   0x8   : > { %p292_p1 = scmp.eq.s32.totalorder %s291_s29, 0  ;;  %p305_p2 = scmp.eq.s32.totalorder %s6421_s25, 1 }
   0x9   : > { %p310_p3 = scmp.ne.s32.totalorder %s6318_s22, %s6314_s21  ;;  %p311_p4 = scmp.eq.s32.totalorder %s5548_s26, 1 }
   0xa   : > { %s6436_s30 = scalar_select %p292_p1, %s6322_s23, %s294_s28  }
   0xb   : > { %p6438_p5 = por %p305_p2, %p304_p0  ;;  %p6442_p6 = por %p311_p4, %p310_p3 }
   0xc   : > { %p5551_p7 = scmp.ge.s32.totalorder %s6326_s24, 1  ;;  %p375_p8 = scmp.lt.s32.totalorder %s6326_s24, 3 }
   0xe   : > { %p376_p9 = pnand %p5551_p7, %p375_p8 }
   0xf   : > { %v6188_v0 = vld [vmem:[%s8121_s2] sm:$0xff] (!%p376_p9)   ;;  %p422_p10 = scmp.lt.s32.totalorder (!%p376_p9), %s6421_s25, 1  ;;  %v6189_v1 = vld [vmem:[%s8121_s2 + $0x8] sm:$0xff] (!%p376_p9)   ;;  %vm497_vm0 = vcmask (!%p376_p9), 261120   ;;  %vm820_vm1 = vcmask (!%p376_p9), 253952   ;;  %vm817_vm6 = vcmask (!%p376_p9), 257024  }
  0x10   : > { %379 = sbr.rel (%p376_p9) target bundleno = 1204 (0x4b4), region = 68  ;;  %6053 = vmatprep.subr.bf16.mxu0 (!%p376_p9), %v6188_v0  ;;  %vm828_vm2 = vsmask.f32 (!%p376_p9), 256  ;;  %v833_v51 = vld [vmem:[#allocation2 + $0x18] sm:$0x1] (!%p376_p9)  ;;  %vm2248_vm7 = vcmask (!%p376_p9), 1042432  }
  0x11   : > { %6054 = vmatpush3.bf16.msra.mxu0 (!%p376_p9), %v6188_v0  ;;  %vm6514_vm3 = vmand (!%p376_p9), %vm820_vm1, %vm828_vm2  ;;  %vm878_vm4 = vsmask.f32 (!%p376_p9), 7938  ;;  %v830_v53 = vld [vmem:[#allocation2 + $0xc] sm:$0x1] (!%p376_p9)  ;;  %v883_v56 = vld [vmem:[#allocation2 + $0x20] sm:$0x1] (!%p376_p9) }
  0x12   : > { %6055 = vmatprep.subr.bf16.mxu0 (!%p376_p9), %v6189_v1  ;;  %v834_v52 = vsel (!%p376_p9), %vm6514_vm3, 0, %v833_v51  ;;  %v831_v54 = vsel (!%p376_p9), %vm6514_vm3, 0, %v830_v53  ;;  %vm6524_vm5 = vmand (!%p376_p9), %vm820_vm1, %vm878_vm4  ;;  %v880_v58 = vld [vmem:[#allocation2 + $0x14] sm:$0x1] (!%p376_p9)  ;;  %v839_v60 = vld [vmem:[#allocation2 + $0x30] sm:$0x1] (!%p376_p9) }
  0x13   : > { %835 = vst [vmem:[#allocation2 + $0x18] sm:$0x1] (!%p376_p9), %v834_v52  ;;  %832 = vst [vmem:[#allocation2 + $0xc] sm:$0x1] (!%p376_p9), %v831_v54  ;;  %v884_v57 = vsel (!%p376_p9), %vm6524_vm5, 0, %v883_v56  ;;  %v881_v59 = vsel (!%p376_p9), %vm6524_vm5, 0, %v880_v58 }
  0x14   : > { %885 = vst [vmem:[#allocation2 + $0x20] sm:$0x1] (!%p376_p9), %v884_v57  ;;  %882 = vst [vmem:[#allocation2 + $0x14] sm:$0x1] (!%p376_p9), %v881_v59  ;;  %v840_v61 = vsel (!%p376_p9), %vm6514_vm3, 0, %v839_v60  ;;  %v6328_v0 = vmov (!%p376_p9), 0  }
  0x15   : > { %6056 = vmatpush3.bf16.msra.mxu0 (!%p376_p9), %v6189_v1  ;;  %v836_v62 = vld [vmem:[#allocation2 + $0x24] sm:$0x1] (!%p376_p9)  ;;  %841 = vst [vmem:[#allocation2 + $0x30] sm:$0x1] (!%p376_p9), %v840_v61  ;;  %818 = vst.msk [vmem:[#allocation2] sm:$0xf] (!%p376_p9), %vm817_vm6, %v6328_v0  ;;  %6187 = vset.pattern.permute.xlu1 (!%p376_p9), %v6328_v0 }
  0x16   : > { %v837_v63 = vsel (!%p376_p9), %vm6514_vm3, 0, %v836_v62  ;;  %819 = vst.msk [vmem:[#allocation2 + $0x4] sm:$0xf] (!%p376_p9), %vm817_vm6, %v6328_v0  ;;  %823 = vst.msk [vmem:[#allocation2 + $0xcc] sm:$0xf] (!%p376_p9), %vm817_vm6, %v6328_v0  ;;  %6186 = vset.pattern.permute.xlu0 (!%p376_p9), %v6328_v0  ;;  %vm2249_vm8 = vcmask (!%p376_p9), 1046532  }
  0x17   : > { %s6456_s19 = scalar_select %p422_p10, %s6421_s25, 1  ;;  %838 = vst [vmem:[#allocation2 + $0x24] sm:$0x1] %v837_v63  ;;  %821 = vst.msk [vmem:[#allocation2 + $0x8] sm:$0x1] %vm820_vm1, %v6328_v0 }
  0x18   : > { %824 = vst.msk [vmem:[#allocation2 + $0xd0] sm:$0xf] %vm817_vm6, %v6328_v0  ;;  %vm6554_vm9 = vmor %vm2248_vm7, %vm2249_vm8  ;;  %s6329_s15 = smov 64   ;;  %vm1652_vm10 = vsmask.f32 3328  ;;  %s6330_s16 = smov 32  }
  0x19   : > { %s5851_s20 = sshll.u32 %s6456_s19, 8  ;;  %825 = vst.msk [vmem:[#allocation2 + $0xd4] sm:$0x1] %vm820_vm1, %v6328_v0  ;;  %vm1653_vm11 = vsmask.f32 7440  ;;  %vm6625_vm14 = vmand %vm817_vm6, %vm878_vm4  ;;  %vm2135_vm1 = vcmask 523520  }
  0x1a   : > { %s6462_s29 = scalar_lea.vmem %s8120_s1, %s5851_s20  ;;  %vm6563_vm12 = vmor %vm1652_vm10, %vm1653_vm11  ;;  %v901_v51 = vld [vmem:[#allocation2 + $0x68] sm:$0x1]  ;;  %v898_v54 = vld [vmem:[#allocation2 + $0x5c] sm:$0x1]  ;;  %vm1024_vm13 = vsmask.f32 4368 }
  0x1b   : > { %v433_v2 = vld [vmem:[%s6462_s29] sm:$0xff]  ;;  %v434_v3 = vld [vmem:[%s6462_s29 + $0x8] sm:$0xff]  ;;  %v435_v4 = vld [vmem:[%s6462_s29 + $0x10] sm:$0xff]  ;;  %v902_v53 = vsel %vm6524_vm5, 0, %v901_v51  ;;  %v899_v56 = vsel %vm6524_vm5, 0, %v898_v54  ;;  %s6331_s20 = smov 96  }
  0x1c   : > { %v465_v5 = vpack.c.bf16 %v434_v3, %v433_v2  ;;  %v436_v6 = vld [vmem:[%s6462_s29 + $0x18] sm:$0xff]  ;;  %v437_v7 = vld [vmem:[%s6462_s29 + $0x20] sm:$0xff]  ;;  %v438_v8 = vld [vmem:[%s6462_s29 + $0x28] sm:$0xff]  ;;  %903 = vst [vmem:[#allocation2 + $0x68] sm:$0x1] %v902_v53  ;;  %vm2636_vm4 = vcmask 1048320  }
  0x1d   : > { %v466_v9 = vpack.c.bf16 %v436_v6, %v435_v4  ;;  %v467_v10 = vpack.c.bf16 %v438_v8, %v437_v7  ;;  %v439_v11 = vld [vmem:[%s6462_s29 + $0x30] sm:$0xff]  ;;  %v440_v12 = vld [vmem:[%s6462_s29 + $0x38] sm:$0xff]  ;;  %v441_v13 = vld [vmem:[%s6462_s29 + $0x40] sm:$0xff]  ;;  %900 = vst [vmem:[#allocation2 + $0x5c] sm:$0x1] %v899_v56  ;;  %s5850_s17 = sshll.u32 %s6456_s19, 6 }
  0x1e   : > { %6057 = vmatprep.mubr.msk.bf16.mxu0 %vm497_vm0, %v465_v5  ;;  %v442_v14 = vld [vmem:[%s6462_s29 + $0x48] sm:$0xff]  ;;  %v468_v15 = vpack.c.bf16 %v440_v12, %v439_v11  ;;  %v443_v17 = vld [vmem:[%s6462_s29 + $0x50] sm:$0xff]  ;;  %v444_v18 = vld [vmem:[%s6462_s29 + $0x58] sm:$0xff]  ;;  %s8147_s0 = sld [smem:[#allocation7_spill]]  ;;  %s419_s18 = sand.u32 1, %s6318_s22  }
  0x1f   : > { %6058 = vmatmul.mubr.msk.bf16.vlgmr.msra.gmra.mrb[0].mxu0 %vm497_vm0, %v466_v9  ;;  %v469_v16 = vpack.c.bf16 %v442_v14, %v441_v13  ;;  %v445_v19 = vld [vmem:[%s6462_s29 + $0x60] sm:$0xff]  ;;  %v446_v20 = vld [vmem:[%s6462_s29 + $0x68] sm:$0xff]  ;;  %v470_v21 = vpack.c.bf16 %v444_v18, %v443_v17  ;;  %v447_v23 = vld [vmem:[%s6462_s29 + $0x70] sm:$0xff]  ;;  %s5884_s19 = sshll.u32 %s6421_s25, 10  ;;  %s8078_s25 = scalar_lea.sflag [#allocation5], %s419_s18 }
  0x20   : > { %6061 = vmatprep.mubr.msk.bf16.mxu0 %vm497_vm0, %v467_v10  ;;  %v471_v22 = vpack.c.bf16 %v446_v20, %v445_v19  ;;  %v448_v24 = vld [vmem:[%s6462_s29 + $0x78] sm:$0xff]  ;;  %v449_v25 = vld [vmem:[%s6462_s29 + $0x80] sm:$0xff]  ;;  %v450_v26 = vld [vmem:[%s6462_s29 + $0x88] sm:$0xff] }
  0x21   : > { %v472_v27 = vpack.c.bf16 %v448_v24, %v447_v23  ;;  %v473_v28 = vpack.c.bf16 %v450_v26, %v449_v25  ;;  %v451_v29 = vld [vmem:[%s6462_s29 + $0x90] sm:$0xff]  ;;  %v452_v30 = vld [vmem:[%s6462_s29 + $0x98] sm:$0xff]  ;;  %v453_v31 = vld [vmem:[%s6462_s29 + $0xa0] sm:$0xff] }
  0x22   : > { %v454_v32 = vld [vmem:[%s6462_s29 + $0xa8] sm:$0xff]  ;;  %v474_v33 = vpack.c.bf16 %v452_v30, %v451_v29  ;;  %v455_v35 = vld [vmem:[%s6462_s29 + $0xb0] sm:$0xff]  ;;  %v456_v36 = vld [vmem:[%s6462_s29 + $0xb8] sm:$0xff] }
  0x23   : > { %v475_v34 = vpack.c.bf16 %v454_v32, %v453_v31  ;;  %v457_v37 = vld [vmem:[%s6462_s29 + $0xc0] sm:$0xff]  ;;  %v458_v38 = vld [vmem:[%s6462_s29 + $0xc8] sm:$0xff]  ;;  %v476_v39 = vpack.c.bf16 %v456_v36, %v455_v35  ;;  %v459_v41 = vld [vmem:[%s6462_s29 + $0xd0] sm:$0xff] }
  0x24   : > { %v477_v40 = vpack.c.bf16 %v458_v38, %v457_v37  ;;  %v460_v42 = vld [vmem:[%s6462_s29 + $0xd8] sm:$0xff]  ;;  %v461_v43 = vld [vmem:[%s6462_s29 + $0xe0] sm:$0xff]  ;;  %v462_v44 = vld [vmem:[%s6462_s29 + $0xe8] sm:$0xff] }
  0x25   : > { %v478_v45 = vpack.c.bf16 %v460_v42, %v459_v41  ;;  %v479_v46 = vpack.c.bf16 %v462_v44, %v461_v43  ;;  %v463_v47 = vld [vmem:[%s6462_s29 + $0xf0] sm:$0xff]  ;;  %v464_v48 = vld [vmem:[%s6462_s29 + $0xf8] sm:$0xff]  ;;  %v2153_v1 = vld [vmem:[#allocation2 + $0x4] sm:$0xf]  ;;  %s8072_s29 = scalar_lea.hbm %s8131_s12, %s5884_s19 }
  0x26   : > { %v480_v49 = vpack.c.bf16 %v464_v48, %v463_v47  ;;  %v2253_v2 = vrot.slane %v2153_v1, 5  ;;  %v889_v3 = vld [vmem:[#allocation2 + $0x38] sm:$0x1]  ;;  %v2152_v4 = vld [vmem:[#allocation2] sm:$0xe]  ;;  %vm6632_vm15 = vmor %vm828_vm2, %vm1024_vm13  ;;  %vm2459_vm2 = vcmask 785920  }
  0x27   : > { %6062 = vmatmul.mubr.msk.bf16.gmra.mrb[4].mxu0 %vm497_vm0, %v468_v15  ;;  %v2154_v5 = vld [vmem:[#allocation2 + $0x8] sm:$0x1]  ;;  %v890_v6 = vsel %vm6524_vm5, 0, %v889_v3  ;;  %v886_v7 = vld [vmem:[#allocation2 + $0x2c] sm:$0x1]  ;;  %v5641_v8 = vrot.slane %v2152_v4, 9 }
  0x28   : > { %6065 = vmatprep.mubr.msk.bf16.mxu0 %vm497_vm0, %v469_v16  ;;  %891 = vst [vmem:[#allocation2 + $0x38] sm:$0x1] %v890_v6  ;;  %v887_v9 = vsel %vm6524_vm5, 0, %v886_v7  ;;  %v2255_v11 = vrot.slane %v2253_v2, 4  ;;  %v2256_v12 = vrot.slane %v2154_v5, 5 }
  0x29   : > { %v1604_v13 = vld [vmem:[#allocation2] sm:$0xf]  ;;  %888 = vst [vmem:[#allocation2 + $0x2c] sm:$0x1] %v887_v9  ;;  %v2254_v14 = vsel %vm6554_vm9, %v5641_v8, %v2253_v2  ;;  %v1605_v15 = vld [vmem:[#allocation2 + $0x4] sm:$0xf] }
  0x2a   : > { %v1656_v16 = vshrl.u32 %v1604_v13, 16  ;;  %v1659_v17 = vshll.u32 %v1604_v13, 16  ;;  %v2257_v18 = vsel %vm6554_vm9, %v2255_v11, %v2256_v12  ;;  %v1606_v19 = vld [vmem:[#allocation2 + $0x8] sm:$0x1]  ;;  %v1665_v20 = vshll.u32 %v1605_v15, 16 }
  0x2b   : > { %v1675_v25 = vshll.u32 %v1606_v19, 16  ;;  %v845_v37 = vld [vmem:[#allocation2 + $0x48] sm:$0x1]  ;;  %v842_v38 = vld [vmem:[#allocation2 + $0x3c] sm:$0x1] }
  0x2c   : > { %v1658_v23 = vrot.slane %v1656_v16, 4  ;;  %v1661_v24 = vrot.slane %v1659_v17, 5  ;;  %v1667_v26 = vrot.slane %v1665_v20, 5  ;;  %v892_v41 = vld [vmem:[#allocation2 + $0x44] sm:$0x1] }
  0x2d   : > { %v1677_v31 = vrot.slane %v1675_v25, 5  ;;  %v893_v42 = vsel %vm6524_vm5, 0, %v892_v41  ;;  %v895_v43 = vld [vmem:[#allocation2 + $0x50] sm:$0x1]  ;;  %v851_v47 = vld [vmem:[#allocation2 + $0x60] sm:$0x1] }
  0x2e   : > { %894 = vst [vmem:[#allocation2 + $0x44] sm:$0x1] %v893_v42  ;;  %v896_v44 = vsel %vm6524_vm5, 0, %v895_v43  ;;  %v852_v48 = vsel %vm6514_vm3, 0, %v851_v47  ;;  %v857_v57 = vld [vmem:[#allocation2 + $0x78] sm:$0x1] }
  0x2f   : > { %6066 = vmatmul.mubr.msk.bf16.gmra.mrb[8].mxu0 %vm497_vm0, %v470_v21  ;;  %v1669_v21 = vshrl.u32 %v1605_v15, 16  ;;  %897 = vst [vmem:[#allocation2 + $0x50] sm:$0x1] %v896_v44  ;;  %853 = vst [vmem:[#allocation2 + $0x60] sm:$0x1] %v852_v48  ;;  %v858_v58 = vsel %vm6514_vm3, 0, %v857_v57 }
  0x30   : > { %6069 = vmatprep.mubr.msk.bf16.mxu0 %vm497_vm0, %v471_v22  ;;  %v5657_v22 = vcombine.low %v2254_v14, %v2257_v18  ;;  %859 = vst [vmem:[#allocation2 + $0x78] sm:$0x1] %v858_v58  ;;  %v854_v59 = vld [vmem:[#allocation2 + $0x6c] sm:$0x1]  ;;  %v907_v61 = vld [vmem:[#allocation2 + $0x80] sm:$0x1] }
  0x31   : > { %v855_v60 = vsel %vm6514_vm3, 0, %v854_v59  ;;  %v908_v62 = vsel %vm6524_vm5, 0, %v907_v61  ;;  %v904_v63 = vld [vmem:[#allocation2 + $0x74] sm:$0x1]  ;;  %v6605_v2 = vld [vmem:[%s8122_s3] ss:$0 sm:$0xff] }
  0x32   : > { %2411 = vrot.lane.b32.xlu1 %v5657_v22, %s6329_s15  ;;  %856 = vst [vmem:[#allocation2 + $0x6c] sm:$0x1] %v855_v60  ;;  %909 = vst [vmem:[#allocation2 + $0x80] sm:$0x1] %v908_v62  ;;  %v905_v1 = vsel %vm6524_vm5, 0, %v904_v63 }
  0x33   : > { %906 = vst [vmem:[#allocation2 + $0x74] sm:$0x1] %v905_v1  ;;  %v6610_v4 = vld [vmem:[%s8123_s4] ss:$0 sm:$0xff]  ;;  %v1355_v41 = vld [vmem:[#allocation2 + $0x18] sm:$0xf] }
  0x34   : > { %v1348_v48 = vld [vmem:[#allocation2 + $0xc] sm:$0xf]  ;;  %v1359_v56 = vld [vmem:[#allocation2 + $0x20] sm:$0x1]  ;;  %v1352_v62 = vld [vmem:[#allocation2 + $0x14] sm:$0x1] }
  0x37   : > { %6070 = vmatmul.mubr.msk.bf16.gmra.mrb[12].mxu0 %vm497_vm0, %v472_v27  ;;  %v1671_v27 = vrot.slane %v1669_v21, 4 }
  0x38   : > { %6073 = vmatprep.mubr.msk.bf16.mxu0 %vm497_vm0, %v473_v28  ;;  %v1662_v28 = vor.u32 %v1661_v24, %v1658_v23 }
  0x39   : > { %v1672_v30 = vor.u32 %v1671_v27, %v1667_v26 }
  0x3a   : > { %v1663_v32 = vrot.slane %v1662_v28, 4 }
  0x3f   : > { %6074 = vmatmul.mubr.msk.bf16.gmra.mrb[16].mxu0 %vm497_vm0, %v474_v33  ;;  %v1673_v33 = vrot.slane %v1672_v30, 4 }
  0x40   : > { %6077 = vmatprep.mubr.msk.bf16.mxu0 %vm497_vm0, %v475_v34  ;;  %v1668_v34 = vsel %vm6563_vm12, %v1663_v32, %v1667_v26 }
  0x41   : > { %v1678_v35 = vsel %vm6563_vm12, %v1673_v33, %v1677_v31 }
  0x42   : > { %v5625_v36 = vcombine.low %v1668_v34, %v1678_v35 }
  0x44   : > { %2087 = vrot.lane.b32.xlu0 %v5625_v36, %s6330_s16 }
  0x47   : > { %6078 = vmatmul.mubr.msk.bf16.gmra.mrb[20].mxu0 %vm497_vm0, %v476_v39  ;;  %v846_v39 = vsel %vm6514_vm3, 0, %v845_v37 }
  0x48   : > { %6081 = vmatprep.mubr.msk.bf16.mxu0 %vm497_vm0, %v477_v40  ;;  %v843_v40 = vsel %vm6514_vm3, 0, %v842_v38  ;;  %847 = vst [vmem:[#allocation2 + $0x48] sm:$0x1] %v846_v39 }
  0x49   : > { %844 = vst [vmem:[#allocation2 + $0x3c] sm:$0x1] %v843_v40 }
  0x4f   : > { %6082 = vmatmul.mubr.msk.bf16.gmra.mrb[24].mxu0 %vm497_vm0, %v478_v45  ;;  %v6194_v45 = vld [vmem:[%s8124_s5 + $0x80] sm:$0xff]  }
  0x50   : > { %6085 = vmatprep.mubr.msk.bf16.mxu0 %vm497_vm0, %v479_v46  ;;  %v6195_v46 = vld [vmem:[%s8124_s5 + $0x88] sm:$0xff]   ;;  %6089 = vmatprep.subr.bf16.mxu0 %v6194_v45 }
  0x51   : > { %6090 = vmatpush3.bf16.msra.mxu0 %v6194_v45 }
  0x52   : > { %6091 = vmatprep.subr.bf16.mxu0 %v6195_v46 }
  0x55   : > { %6092 = vmatpush3.bf16.msra.mxu0 %v6195_v46 }
  0x57   : > { %6086 = vmatmul.mubr.msk.bf16.gmra.mrb[28].mxu0 %vm497_vm0, %v480_v49  ;;  %v848_v49 = vld [vmem:[#allocation2 + $0x54] sm:$0x1] }
  0x58   : > { %v849_v52 = vsel %vm6514_vm3, 0, %v848_v49 }
  0x59   : > { %850 = vst [vmem:[#allocation2 + $0x54] sm:$0x1] %v849_v52 }
  0xf2   : > { %v6059_v3 = vpop.f32.mrb[0].mxu0 }
  0xf3   : > { %v716_v5 = vmul.f32 %v6059_v3, %v6605_v2  ;;  %v580_v6 = vpop.f32.mrb[1].mxu0 }
  0xf4   : > { %v714_v7 = vmul.f32 %v6605_v2, %v580_v6  ;;  %v6060_v8 = vpop.f32.mrb[2].mxu0 }
  0xf5   : > { %v755_v9 = vadd.f32 %v6610_v4, %v716_v5  ;;  %v717_v11 = vmul.f32 %v6060_v8, %v6605_v2  ;;  %v583_v12 = vpop.f32.mrb[3].mxu0 }
  0xf6   : > { %v753_v13 = vadd.f32 %v6610_v4, %v714_v7  ;;  %v715_v14 = vmul.f32 %v6605_v2, %v583_v12 }
  0xf7   : > { %v787_v15 = vmax.f32 %v755_v9, 0.0  ;;  %v756_v16 = vadd.f32 %v6610_v4, %v717_v11 }
  0xf8   : > { %v785_v17 = vmax.f32 %v753_v13, 0.0  ;;  %v754_v18 = vadd.f32 %v6610_v4, %v715_v14 }
  0xf9   : > { %v5854_v19 = vpack.c.bf16 %v787_v15, %v787_v15  ;;  %v788_v20 = vmax.f32 %v756_v16, 0.0 }
  0xfa   : > { %v5852_v21 = vpack.c.bf16 %v785_v17, %v785_v17  ;;  %v786_v22 = vmax.f32 %v754_v18, 0.0  ;;  %v6063_v23 = vpop.f32.mrb[4].mxu0 }
  0xfb   : > { %v1044_v24 = vshrl.u32 %v5854_v19, 16  ;;  %v1047_v25 = vshll.u32 %v5854_v19, 16  ;;  %v5855_v26 = vpack.c.bf16 %v788_v20, %v788_v20  ;;  %v720_v27 = vmul.f32 %v6063_v23, %v6605_v2  ;;  %v596_v28 = vpop.f32.mrb[5].mxu0 }
  0xfc   : > { %v1027_v30 = vshrl.u32 %v5852_v21, 16  ;;  %v1030_v31 = vshll.u32 %v5852_v21, 16  ;;  %v5853_v32 = vpack.c.bf16 %v786_v22, %v786_v22  ;;  %v718_v33 = vmul.f32 %v6605_v2, %v596_v28  ;;  %v6064_v34 = vpop.f32.mrb[6].mxu0 }
  0xfd   : > { %v1046_v35 = vrot.slane %v1044_v24, 7  ;;  %v1052_v36 = vshrl.u32 %v5855_v26, 16  ;;  %v1055_v37 = vshll.u32 %v5855_v26, 16  ;;  %v759_v38 = vadd.f32 %v6610_v4, %v720_v27  ;;  %v599_v39 = vpop.f32.mrb[7].mxu0  ;;  %v1369_v24 = vld [vmem:[#allocation2 + $0x30] sm:$0xf] }
  0xfe   : > { %v1029_v42 = vrot.slane %v1027_v30, 7  ;;  %v1035_v43 = vshrl.u32 %v5853_v32, 16  ;;  %v1038_v44 = vshll.u32 %v5853_v32, 16  ;;  %v757_v45 = vadd.f32 %v6610_v4, %v718_v33 }
  0xff   : > { %v1049_v46 = vor.u32 %v1047_v25, %v1046_v35  ;;  %v1050_v47 = vrot.slane %v1046_v35, 4  ;;  %v1054_v49 = vrot.slane %v1052_v36, 7  ;;  %v791_v51 = vmax.f32 %v759_v38, 0.0 }
 0x100   : > { %v1032_v52 = vor.u32 %v1030_v31, %v1029_v42  ;;  %v1033_v53 = vrot.slane %v1029_v42, 4  ;;  %v1037_v57 = vrot.slane %v1035_v43, 7  ;;  %v789_v58 = vmax.f32 %v757_v45, 0.0  ;;  %v1362_v31 = vld [vmem:[#allocation2 + $0x24] sm:$0xf] }
 0x101   : > { %v1356_v59 = vsel %vm6625_vm14, %v1049_v46, %v1355_v41  ;;  %v1057_v60 = vor.u32 %v1055_v37, %v1054_v49  ;;  %v1059_v61 = vrot.slane %v1054_v49, 4  ;;  %v5858_v63 = vpack.c.bf16 %v791_v51, %v791_v51 }
 0x102   : > { %1357 = vst [vmem:[#allocation2 + $0x18] sm:$0xf] %v1356_v59  ;;  %v1349_v1 = vsel %vm6625_vm14, %v1032_v52, %v1348_v48  ;;  %v1040_v3 = vor.u32 %v1038_v44, %v1037_v57  ;;  %v1042_v5 = vrot.slane %v1037_v57, 4  ;;  %v5856_v6 = vpack.c.bf16 %v789_v58, %v789_v58  ;;  %v6067_v7 = vpop.f32.mrb[8].mxu0 }
 0x103   : > { %1350 = vst [vmem:[#allocation2 + $0xc] sm:$0xf] %v1349_v1  ;;  %v1058_v8 = vsel %vm6632_vm15, %v1050_v47, %v1057_v60  ;;  %v1360_v9 = vsel %vm6514_vm3, %v1059_v61, %v1359_v56  ;;  %v1078_v11 = vshrl.u32 %v5858_v63, 16  ;;  %v1081_v12 = vshll.u32 %v5858_v63, 16  ;;  %v612_v13 = vpop.f32.mrb[9].mxu0 }
 0x104   : > { %1358 = vst.msk [vmem:[#allocation2 + $0x1c] sm:$0xf] %vm817_vm6, %v1058_v8  ;;  %1361 = vst [vmem:[#allocation2 + $0x20] sm:$0x1] %v1360_v9  ;;  %v1041_v14 = vsel %vm6632_vm15, %v1033_v53, %v1040_v3  ;;  %v1353_v15 = vsel %vm6514_vm3, %v1042_v5, %v1352_v62  ;;  %v1061_v16 = vshrl.u32 %v5856_v6, 16  ;;  %v1064_v17 = vshll.u32 %v5856_v6, 16 }
 0x105   : > { %v6068_v18 = vpop.f32.mrb[10].mxu0  ;;  %1351 = vst.msk [vmem:[#allocation2 + $0x10] sm:$0xf] %vm817_vm6, %v1041_v14  ;;  %1354 = vst [vmem:[#allocation2 + $0x14] sm:$0x1] %v1353_v15  ;;  %v6650_v19 = vrot.slane %v1078_v11, 7  ;;  %v721_v20 = vmul.f32 %v6064_v34, %v6605_v2  ;;  %v719_v21 = vmul.f32 %v6605_v2, %v599_v39  ;;  %v724_v22 = vmul.f32 %v6067_v7, %v6605_v2 }
 0x106   : > { %v615_v23 = vpop.f32.mrb[11].mxu0  ;;  %v6655_v25 = vrot.slane %v1061_v16, 7  ;;  %v722_v26 = vmul.f32 %v6605_v2, %v612_v13  ;;  %v725_v27 = vmul.f32 %v6068_v18, %v6605_v2  ;;  %v1373_v1 = vld [vmem:[#allocation2 + $0x38] sm:$0x1] }
 0x107   : > { %v723_v28 = vmul.f32 %v6605_v2, %v615_v23  ;;  %v1083_v30 = vor.u32 %v1081_v12, %v6650_v19  ;;  %v760_v32 = vadd.f32 %v6610_v4, %v721_v20  ;;  %v758_v33 = vadd.f32 %v6610_v4, %v719_v21  ;;  %v1366_v12 = vld [vmem:[#allocation2 + $0x2c] sm:$0x1] }
 0x108   : > { %v1084_v34 = vrot.slane %v6650_v19, 4  ;;  %v1066_v35 = vor.u32 %v1064_v17, %v6655_v25  ;;  %v763_v36 = vadd.f32 %v6610_v4, %v724_v22  ;;  %v761_v37 = vadd.f32 %v6610_v4, %v722_v26  ;;  %v1383_v17 = vld [vmem:[#allocation2 + $0x48] sm:$0xf] }
 0x109   : > { %v1370_v38 = vsel %vm6625_vm14, %v1083_v30, %v1369_v24  ;;  %v792_v39 = vmax.f32 %v760_v32, 0.0  ;;  %v790_v41 = vmax.f32 %v758_v33, 0.0  ;;  %v764_v42 = vadd.f32 %v6610_v4, %v725_v27  ;;  %v3168_v58 = vld [vmem:[#allocation2 + $0x18] sm:$0xe] }
 0x10a   : > { %1371 = vst [vmem:[#allocation2 + $0x30] sm:$0xf] %v1370_v38  ;;  %v1363_v43 = vsel %vm6625_vm14, %v1066_v35, %v1362_v31  ;;  %v795_v44 = vmax.f32 %v763_v36, 0.0  ;;  %v793_v45 = vmax.f32 %v761_v37, 0.0  ;;  %v762_v46 = vadd.f32 %v6610_v4, %v723_v28  ;;  %v6675_v8 = vpop.f32.mrb[12].mxu0 }
 0x10b   : > { %1364 = vst [vmem:[#allocation2 + $0x24] sm:$0xf] %v1363_v43  ;;  %v5859_v47 = vpack.c.bf16 %v792_v39, %v792_v39  ;;  %v5857_v48 = vpack.c.bf16 %v790_v41, %v790_v41  ;;  %v796_v49 = vmax.f32 %v764_v42, 0.0  ;;  %v6190_v51 = vld [vmem:[#allocation2 + $0x18] sm:$0xff]   ;;  %v1067_v52 = vrot.slane %v6655_v25, 4 }
 0x10c   : > { %v5862_v53 = vpack.c.bf16 %v795_v44, %v795_v44  ;;  %v5860_v56 = vpack.c.bf16 %v793_v45, %v793_v45  ;;  %v794_v57 = vmax.f32 %v762_v46, 0.0  ;;  %v3169_v59 = vld [vmem:[#allocation2 + $0x1c] sm:$0xf]  ;;  %3598 = vrot.lane.b32.xlu1 %v6190_v51, %s6329_s15  ;;  %v5706_v19 = vrot.slane %v3168_v58, 9  ;;  %v3170_v26 = vld [vmem:[#allocation2 + $0x20] sm:$0x1] }
 0x10d   : > { %v1086_v60 = vshrl.u32 %v5859_v47, 16  ;;  %v1089_v61 = vshll.u32 %v5859_v47, 16  ;;  %v1069_v62 = vshrl.u32 %v5857_v48, 16  ;;  %v1072_v63 = vshll.u32 %v5857_v48, 16  ;;  %v6191_v15 = vld [vmem:[#allocation2 + $0x18] sm:$0xff]   ;;  %v6192_v32 = vld [vmem:[#allocation2 + $0xc] sm:$0xff]  }
 0x10e   : > { %v1112_v3 = vshrl.u32 %v5862_v53, 16  ;;  %v1115_v5 = vshll.u32 %v5862_v53, 16  ;;  %v1095_v6 = vshrl.u32 %v5860_v56, 16  ;;  %v1098_v7 = vshll.u32 %v5860_v56, 16  ;;  %v1376_v25 = vld [vmem:[#allocation2 + $0x3c] sm:$0xf] }
 0x10f   : > { %v1088_v9 = vrot.slane %v1086_v60, 7  ;;  %v1071_v11 = vrot.slane %v1069_v62, 7  ;;  %v5863_v13 = vpack.c.bf16 %v796_v49, %v796_v49  ;;  %v6677_v14 = vpack.c.bf16 %v794_v57, %v794_v57  ;;  %v3165_v33 = vld [vmem:[#allocation2 + $0xc] sm:$0xe]  ;;  %v3166_v39 = vld [vmem:[#allocation2 + $0x10] sm:$0xf] }
 0x110   : > { %v6679_v16 = vrot.slane %v1112_v3, 7  ;;  %v6681_v18 = vrot.slane %v1095_v6, 7  ;;  %v3270_v20 = vrot.slane %v3169_v59, 5  ;;  %2590 = vrot.lane.b32.xlu1 %v6191_v15, %s6331_s20  ;;  %v3167_v41 = vld [vmem:[#allocation2 + $0x14] sm:$0x1]  ;;  %v6707_v53 = vpop.f32.mrb[13].mxu0 }
 0x111   : > { %v1091_v21 = vor.u32 %v1089_v61, %v1088_v9  ;;  %v1093_v22 = vrot.slane %v1088_v9, 4  ;;  %v1074_v23 = vor.u32 %v1072_v63, %v1071_v11  ;;  %v1076_v24 = vrot.slane %v1071_v11, 4  ;;  %v2158_v42 = vld [vmem:[#allocation2 + $0x18] sm:$0xe]  ;;  %v2159_v46 = vld [vmem:[#allocation2 + $0x1c] sm:$0xf] }
 0x112   : > { %v1117_v27 = vor.u32 %v1115_v5, %v6679_v16  ;;  %v1118_v28 = vrot.slane %v6679_v16, 4  ;;  %v1100_v30 = vor.u32 %v1098_v7, %v6681_v18  ;;  %v1101_v31 = vrot.slane %v6681_v18, 4  ;;  %v1387_v47 = vld [vmem:[#allocation2 + $0x50] sm:$0x1]  ;;  %v1380_v57 = vld [vmem:[#allocation2 + $0x44] sm:$0x1] }
 0x113   : > { %v1092_v35 = vsel %vm6632_vm15, %v1084_v34, %v1091_v21  ;;  %v1374_v36 = vsel %vm6514_vm3, %v1093_v22, %v1373_v1  ;;  %v1075_v37 = vsel %vm6632_vm15, %v1067_v52, %v1074_v23  ;;  %v1367_v38 = vsel %vm6514_vm3, %v1076_v24, %v1366_v12  ;;  %v2160_v61 = vld [vmem:[#allocation2 + $0x20] sm:$0x1]  ;;  %v4206_v5 = vld [vmem:[#allocation2 + $0x18] sm:$0xe]  ;;  %v4207_v6 = vld [vmem:[#allocation2 + $0x1c] sm:$0xf] }
 0x114   : > { %1372 = vst.msk [vmem:[#allocation2 + $0x34] sm:$0xf] %vm817_vm6, %v1092_v35  ;;  %1375 = vst [vmem:[#allocation2 + $0x38] sm:$0x1] %v1374_v36  ;;  %v1384_v34 = vsel %vm6625_vm14, %v1117_v27, %v1383_v17  ;;  %v1377_v43 = vsel %vm6625_vm14, %v1100_v30, %v1376_v25  ;;  %v1120_v44 = vshrl.u32 %v5863_v13, 16  ;;  %v1123_v45 = vshll.u32 %v5863_v13, 16  ;;  %2588 = vrot.lane.b32.xlu1 %v6192_v32, %s6331_s20 }
 0x115   : > { %1365 = vst.msk [vmem:[#allocation2 + $0x28] sm:$0xf] %vm817_vm6, %v1075_v37  ;;  %1368 = vst [vmem:[#allocation2 + $0x2c] sm:$0x1] %v1367_v38  ;;  %v1103_v48 = vshrl.u32 %v6677_v14, 16  ;;  %v1106_v49 = vshll.u32 %v6677_v14, 16  ;;  %v3271_v51 = vsel %vm6554_vm9, %v5706_v19, %v3270_v20 }
 0x116   : > { %1385 = vst [vmem:[#allocation2 + $0x48] sm:$0xf] %v1384_v34  ;;  %1378 = vst [vmem:[#allocation2 + $0x3c] sm:$0xf] %v1377_v43  ;;  %v3272_v52 = vrot.slane %v3270_v20, 4  ;;  %v1122_v56 = vrot.slane %v1120_v44, 7 }
 0x117   : > { %v3273_v58 = vrot.slane %v3170_v26, 5  ;;  %v5705_v59 = vrot.slane %v3165_v33, 9  ;;  %v3263_v60 = vrot.slane %v3166_v39, 5  ;;  %v1105_v62 = vrot.slane %v1103_v48, 7  ;;  %v4208_v13 = vld [vmem:[#allocation2 + $0x20] sm:$0x1] }
 0x118   : > { %v3266_v63 = vrot.slane %v3167_v41, 5  ;;  %v5643_v1 = vrot.slane %v2158_v42, 9  ;;  %v2267_v3 = vrot.slane %v2159_v46, 5  ;;  %v1125_v7 = vor.u32 %v1123_v45, %v1122_v56  ;;  %v2155_v14 = vld [vmem:[#allocation2 + $0xc] sm:$0xe]  ;;  %v6713_v16 = vpop.f32.mrb[14].mxu0 }
 0x119   : > { %v1127_v9 = vrot.slane %v1122_v56, 4  ;;  %v3274_v11 = vsel %vm6554_vm9, %v3272_v52, %v3273_v58  ;;  %v3264_v12 = vsel %vm6554_vm9, %v5705_v59, %v3263_v60  ;;  %v2156_v15 = vld [vmem:[#allocation2 + $0x10] sm:$0xf]  ;;  %v1108_v17 = vor.u32 %v1106_v49, %v1105_v62  ;;  %v2157_v26 = vld [vmem:[#allocation2 + $0x14] sm:$0x1]  ;;  %v631_v30 = vpop.f32.mrb[15].mxu0 }
 0x11a   : > { %v1110_v19 = vrot.slane %v1105_v62, 4  ;;  %v5722_v20 = vcombine.low %v3271_v51, %v3274_v11  ;;  %v3265_v21 = vrot.slane %v3263_v60, 4  ;;  %v1126_v22 = vsel %vm6632_vm15, %v1118_v28, %v1125_v7  ;;  %v3662_v27 = vld [vmem:[#allocation2 + $0x18] sm:$0xf]  ;;  %v3663_v37 = vld [vmem:[#allocation2 + $0x1c] sm:$0xf] }
 0x11b   : > { %v1388_v23 = vsel %vm6514_vm3, %v1127_v9, %v1387_v47  ;;  %v2268_v24 = vsel %vm6554_vm9, %v5643_v1, %v2267_v3  ;;  %v2269_v25 = vrot.slane %v2267_v3, 4  ;;  %1386 = vst.msk [vmem:[#allocation2 + $0x4c] sm:$0xf] %vm817_vm6, %v1126_v22  ;;  %v1109_v28 = vsel %vm6632_vm15, %v1101_v31, %v1108_v17  ;;  %v3664_v48 = vld [vmem:[#allocation2 + $0x20] sm:$0x1]  ;;  %v6193_v1 = vld [vmem:[#allocation2 + $0x30] sm:$0xff]  }
 0x11c   : > { %v6721_v32 = vld [vmem:[#allocation2 + $0x28] sm:$0xf]  ;;  %1389 = vst [vmem:[#allocation2 + $0x50] sm:$0x1] %v1388_v23  ;;  %v1381_v33 = vsel %vm6514_vm3, %v1110_v19, %v1380_v57  ;;  %3423 = vrot.lane.b32.xlu0 %v5722_v20, %s6330_s16  ;;  %v3267_v35 = vsel %vm6554_vm9, %v3265_v21, %v3266_v63  ;;  %v2270_v36 = vrot.slane %v2160_v61, 5  ;;  %v5769_v18 = vrot.slane %v4206_v5, 9 }
 0x11d   : > { %v4311_v38 = vrot.slane %v6721_v32, 5  ;;  %1379 = vst.msk [vmem:[#allocation2 + $0x40] sm:$0xf] %vm817_vm6, %v1109_v28  ;;  %1382 = vst [vmem:[#allocation2 + $0x44] sm:$0x1] %v1381_v33  ;;  %v5721_v39 = vcombine.low %v3264_v12, %v3267_v35  ;;  %v4304_v41 = vrot.slane %v4207_v6, 5  ;;  %v726_v17 = vmul.f32 %v6605_v2, %v6707_v53 }
 0x11e   : > { %v2271_v31 = vsel %vm6554_vm9, %v2269_v25, %v2270_v36  ;;  %v4307_v42 = vrot.slane %v4208_v13, 5  ;;  %v5642_v34 = vrot.slane %v2155_v14, 9  ;;  %v2260_v43 = vrot.slane %v2156_v15, 5  ;;  %v6745_v61 = vpop.f32.mrb[16].mxu0  ;;  %v4209_v62 = vld [vmem:[#allocation2 + $0x24] sm:$0xe] }
 0x11f   : > { %v4313_v44 = vrot.slane %v4311_v38, 4  ;;  %v5659_v45 = vcombine.low %v2268_v24, %v2271_v31  ;;  %v4305_v46 = vsel %vm6554_vm9, %v5769_v18, %v4304_v41  ;;  %v4306_v47 = vrot.slane %v4304_v41, 4  ;;  %v4211_v13 = vld [vmem:[#allocation2 + $0x2c] sm:$0x1]  ;;  %v6762_v32 = vpop.f32.mrb[17].mxu0 }
 0x120   : > { %3421 = vrot.lane.b32.xlu0 %v5721_v39, %s6330_s16  ;;  %v2261_v49 = vsel %vm6554_vm9, %v5642_v34, %v2260_v43  ;;  %v2262_v51 = vrot.slane %v2260_v43, 4  ;;  %v2263_v52 = vrot.slane %v2157_v26, 5  ;;  %v3711_v56 = vshrl.u32 %v3662_v27, 16  ;;  %v4214_v41 = vld [vmem:[#allocation2 + $0x38] sm:$0x1]  ;;  %v6769_v31 = vpop.f32.mrb[18].mxu0 }
 0x121   : > { %2415 = vrot.lane.b32.xlu1 %v5659_v45, %s6329_s15  ;;  %v4308_v57 = vsel %vm6554_vm9, %v4306_v47, %v4307_v42  ;;  %v3714_v58 = vshll.u32 %v3662_v27, 16  ;;  %v3720_v59 = vshll.u32 %v3663_v37, 16  ;;  %v3724_v60 = vshrl.u32 %v3663_v37, 16  ;;  %v4212_v27 = vld [vmem:[#allocation2 + $0x30] sm:$0xe]  ;;  %v6776_v43 = vpop.f32.mrb[19].mxu0 }
 0x122   : > { %v5785_v63 = vcombine.low %v4305_v46, %v4308_v57  ;;  %v2264_v3 = vsel %vm6554_vm9, %v2262_v51, %v2263_v52  ;;  %v3713_v5 = vrot.slane %v3711_v56, 4  ;;  %v3730_v6 = vshll.u32 %v3664_v48, 16 }
 0x123   : > { %v5658_v7 = vcombine.low %v2261_v49, %v2264_v3  ;;  %v3716_v9 = vrot.slane %v3714_v58, 5  ;;  %v3722_v11 = vrot.slane %v3720_v59, 5  ;;  %v3726_v12 = vrot.slane %v3724_v60, 4 }
 0x124   : > { %4478 = vst.msk [vmem:[#allocation3 + $0x10] sm:$0xff] %vm497_vm0, %v5785_v63  ;;  %3602 = vrot.lane.b32.xlu0 %v6193_v1, %s6329_s15  ;;  %v3732_v14 = vrot.slane %v3730_v6, 5  ;;  %v728_v15 = vmul.f32 %v6675_v8, %v6605_v2  ;;  %v729_v19 = vmul.f32 %v6713_v16, %v6605_v2  ;;  %v727_v22 = vmul.f32 %v6605_v2, %v631_v30  ;;  %v6196_v16 = vld [vmem:[#allocation2 + $0x30] sm:$0xff]   ;;  %v1397_v63 = vld [vmem:[#allocation2 + $0x60] sm:$0xf] }
 0x125   : > { %2413 = vrot.lane.b32.xlu1 %v5658_v7, %s6329_s15  ;;  %v3717_v20 = vor.u32 %v3716_v9, %v3713_v5  ;;  %v3727_v21 = vor.u32 %v3726_v12, %v3722_v11  ;;  %v5770_v23 = vrot.slane %v4209_v62, 9  ;;  %v765_v25 = vadd.f32 %v6610_v4, %v726_v17  ;;  %v4213_v30 = vld [vmem:[#allocation2 + $0x34] sm:$0xf]  ;;  %v1610_v62 = vld [vmem:[#allocation2 + $0x18] sm:$0xf]  ;;  %v6197_v12 = vld [vmem:[#allocation2 + $0x24] sm:$0xff]  }
 0x126   : > { %v767_v24 = vadd.f32 %v6610_v4, %v728_v15  ;;  %v768_v26 = vadd.f32 %v6610_v4, %v729_v19  ;;  %v4314_v8 = vrot.slane %v4211_v13, 5  ;;  %v766_v33 = vadd.f32 %v6610_v4, %v727_v22  ;;  %v1390_v1 = vld [vmem:[#allocation2 + $0x54] sm:$0xf]  ;;  %v1401_v13 = vld [vmem:[#allocation2 + $0x68] sm:$0x1] }
 0x127   : > { %v3718_v53 = vrot.slane %v3717_v20, 4  ;;  %v3728_v28 = vrot.slane %v3727_v21, 4  ;;  %v4312_v35 = vsel %vm6554_vm9, %v5770_v23, %v4311_v38  ;;  %v797_v37 = vmax.f32 %v765_v25, 0.0  ;;  %v1611_v21 = vld [vmem:[#allocation2 + $0x1c] sm:$0xf] }
 0x128   : > { %v799_v36 = vmax.f32 %v767_v24, 0.0  ;;  %v800_v39 = vmax.f32 %v768_v26, 0.0  ;;  %v4315_v18 = vsel %vm6554_vm9, %v4313_v44, %v4314_v8  ;;  %v798_v4 = vmax.f32 %v766_v33, 0.0 }
 0x129   : > { %v3723_v42 = vsel %vm6563_vm12, %v3718_v53, %v3722_v11  ;;  %v3733_v34 = vsel %vm6563_vm12, %v3728_v28, %v3732_v14  ;;  %2594 = vrot.lane.b32.xlu1 %v6196_v16, %s6331_s20  ;;  %v5786_v38 = vcombine.low %v4312_v35, %v4315_v18  ;;  %v5864_v47 = vpack.c.bf16 %v797_v37, %v797_v37  ;;  %v1394_v14 = vld [vmem:[#allocation2 + $0x5c] sm:$0x1]  ;;  %v3174_v53 = vld [vmem:[#allocation2 + $0x30] sm:$0xe] }
 0x12a   : > { %v5753_v45 = vcombine.low %v3723_v42, %v3733_v34  ;;  %v5866_v46 = vpack.c.bf16 %v799_v36, %v799_v36  ;;  %v5867_v48 = vpack.c.bf16 %v800_v39, %v800_v39  ;;  %v5865_v49 = vpack.c.bf16 %v798_v4, %v798_v4  ;;  %v3176_v36 = vld [vmem:[#allocation2 + $0x38] sm:$0x1]  ;;  %v3171_v34 = vld [vmem:[#allocation2 + $0x24] sm:$0xe]  ;;  %v3172_v4 = vld [vmem:[#allocation2 + $0x28] sm:$0xf] }
 0x12b   : > { %v4496_v44 = vld [vmem:[#allocation3 + $0x10] sm:$0xff]  ;;  %4479 = vst.msk [vmem:[#allocation3 + $0x28] sm:$0xff] %vm497_vm0, %v5786_v38  ;;  %v5771_v51 = vrot.slane %v4212_v27, 9  ;;  %v4318_v52 = vrot.slane %v4213_v30, 5  ;;  %v4321_v56 = vrot.slane %v4214_v41, 5  ;;  %v1129_v59 = vshrl.u32 %v5864_v47, 16 }
 0x12c   : > { %6093 = vmatprep.mubr.msk.bf16.mxu0 %vm497_vm0, %v4496_v44  ;;  %4142 = vrot.lane.b32.xlu0 %v5753_v45, %s6331_s20  ;;  %v1146_v57 = vshrl.u32 %v5866_v46, 16  ;;  %v1149_v58 = vshll.u32 %v5866_v46, 16  ;;  %v1132_v60 = vshll.u32 %v5864_v47, 16  ;;  %v1154_v3 = vshrl.u32 %v5867_v48, 16  ;;  %v1612_v27 = vld [vmem:[#allocation2 + $0x20] sm:$0x1] }
 0x12d   : > { %v1157_v5 = vshll.u32 %v5867_v48, 16  ;;  %v1137_v6 = vshrl.u32 %v5865_v49, 16  ;;  %v1140_v7 = vshll.u32 %v5865_v49, 16  ;;  %v1131_v11 = vrot.slane %v1129_v59, 7  ;;  %v3175_v30 = vld [vmem:[#allocation2 + $0x34] sm:$0xf] }
 0x12e   : > { %v1148_v9 = vrot.slane %v1146_v57, 7  ;;  %v4319_v15 = vsel %vm6554_vm9, %v5771_v51, %v4318_v52  ;;  %v4320_v17 = vrot.slane %v4318_v52, 4  ;;  %v1156_v19 = vrot.slane %v1154_v3, 7  ;;  %v3173_v48 = vld [vmem:[#allocation2 + $0x2c] sm:$0x1]  ;;  %v6801_v57 = vpop.f32.mrb[20].mxu0 }
 0x12f   : > { %v1139_v20 = vrot.slane %v1137_v6, 7  ;;  %v1704_v22 = vshrl.u32 %v1610_v62, 16  ;;  %v1707_v23 = vshll.u32 %v1610_v62, 16  ;;  %v1134_v26 = vor.u32 %v1132_v60, %v1131_v11  ;;  %v1607_v44 = vld [vmem:[#allocation2 + $0xc] sm:$0xf]  ;;  %v6804_v6 = vpop.f32.mrb[21].mxu0 }
 0x130   : > { %v1151_v24 = vor.u32 %v1149_v58, %v1148_v9  ;;  %v1152_v25 = vrot.slane %v1148_v9, 4  ;;  %v1135_v8 = vrot.slane %v1131_v11, 4  ;;  %3600 = vrot.lane.b32.xlu0 %v6197_v12, %s6329_s15  ;;  %v1159_v28 = vor.u32 %v1157_v5, %v1156_v19 }
 0x131   : > { %v1161_v16 = vrot.slane %v1156_v19, 4  ;;  %v1142_v33 = vor.u32 %v1140_v7, %v1139_v20  ;;  %v1144_v35 = vrot.slane %v1139_v20, 4  ;;  %v1391_v39 = vsel %vm6625_vm14, %v1134_v26, %v1390_v1  ;;  %v1608_v19 = vld [vmem:[#allocation2 + $0x10] sm:$0xf] }
 0x132   : > { %v1398_v37 = vsel %vm6625_vm14, %v1151_v24, %v1397_v63  ;;  %v4499_v18 = vld [vmem:[#allocation3 + $0x28] sm:$0xff]  ;;  %v4322_v41 = vsel %vm6554_vm9, %v4320_v17, %v4321_v56  ;;  %v1706_v42 = vrot.slane %v1704_v22, 4  ;;  %1392 = vst [vmem:[#allocation2 + $0x54] sm:$0xf] %v1391_v39  ;;  %v1160_v38 = vsel %vm6632_vm15, %v1152_v25, %v1159_v28  ;;  %v1609_v25 = vld [vmem:[#allocation2 + $0x14] sm:$0x1] }
 0x133   : > { %1399 = vst [vmem:[#allocation2 + $0x60] sm:$0xf] %v1398_v37  ;;  %v1402_v45 = vsel %vm6514_vm3, %v1161_v16, %v1401_v13  ;;  %v1143_v46 = vsel %vm6632_vm15, %v1135_v8, %v1142_v33  ;;  %v1395_v47 = vsel %vm6514_vm3, %v1144_v35, %v1394_v14  ;;  %6094 = vmatmul.mubr.msk.bf16.vlgmr.msra.gmra.mrb[32].mxu0 %vm497_vm0, %v4499_v18  ;;  %1400 = vst.msk [vmem:[#allocation2 + $0x64] sm:$0xf] %vm817_vm6, %v1160_v38  ;;  %v6808_v13 = vpop.f32.mrb[22].mxu0 }
 0x134   : > { %1403 = vst [vmem:[#allocation2 + $0x68] sm:$0x1] %v1402_v45  ;;  %1393 = vst.msk [vmem:[#allocation2 + $0x58] sm:$0xf] %vm817_vm6, %v1143_v46  ;;  %v5787_v49 = vcombine.low %v4319_v15, %v4322_v41  ;;  %v1709_v51 = vrot.slane %v1707_v23, 5  ;;  %v1713_v52 = vshll.u32 %v1611_v21, 16 }
 0x135   : > { %1396 = vst [vmem:[#allocation2 + $0x5c] sm:$0x1] %v1395_v47  ;;  %v1717_v56 = vshrl.u32 %v1611_v21, 16  ;;  %v1723_v58 = vshll.u32 %v1612_v27, 16  ;;  %v5708_v59 = vrot.slane %v3174_v53, 9  ;;  %v3284_v60 = vrot.slane %v3175_v30, 5 }
 0x136   : > { %v3287_v62 = vrot.slane %v3176_v36, 5  ;;  %4480 = vst.msk [vmem:[#allocation3 + $0x40] sm:$0xff] %vm497_vm0, %v5787_v49  ;;  %v1710_v63 = vor.u32 %v1709_v51, %v1706_v42  ;;  %v1715_v1 = vrot.slane %v1713_v52, 5  ;;  %v5707_v5 = vrot.slane %v3171_v34, 9  ;;  %v6810_v21 = vpop.f32.mrb[23].mxu0 }
 0x137   : > { %v1719_v3 = vrot.slane %v1717_v56, 4  ;;  %v1725_v7 = vrot.slane %v1723_v58, 5  ;;  %v3285_v9 = vsel %vm6554_vm9, %v5708_v59, %v3284_v60  ;;  %v3286_v11 = vrot.slane %v3284_v60, 4  ;;  %v2164_v8 = vld [vmem:[#allocation2 + $0x30] sm:$0xe] }
 0x138   : > { %v3277_v12 = vrot.slane %v3172_v4, 5  ;;  %v1711_v14 = vrot.slane %v1710_v63, 4  ;;  %v3280_v17 = vrot.slane %v3173_v48, 5  ;;  %v1680_v20 = vshrl.u32 %v1607_v44, 16  ;;  %v2165_v33 = vld [vmem:[#allocation2 + $0x34] sm:$0xf] }
 0x139   : > { %v1720_v15 = vor.u32 %v1719_v3, %v1715_v1  ;;  %v3288_v22 = vsel %vm6554_vm9, %v3286_v11, %v3287_v62  ;;  %v1683_v26 = vshll.u32 %v1607_v44, 16  ;;  %v2166_v35 = vld [vmem:[#allocation2 + $0x38] sm:$0x1]  ;;  %v1689_v37 = vshll.u32 %v1608_v19, 16  ;;  %v3668_v18 = vld [vmem:[#allocation2 + $0x30] sm:$0xf] }
 0x13a   : > { %v3278_v23 = vsel %vm6554_vm9, %v5707_v5, %v3277_v12  ;;  %v3279_v24 = vrot.slane %v3277_v12, 4  ;;  %v1716_v27 = vsel %vm6563_vm12, %v1711_v14, %v1715_v1  ;;  %v5724_v28 = vcombine.low %v3285_v9, %v3288_v22  ;;  %v3669_v38 = vld [vmem:[#allocation2 + $0x34] sm:$0xf]  ;;  %v3670_v49 = vld [vmem:[#allocation2 + $0x38] sm:$0x1]  ;;  %v6198_v62 = vld [vmem:[#allocation2 + $0x24] sm:$0xff]  }
 0x13b   : > { %v1721_v53 = vrot.slane %v1720_v15, 4  ;;  %v1682_v16 = vrot.slane %v1680_v20, 4  ;;  %v1685_v36 = vrot.slane %v1683_v26, 5  ;;  %v1693_v39 = vshrl.u32 %v1608_v19, 16  ;;  %v4215_v51 = vld [vmem:[#allocation2 + $0x3c] sm:$0xe] }
 0x13c   : > { %v3281_v30 = vsel %vm6554_vm9, %v3279_v24, %v3280_v17  ;;  %3427 = vrot.lane.b32.xlu0 %v5724_v28, %s6330_s16  ;;  %v1699_v34 = vshll.u32 %v1609_v25, 16  ;;  %v5645_v4 = vrot.slane %v2164_v8, 9  ;;  %v1691_v48 = vrot.slane %v1689_v37, 5  ;;  %v4216_v60 = vld [vmem:[#allocation2 + $0x40] sm:$0xf]  ;;  %v6199_v9 = vld [vmem:[#allocation2 + $0x48] sm:$0xff]  }
 0x13d   : > { %v1726_v41 = vsel %vm6563_vm12, %v1721_v53, %v1725_v7  ;;  %v5723_v42 = vcombine.low %v3278_v23, %v3281_v30  ;;  %v4502_v45 = vld [vmem:[#allocation3 + $0x40] sm:$0xff]  ;;  %v1686_v47 = vor.u32 %v1685_v36, %v1682_v16  ;;  %v1695_v44 = vrot.slane %v1693_v39, 4  ;;  %v4217_v7 = vld [vmem:[#allocation2 + $0x44] sm:$0x1]  ;;  %v2161_v17 = vld [vmem:[#allocation2 + $0x24] sm:$0xe] }
 0x13e   : > { %v5627_v46 = vcombine.low %v1716_v27, %v1726_v41  ;;  %6097 = vmatprep.mubr.msk.bf16.mxu0 %vm497_vm0, %v4502_v45  ;;  %v1701_v52 = vrot.slane %v1699_v34, 5  ;;  %v2281_v56 = vrot.slane %v2165_v33, 5  ;;  %v2284_v58 = vrot.slane %v2166_v35, 5  ;;  %v2162_v24 = vld [vmem:[#allocation2 + $0x28] sm:$0xf]  ;;  %v6832_v26 = vpop.f32.mrb[24].mxu0 }
 0x13f   : > { %v3759_v59 = vshrl.u32 %v3668_v18, 16  ;;  %v1687_v63 = vrot.slane %v1686_v47, 4  ;;  %v1696_v1 = vor.u32 %v1695_v44, %v1691_v48  ;;  %v3762_v3 = vshll.u32 %v3668_v18, 16  ;;  %v2163_v25 = vld [vmem:[#allocation2 + $0x2c] sm:$0x1]  ;;  %v6836_v33 = vpop.f32.mrb[25].mxu0 }
 0x140   : > { %2091 = vrot.lane.b32.xlu1 %v5627_v46, %s6330_s16  ;;  %v3768_v5 = vshll.u32 %v3669_v38, 16  ;;  %3425 = vrot.lane.b32.xlu0 %v5723_v42, %s6330_s16  ;;  %v6828_v11 = vsel %vm6554_vm9, %v5645_v4, %v2281_v56  ;;  %v2283_v12 = vrot.slane %v2281_v56, 4  ;;  %v3772_v15 = vshrl.u32 %v3669_v38, 16  ;;  %v4218_v16 = vld [vmem:[#allocation2 + $0x48] sm:$0xe]  ;;  %v6842_v18 = vpop.f32.mrb[26].mxu0 }
 0x141   : > { %v3761_v14 = vrot.slane %v3759_v59, 4  ;;  %v1692_v19 = vsel %vm6563_vm12, %v1687_v63, %v1691_v48  ;;  %v1697_v20 = vrot.slane %v1696_v1, 4  ;;  %v3764_v22 = vrot.slane %v3762_v3, 5  ;;  %v4219_v39 = vld [vmem:[#allocation2 + $0x4c] sm:$0xf]  ;;  %v6847_v44 = vpop.f32.mrb[27].mxu0 }
 0x142   : > { %v3770_v23 = vrot.slane %v3768_v5, 5  ;;  %v2285_v8 = vsel %vm6554_vm9, %v2283_v12, %v2284_v58  ;;  %v3774_v27 = vrot.slane %v3772_v15, 4  ;;  %v3778_v53 = vshll.u32 %v3670_v49, 16  ;;  %v4220_v38 = vld [vmem:[#allocation2 + $0x50] sm:$0x1] }
 0x143   : > { %v5772_v28 = vrot.slane %v4215_v51, 9  ;;  %v1702_v35 = vsel %vm6563_vm12, %v1697_v20, %v1701_v52  ;;  %v5661_v30 = vcombine.low %v6828_v11, %v2285_v8  ;;  %v3765_v36 = vor.u32 %v3764_v22, %v3761_v14  ;;  %v3665_v63 = vld [vmem:[#allocation2 + $0x24] sm:$0xf]  ;;  %v6874_v22 = vld [vmem:[%s8122_s3] ss:$0 sm:$0xff] }
 0x144   : > { %2592 = vrot.lane.b32.xlu1 %v6198_v62, %s6331_s20  ;;  %v4325_v37 = vrot.slane %v4216_v60, 5  ;;  %v5626_v41 = vcombine.low %v1692_v19, %v1702_v35  ;;  %3606 = vrot.lane.b32.xlu0 %v6199_v9, %s6329_s15  ;;  %v3775_v42 = vor.u32 %v3774_v27, %v3770_v23  ;;  %v3780_v34 = vrot.slane %v3778_v53, 5  ;;  %v3666_v9 = vld [vmem:[#allocation2 + $0x28] sm:$0xf]  ;;  %v6212_v11 = vld [vmem:[%s8124_s5 + $0x40] sm:$0xff]  }
 0x145   : > { %v4328_v4 = vrot.slane %v4217_v7, 5  ;;  %v3766_v45 = vrot.slane %v3765_v36, 4  ;;  %v5644_v48 = vrot.slane %v2161_v17, 9  ;;  %v2274_v51 = vrot.slane %v2162_v24, 5  ;;  %v6213_v19 = vld [vmem:[%s8124_s5] sm:$0xff]   ;;  %5903 = vmatprep.subr.bf16.mxu1 %v6212_v11 }
 0x146   : > { %v4326_v46 = vsel %vm6554_vm9, %v5772_v28, %v4325_v37  ;;  %v4327_v47 = vrot.slane %v4325_v37, 4  ;;  %v3776_v49 = vrot.slane %v3775_v42, 4  ;;  %v2277_v52 = vrot.slane %v2163_v25, 5  ;;  %v3667_v24 = vld [vmem:[#allocation2 + $0x2c] sm:$0x1]  ;;  %v6200_v35 = vld [vmem:[#allocation2 + $0x3c] sm:$0xff]   ;;  %5904 = vmatpush3.bf16.msra.mxu1 %v6213_v19 }
 0x147   : > { %v5773_v56 = vrot.slane %v4218_v16, 9  ;;  %v3771_v58 = vsel %vm6563_vm12, %v3766_v45, %v3770_v23  ;;  %v4332_v60 = vrot.slane %v4219_v39, 5  ;;  %v4335_v62 = vrot.slane %v4220_v38, 5  ;;  %v6885_v27 = vld [vmem:[%s8123_s4] ss:$0 sm:$0xff]  ;;  %v6214_v28 = vld [vmem:[%s8124_s5 + $0x48] sm:$0xff]  }
 0x148   : > { %2089 = vrot.lane.b32.xlu1 %v5626_v41, %s6330_s16  ;;  %v4329_v59 = vsel %vm6554_vm9, %v4327_v47, %v4328_v4  ;;  %v3781_v1 = vsel %vm6563_vm12, %v3776_v49, %v3780_v34  ;;  %v2275_v5 = vsel %vm6554_vm9, %v5644_v48, %v2274_v51  ;;  %v2276_v7 = vrot.slane %v2274_v51, 4  ;;  %v6892_v39 = vld [vmem:[#allocation2 + $0x30] sm:$0xf]  ;;  %5905 = vmatprep.subr.bf16.mxu1 %v6214_v28  ;;  %v6216_v48 = vld [vmem:[%s8124_s5 + $0x8] sm:$0xff]  }
 0x149   : > { %v5788_v3 = vcombine.low %v4326_v46, %v4329_v59  ;;  %v5755_v12 = vcombine.low %v3771_v58, %v3781_v1  ;;  %v4333_v14 = vsel %vm6554_vm9, %v5773_v56, %v4332_v60  ;;  %v4334_v15 = vrot.slane %v4332_v60, 4  ;;  %v6217_v58 = vld [vmem:[#allocation2] sm:$0xff]   ;;  %v6201_v59 = vld [vmem:[#allocation2 + $0x48] sm:$0xff]   ;;  %v6220_v19 = vld [vmem:[%s8124_s5 + $0x10] sm:$0xff]  }
 0x14a   : > { %v732_v17 = vmul.f32 %v6745_v61, %v6605_v2  ;;  %v2278_v20 = vsel %vm6554_vm9, %v2276_v7, %v2277_v52  ;;  %v730_v23 = vmul.f32 %v6874_v22, %v6762_v32  ;;  %v3735_v25 = vshrl.u32 %v3665_v63, 16  ;;  %5906 = vmatpush3.bf16.msra.mxu1 %v6216_v48  ;;  %1588 = vst.msk [vmem:[#allocation3] sm:$0xff] %vm497_vm0, %v6217_v58 }
 0x14b   : > { %4481 = vst.msk [vmem:[#allocation3 + $0x58] sm:$0xff] %vm497_vm0, %v5788_v3  ;;  %v3738_v2 = vshll.u32 %v3665_v63, 16  ;;  %4146 = vrot.lane.b32.xlu0 %v5755_v12, %s6331_s20  ;;  %v5660_v61 = vcombine.low %v2275_v5, %v2278_v20  ;;  %v4336_v8 = vsel %vm6554_vm9, %v4334_v15, %v4335_v62  ;;  %v3744_v32 = vshll.u32 %v3666_v9, 16  ;;  %v6219_v63 = vld [vmem:[%s8124_s5 + $0x50] sm:$0xff]  }
 0x14c   : > { %2419 = vrot.lane.b32.xlu1 %v5661_v30, %s6329_s15  ;;  %v771_v53 = vadd.f32 %v6885_v27, %v732_v17  ;;  %v5789_v16 = vcombine.low %v4333_v14, %v4336_v8  ;;  %v769_v30 = vadd.f32 %v6885_v27, %v730_v23  ;;  %v3737_v36 = vrot.slane %v3735_v25, 4  ;;  %5907 = vmatprep.subr.bf16.mxu1 %v6219_v63  ;;  %v1411_v23 = vld [vmem:[#allocation2 + $0x78] sm:$0xf]  ;;  %v1404_v8 = vld [vmem:[#allocation2 + $0x6c] sm:$0xf] }
 0x14d   : > { %v3740_v37 = vrot.slane %v3738_v2, 5  ;;  %v3746_v42 = vrot.slane %v3744_v32, 5  ;;  %v3748_v34 = vshrl.u32 %v3666_v9, 16  ;;  %v3754_v4 = vshll.u32 %v3667_v24, 16  ;;  %v1617_v9 = vld [vmem:[#allocation2 + $0x34] sm:$0xf] }
 0x14e   : > { %v803_v41 = vmax.f32 %v771_v53, 0.0  ;;  %4482 = vst.msk [vmem:[#allocation3 + $0x70] sm:$0xff] %vm497_vm0, %v5789_v16  ;;  %v801_v38 = vmax.f32 %v769_v30, 0.0  ;;  %v733_v46 = vmul.f32 %v6874_v22, %v6769_v31  ;;  %v731_v47 = vmul.f32 %v6874_v22, %v6776_v43  ;;  %5908 = vmatpush3.bf16.msra.mxu1 %v6220_v19  ;;  %v6221_v16 = vld [vmem:[%s8124_s5 + $0x58] sm:$0xff]  }
 0x14f   : > { %v3741_v45 = vor.u32 %v3740_v37, %v3737_v36  ;;  %3604 = vrot.lane.b32.xlu0 %v6200_v35, %s6329_s15  ;;  %v3750_v51 = vrot.slane %v3748_v34, 4  ;;  %v3756_v52 = vrot.slane %v3754_v4, 5  ;;  %v1752_v56 = vshrl.u32 %v6892_v39, 16  ;;  %5909 = vmatprep.subr.bf16.mxu1 %v6221_v16 }
 0x150   : > { %2417 = vrot.lane.b32.xlu1 %v5660_v61, %s6329_s15  ;;  %v5870_v49 = vpack.c.bf16 %v803_v41, %v803_v41  ;;  %v5868_v60 = vpack.c.bf16 %v801_v38, %v801_v38  ;;  %v772_v62 = vadd.f32 %v6885_v27, %v733_v46  ;;  %v770_v43 = vadd.f32 %v6885_v27, %v731_v47  ;;  %v3181_v46 = vld [vmem:[#allocation2 + $0x4c] sm:$0xf] }
 0x151   : > { %v3742_v31 = vrot.slane %v3741_v45, 4  ;;  %v3751_v7 = vor.u32 %v3750_v51, %v3746_v42  ;;  %v6910_v11 = vrot.slane %v1752_v56, 4  ;;  %v1755_v2 = vshll.u32 %v6892_v39, 16  ;;  %v3180_v39 = vld [vmem:[#allocation2 + $0x48] sm:$0xe] }
 0x152   : > { %v4505_v1 = vld [vmem:[#allocation3 + $0x58] sm:$0xff]  ;;  %v1180_v3 = vshrl.u32 %v5870_v49, 16  ;;  %v1183_v5 = vshll.u32 %v5870_v49, 16  ;;  %v1163_v12 = vshrl.u32 %v5868_v60, 16  ;;  %v1166_v14 = vshll.u32 %v5868_v60, 16 }
 0x153   : > { %6098 = vmatmul.mubr.msk.bf16.gmra.mrb[36].mxu0 %vm497_vm0, %v4505_v1  ;;  %v3747_v15 = vsel %vm6563_vm12, %v3742_v31, %v3746_v42  ;;  %v804_v17 = vmax.f32 %v772_v62, 0.0  ;;  %v3752_v24 = vrot.slane %v3751_v7, 4  ;;  %v802_v25 = vmax.f32 %v770_v43, 0.0  ;;  %v1618_v42 = vld [vmem:[#allocation2 + $0x38] sm:$0x1]  ;;  %v6939_v31 = vpop.f32.mrb[28].mxu0 }
 0x154   : > { %v1182_v20 = vrot.slane %v1180_v3, 7  ;;  %2598 = vrot.lane.b32.xlu1 %v6201_v59, %s6331_s20  ;;  %v6921_v61 = vrot.slane %v1163_v12, 7  ;;  %v1761_v32 = vshll.u32 %v1617_v9, 16  ;;  %v1765_v28 = vshrl.u32 %v1617_v9, 16  ;;  %v1415_v62 = vld [vmem:[#allocation2 + $0x80] sm:$0x1] }
 0x155   : > { %v5871_v53 = vpack.c.bf16 %v804_v17, %v804_v17  ;;  %v4508_v35 = vld [vmem:[#allocation3 + $0x70] sm:$0xff]  ;;  %v3757_v37 = vsel %vm6563_vm12, %v3752_v24, %v3756_v52  ;;  %v5869_v41 = vpack.c.bf16 %v802_v25, %v802_v25  ;;  %v6222_v52 = vld [vmem:[%s8124_s5 + $0x18] sm:$0xff]   ;;  %v1757_v59 = vrot.slane %v1755_v2, 5  ;;  %v1408_v9 = vld [vmem:[#allocation2 + $0x74] sm:$0x1] }
 0x156   : > { %v1185_v30 = vor.u32 %v1183_v5, %v1182_v20  ;;  %v1186_v36 = vrot.slane %v1182_v20, 4  ;;  %6101 = vmatprep.mubr.msk.bf16.mxu0 %vm497_vm0, %v4508_v35  ;;  %v1168_v34 = vor.u32 %v1166_v14, %v6921_v61  ;;  %v1169_v4 = vrot.slane %v6921_v61, 4  ;;  %5910 = vmatpush3.bf16.msra.mxu1 %v6222_v52  ;;  %v3182_v14 = vld [vmem:[#allocation2 + $0x50] sm:$0x1]  ;;  %v3177_v24 = vld [vmem:[#allocation2 + $0x3c] sm:$0xe] }
 0x157   : > { %v5754_v38 = vcombine.low %v3747_v15, %v3757_v37  ;;  %v1188_v45 = vshrl.u32 %v5871_v53, 16  ;;  %v1191_v48 = vshll.u32 %v5871_v53, 16  ;;  %v1171_v49 = vshrl.u32 %v5869_v41, 16  ;;  %v3178_v25 = vld [vmem:[#allocation2 + $0x40] sm:$0xf] }
 0x158   : > { %v1412_v47 = vsel %vm6625_vm14, %v1185_v30, %v1411_v23  ;;  %v1174_v51 = vshll.u32 %v5869_v41, 16  ;;  %v1405_v56 = vsel %vm6625_vm14, %v1168_v34, %v1404_v8  ;;  %v1763_v60 = vrot.slane %v1761_v32, 5  ;;  %v3179_v32 = vld [vmem:[#allocation2 + $0x44] sm:$0x1]  ;;  %v1614_v37 = vld [vmem:[#allocation2 + $0x28] sm:$0xf] }
 0x159   : > { %1413 = vst [vmem:[#allocation2 + $0x78] sm:$0xf] %v1412_v47  ;;  %4144 = vrot.lane.b32.xlu0 %v5754_v38, %s6331_s20  ;;  %v1190_v58 = vrot.slane %v1188_v45, 7  ;;  %1406 = vst [vmem:[#allocation2 + $0x6c] sm:$0xf] %v1405_v56  ;;  %v1173_v43 = vrot.slane %v1171_v49, 7  ;;  %v1758_v12 = vor.u32 %v1757_v59, %v6910_v11 }
 0x15a   : > { %v1767_v63 = vrot.slane %v1765_v28, 4  ;;  %v1771_v1 = vshll.u32 %v1618_v42, 16  ;;  %v5710_v3 = vrot.slane %v3180_v39, 9  ;;  %v3298_v15 = vrot.slane %v3181_v46, 5  ;;  %v1613_v11 = vld [vmem:[#allocation2 + $0x24] sm:$0xf] }
 0x15b   : > { %v1193_v5 = vor.u32 %v1191_v48, %v1190_v58  ;;  %v1195_v7 = vrot.slane %v1190_v58, 4  ;;  %v1176_v17 = vor.u32 %v1174_v51, %v1173_v43  ;;  %v1178_v19 = vrot.slane %v1173_v43, 4  ;;  %v6234_v28 = vld [vmem:[#allocation2 + $0x18] sm:$0xff]   ;;  %v1615_v41 = vld [vmem:[#allocation2 + $0x2c] sm:$0x1]  ;;  %v6956_v46 = vpop.f32.mrb[29].mxu0 }
 0x15c   : > { %v1768_v20 = vor.u32 %v1767_v63, %v1763_v60  ;;  %v1773_v23 = vrot.slane %v1771_v1, 5  ;;  %v1759_v8 = vrot.slane %v1758_v12, 4  ;;  %v3299_v53 = vsel %vm6554_vm9, %v5710_v3, %v3298_v15  ;;  %v2170_v45 = vld [vmem:[#allocation2 + $0x48] sm:$0xe]  ;;  %1590 = vst.msk [vmem:[#allocation3 + $0x30] sm:$0xff] %vm497_vm0, %v6234_v28 }
 0x15d   : > { %v1194_v2 = vsel %vm6632_vm15, %v1186_v36, %v1193_v5  ;;  %v1416_v61 = vsel %vm6514_vm3, %v1195_v7, %v1415_v62  ;;  %v1177_v16 = vsel %vm6632_vm15, %v1169_v4, %v1176_v17  ;;  %v1409_v35 = vsel %vm6514_vm3, %v1178_v19, %v1408_v9  ;;  %v2171_v59 = vld [vmem:[#allocation2 + $0x4c] sm:$0xf]  ;;  %v6965_v62 = vpop.f32.mrb[30].mxu0  ;;  %v3674_v5 = vld [vmem:[#allocation2 + $0x48] sm:$0xf]  ;;  %v6224_v7 = vld [vmem:[%s8124_s5 + $0x60] sm:$0xff]  }
 0x15e   : > { %1414 = vst.msk [vmem:[#allocation2 + $0x7c] sm:$0xf] %vm817_vm6, %v1194_v2  ;;  %1417 = vst [vmem:[#allocation2 + $0x80] sm:$0x1] %v1416_v61  ;;  %v1769_v30 = vrot.slane %v1768_v20, 4  ;;  %v3300_v36 = vrot.slane %v3298_v15, 4  ;;  %v1764_v42 = vsel %vm6563_vm12, %v1759_v8, %v1763_v60  ;;  %5911 = vmatprep.subr.bf16.mxu1 %v6224_v7 }
 0x15f   : > { %1407 = vst.msk [vmem:[#allocation2 + $0x70] sm:$0xf] %vm817_vm6, %v1177_v16  ;;  %1410 = vst [vmem:[#allocation2 + $0x74] sm:$0x1] %v1409_v35  ;;  %v3301_v39 = vrot.slane %v3182_v14, 5  ;;  %v5709_v34 = vrot.slane %v3177_v24, 9 }
 0x160   : > { %v3291_v38 = vrot.slane %v3178_v25, 5  ;;  %v1774_v4 = vsel %vm6563_vm12, %v1769_v30, %v1773_v23  ;;  %v3294_v47 = vrot.slane %v3179_v32, 5  ;;  %v1728_v48 = vshrl.u32 %v1613_v11, 16  ;;  %v2172_v60 = vld [vmem:[#allocation2 + $0x50] sm:$0x1]  ;;  %v6202_v9 = vld [vmem:[#allocation2 + $0x3c] sm:$0xff]  }
 0x161   : > { %v1731_v49 = vshll.u32 %v1613_v11, 16  ;;  %v5629_v51 = vcombine.low %v1764_v42, %v1774_v4  ;;  %v3302_v52 = vsel %vm6554_vm9, %v3300_v36, %v3301_v39  ;;  %v1737_v3 = vshll.u32 %v1614_v37, 16  ;;  %v6973_v19 = vpop.f32.mrb[31].mxu0  ;;  %v3675_v2 = vld [vmem:[#allocation2 + $0x4c] sm:$0xf] }
 0x162   : > { %v3292_v56 = vsel %vm6554_vm9, %v5709_v34, %v3291_v38  ;;  %v3293_v58 = vrot.slane %v3291_v38, 4  ;;  %v5726_v43 = vcombine.low %v3299_v53, %v3302_v52  ;;  %v1730_v63 = vrot.slane %v1728_v48, 4  ;;  %v3676_v61 = vld [vmem:[#allocation2 + $0x50] sm:$0x1]  ;;  %v4221_v28 = vld [vmem:[#allocation2 + $0x54] sm:$0xe] }
 0x163   : > { %v1733_v1 = vrot.slane %v1731_v49, 5  ;;  %2095 = vrot.lane.b32.xlu1 %v5629_v51, %s6330_s16  ;;  %v1741_v14 = vshrl.u32 %v1614_v37, 16  ;;  %v1747_v15 = vshll.u32 %v1615_v41, 16  ;;  %v5647_v17 = vrot.slane %v2170_v45, 9  ;;  %v4222_v16 = vld [vmem:[#allocation2 + $0x58] sm:$0xf] }
 0x164   : > { %v3295_v12 = vsel %vm6554_vm9, %v3293_v58, %v3294_v47  ;;  %3431 = vrot.lane.b32.xlu0 %v5726_v43, %s6330_s16  ;;  %v1739_v24 = vrot.slane %v1737_v3, 5  ;;  %v2295_v25 = vrot.slane %v2171_v59, 5  ;;  %v2298_v32 = vrot.slane %v2172_v60, 5  ;;  %v4223_v41 = vld [vmem:[#allocation2 + $0x5c] sm:$0x1] }
 0x165   : > { %v5725_v20 = vcombine.low %v3292_v56, %v3295_v12  ;;  %v1734_v23 = vor.u32 %v1733_v1, %v1730_v63  ;;  %v1743_v8 = vrot.slane %v1741_v14, 4  ;;  %v1749_v53 = vrot.slane %v1747_v15, 5  ;;  %v2167_v45 = vld [vmem:[#allocation2 + $0x3c] sm:$0xe]  ;;  %v2168_v51 = vld [vmem:[#allocation2 + $0x40] sm:$0xf] }
 0x166   : > { %v3807_v11 = vshrl.u32 %v3674_v5, 16  ;;  %v6978_v30 = vsel %vm6554_vm9, %v5647_v17, %v2295_v25  ;;  %v2297_v36 = vrot.slane %v2295_v25, 4  ;;  %v3810_v37 = vshll.u32 %v3674_v5, 16  ;;  %v2169_v52 = vld [vmem:[#allocation2 + $0x44] sm:$0x1] }
 0x167   : > { %v1735_v35 = vrot.slane %v1734_v23, 4  ;;  %2596 = vrot.lane.b32.xlu1 %v6202_v9, %s6331_s20  ;;  %v1744_v42 = vor.u32 %v1743_v8, %v1739_v24  ;;  %v3816_v34 = vshll.u32 %v3675_v2, 16  ;;  %v3820_v38 = vshrl.u32 %v3675_v2, 16  ;;  %v4224_v56 = vld [vmem:[#allocation2 + $0x60] sm:$0xe] }
 0x168   : > { %v3809_v39 = vrot.slane %v3807_v11, 4  ;;  %3429 = vrot.lane.b32.xlu0 %v5725_v20, %s6330_s16  ;;  %v2299_v47 = vsel %vm6554_vm9, %v2297_v36, %v2298_v32  ;;  %v3812_v48 = vrot.slane %v3810_v37, 5  ;;  %v3826_v49 = vshll.u32 %v3676_v61, 16  ;;  %v4225_v63 = vld [vmem:[#allocation2 + $0x64] sm:$0xf] }
 0x169   : > { %v1740_v4 = vsel %vm6563_vm12, %v1735_v35, %v1739_v24  ;;  %v1745_v58 = vrot.slane %v1744_v42, 4  ;;  %v5663_v59 = vcombine.low %v6978_v30, %v2299_v47  ;;  %v3818_v60 = vrot.slane %v3816_v34, 5  ;;  %v6203_v1 = vld [vmem:[#allocation2 + $0x60] sm:$0xff]   ;;  %v4226_v20 = vld [vmem:[#allocation2 + $0x68] sm:$0x1] }
 0x16a   : > { %v3822_v43 = vrot.slane %v3820_v38, 4  ;;  %v3813_v3 = vor.u32 %v3812_v48, %v3809_v39  ;;  %v3828_v5 = vrot.slane %v3826_v49, 5  ;;  %v5774_v7 = vrot.slane %v4221_v28, 9  ;;  %v863_v30 = vld [vmem:[#allocation2 + $0x90] sm:$0x1]  ;;  %v6225_v38 = vld [vmem:[%s8124_s5 + $0x20] sm:$0xff]  }
 0x16b   : > { %v4339_v9 = vrot.slane %v4222_v16, 5  ;;  %v1750_v12 = vsel %vm6563_vm12, %v1745_v58, %v1749_v53  ;;  %v4342_v15 = vrot.slane %v4223_v41, 5  ;;  %v5646_v17 = vrot.slane %v2167_v45, 9  ;;  %v860_v36 = vld [vmem:[#allocation2 + $0x84] sm:$0x1]  ;;  %5912 = vmatpush3.bf16.msra.mxu1 %v6225_v38 }
 0x16c   : > { %v3823_v14 = vor.u32 %v3822_v43, %v3818_v60  ;;  %v5628_v23 = vcombine.low %v1740_v4, %v1750_v12  ;;  %3610 = vrot.lane.b32.xlu0 %v6203_v1, %s6329_s15  ;;  %v3814_v24 = vrot.slane %v3813_v3, 4  ;;  %v2288_v8 = vrot.slane %v2168_v51, 5  ;;  %v3671_v34 = vld [vmem:[#allocation2 + $0x3c] sm:$0xf]  ;;  %v3672_v49 = vld [vmem:[#allocation2 + $0x40] sm:$0xf] }
 0x16d   : > { %v4340_v25 = vsel %vm6554_vm9, %v5774_v7, %v4339_v9  ;;  %v4341_v2 = vrot.slane %v4339_v9, 4  ;;  %v2291_v32 = vrot.slane %v2169_v52, 5  ;;  %v5775_v11 = vrot.slane %v4224_v56, 9  ;;  %v6226_v51 = vld [vmem:[%s8124_s5 + $0x68] sm:$0xff]  }
 0x16e   : > { %v3824_v61 = vrot.slane %v3823_v14, 4  ;;  %2093 = vrot.lane.b32.xlu1 %v5628_v23, %s6330_s16  ;;  %v3819_v53 = vsel %vm6563_vm12, %v3814_v24, %v3818_v60  ;;  %v4346_v16 = vrot.slane %v4225_v63, 5  ;;  %v4349_v35 = vrot.slane %v4226_v20, 5  ;;  %5913 = vmatprep.subr.bf16.mxu1 %v6226_v51  ;;  %v6204_v14 = vld [vmem:[#allocation2 + $0x54] sm:$0xff]  }
 0x16f   : > { %v4343_v28 = vsel %vm6554_vm9, %v4341_v2, %v4342_v15  ;;  %v2289_v42 = vsel %vm6554_vm9, %v5646_v17, %v2288_v8  ;;  %v2290_v39 = vrot.slane %v2288_v8, 4  ;;  %v736_v48 = vmul.f32 %v6874_v22, %v6801_v57  ;;  %v3673_v57 = vld [vmem:[#allocation2 + $0x44] sm:$0x1]  ;;  %v910_v8 = vld [vmem:[#allocation2 + $0x8c] sm:$0x1] }
 0x170   : > { %v3829_v37 = vsel %vm6563_vm12, %v3824_v61, %v3828_v5  ;;  %v5790_v41 = vcombine.low %v4340_v25, %v4343_v28  ;;  %v4347_v4 = vsel %vm6554_vm9, %v5775_v11, %v4346_v16  ;;  %v4348_v47 = vrot.slane %v4346_v16, 4  ;;  %v913_v5 = vld [vmem:[#allocation2 + $0x98] sm:$0x1] }
 0x171   : > { %v5757_v45 = vcombine.low %v3819_v53, %v3829_v37  ;;  %v2292_v52 = vsel %vm6554_vm9, %v2290_v39, %v2291_v32  ;;  %v864_v56 = vsel %vm6514_vm3, 0, %v863_v30  ;;  %v734_v58 = vmul.f32 %v6874_v22, %v6804_v6  ;;  %v6228_v6 = vld [vmem:[%s8124_s5 + $0x28] sm:$0xff]   ;;  %v6229_v32 = vld [vmem:[%s8124_s5 + $0x70] sm:$0xff]   ;;  %v6205_v30 = vld [vmem:[#allocation2 + $0x60] sm:$0xff]  }
 0x172   : > { %4483 = vst.msk [vmem:[#allocation3 + $0x88] sm:$0xff] %vm497_vm0, %v5790_v41  ;;  %v861_v60 = vsel %vm6514_vm3, 0, %v860_v36  ;;  %2423 = vrot.lane.b32.xlu1 %v5663_v59, %s6329_s15  ;;  %v5662_v43 = vcombine.low %v2289_v42, %v2292_v52  ;;  %v4350_v63 = vsel %vm6554_vm9, %v4348_v47, %v4349_v35  ;;  %v775_v1 = vadd.f32 %v6885_v27, %v736_v48  ;;  %v6236_v35 = vld [vmem:[#allocation2 + $0xc] sm:$0xff]  }
 0x173   : > { %4150 = vrot.lane.b32.xlu0 %v5757_v45, %s6331_s20  ;;  %865 = vst [vmem:[#allocation2 + $0x90] sm:$0x1] %v864_v56  ;;  %862 = vst [vmem:[#allocation2 + $0x84] sm:$0x1] %v861_v60  ;;  %v3783_v3 = vshrl.u32 %v3671_v34, 16  ;;  %v5791_v7 = vcombine.low %v4347_v4, %v4350_v63  ;;  %v773_v9 = vadd.f32 %v6885_v27, %v734_v58  ;;  %v3786_v59 = vshll.u32 %v3671_v34, 16 }
 0x174   : > { %v3792_v12 = vshll.u32 %v3672_v49, 16  ;;  %v807_v15 = vmax.f32 %v775_v1, 0.0  ;;  %v3796_v20 = vshrl.u32 %v3672_v49, 16  ;;  %v3802_v23 = vshll.u32 %v3673_v57, 16  ;;  %5914 = vmatpush3.bf16.msra.mxu1 %v6228_v6  ;;  %v1622_v4 = vld [vmem:[#allocation2 + $0x48] sm:$0xf] }
 0x175   : > { %v3785_v17 = vrot.slane %v3783_v3, 4  ;;  %4484 = vst.msk [vmem:[#allocation3 + $0xa0] sm:$0xff] %vm497_vm0, %v5791_v7  ;;  %v805_v24 = vmax.f32 %v773_v9, 0.0  ;;  %v3788_v25 = vrot.slane %v3786_v59, 5  ;;  %v737_v61 = vmul.f32 %v6874_v22, %v6808_v13  ;;  %5915 = vmatprep.subr.bf16.mxu1 %v6229_v32  ;;  %1589 = vst.msk [vmem:[#allocation3 + $0x18] sm:$0xff] %vm497_vm0, %v6236_v35 }
 0x176   : > { %v3794_v2 = vrot.slane %v3792_v12, 5  ;;  %2421 = vrot.lane.b32.xlu1 %v5662_v43, %s6329_s15  ;;  %v5874_v11 = vpack.c.bf16 %v807_v15, %v807_v15  ;;  %v3798_v53 = vrot.slane %v3796_v20, 4  ;;  %v3804_v28 = vrot.slane %v3802_v23, 5  ;;  %v1623_v9 = vld [vmem:[#allocation2 + $0x4c] sm:$0xf] }
 0x177   : > { %3608 = vrot.lane.b32.xlu0 %v6204_v14, %s6329_s15  ;;  %v914_v16 = vsel %vm6524_vm5, 0, %v913_v5  ;;  %v5872_v36 = vpack.c.bf16 %v805_v24, %v805_v24  ;;  %v3789_v13 = vor.u32 %v3788_v25, %v3785_v17  ;;  %v776_v37 = vadd.f32 %v6885_v27, %v737_v61  ;;  %v6230_v17 = vld [vmem:[%s8124_s5 + $0x30] sm:$0xff]   ;;  %v3186_v61 = vld [vmem:[#allocation2 + $0x60] sm:$0xe] }
 0x178   : > { %915 = vst [vmem:[#allocation2 + $0x98] sm:$0x1] %v914_v16  ;;  %v735_v41 = vmul.f32 %v6874_v22, %v6810_v21  ;;  %v1214_v39 = vshrl.u32 %v5874_v11, 16  ;;  %v1217_v34 = vshll.u32 %v5874_v11, 16  ;;  %v3799_v38 = vor.u32 %v3798_v53, %v3794_v2  ;;  %v1624_v24 = vld [vmem:[#allocation2 + $0x50] sm:$0x1]  ;;  %5916 = vmatpush3.bf16.msra.mxu1 %v6230_v17 }
 0x179   : > { %v4511_v42 = vld [vmem:[#allocation3 + $0x88] sm:$0xff]  ;;  %v911_v45 = vsel %vm6524_vm5, 0, %v910_v8  ;;  %v1197_v47 = vshrl.u32 %v5872_v36, 16  ;;  %v1200_v48 = vshll.u32 %v5872_v36, 16  ;;  %v7049_v21 = vmul.f32 %v6874_v22, %v6832_v26  ;;  %v6231_v16 = vld [vmem:[%s8124_s5 + $0x78] sm:$0xff]  }
 0x17a   : > { %6102 = vmatmul.mubr.msk.bf16.gmra.mrb[40].mxu0 %vm497_vm0, %v4511_v42  ;;  %v774_v49 = vadd.f32 %v6885_v27, %v735_v41  ;;  %912 = vst [vmem:[#allocation2 + $0x8c] sm:$0x1] %v911_v45  ;;  %v7051_v51 = vrot.slane %v1214_v39, 7  ;;  %2602 = vrot.lane.b32.xlu1 %v6205_v30, %s6331_s20  ;;  %v3790_v52 = vrot.slane %v3789_v13, 4  ;;  %v3800_v56 = vrot.slane %v3799_v38, 4  ;;  %v6233_v41 = vld [vmem:[%s8124_s5 + $0x38] sm:$0xff]  }
 0x17b   : > { %v808_v58 = vmax.f32 %v776_v37, 0.0  ;;  %v1425_v60 = vld [vmem:[#allocation2 + $0x90] sm:$0xf]  ;;  %v7054_v57 = vrot.slane %v1197_v47, 7  ;;  %v1800_v63 = vshrl.u32 %v1622_v4, 16  ;;  %v1803_v1 = vshll.u32 %v1622_v4, 16  ;;  %5917 = vmatprep.subr.bf16.mxu1 %v6231_v16 }
 0x17c   : > { %v806_v43 = vmax.f32 %v774_v49, 0.0  ;;  %v4514_v3 = vld [vmem:[#allocation3 + $0xa0] sm:$0xff]  ;;  %v1219_v5 = vor.u32 %v1217_v34, %v7051_v51  ;;  %v1220_v6 = vrot.slane %v7051_v51, 4  ;;  %v1418_v26 = vld [vmem:[#allocation2 + $0x84] sm:$0xf]  ;;  %v3795_v22 = vsel %vm6563_vm12, %v3790_v52, %v3794_v2  ;;  %5918 = vmatpush3.bf16.msra.mxu1 %v6233_v41 }
 0x17d   : > { %v3805_v7 = vsel %vm6563_vm12, %v3800_v56, %v3804_v28  ;;  %6105 = vmatprep.mubr.msk.bf16.mxu0 %vm497_vm0, %v4514_v3  ;;  %v1202_v59 = vor.u32 %v1200_v48, %v7054_v57  ;;  %v1203_v12 = vrot.slane %v7054_v57, 4  ;;  %v5875_v15 = vpack.c.bf16 %v808_v58, %v808_v58  ;;  %v3187_v28 = vld [vmem:[#allocation2 + $0x64] sm:$0xf]  ;;  %v3188_v37 = vld [vmem:[#allocation2 + $0x68] sm:$0x1] }
 0x17e   : > { %v5756_v14 = vcombine.low %v3795_v22, %v3805_v7  ;;  %v1426_v20 = vsel %vm6625_vm14, %v1219_v5, %v1425_v60  ;;  %v5873_v23 = vpack.c.bf16 %v806_v43, %v806_v43  ;;  %v1802_v25 = vrot.slane %v1800_v63, 4  ;;  %v3183_v45 = vld [vmem:[#allocation2 + $0x54] sm:$0xe]  ;;  %v3184_v52 = vld [vmem:[#allocation2 + $0x58] sm:$0xf] }
 0x17f   : > { %v1805_v2 = vrot.slane %v1803_v1, 5  ;;  %1427 = vst [vmem:[#allocation2 + $0x90] sm:$0xf] %v1426_v20  ;;  %v1419_v8 = vsel %vm6625_vm14, %v1202_v59, %v1418_v26  ;;  %v1222_v32 = vshrl.u32 %v5875_v15, 16  ;;  %v1225_v11 = vshll.u32 %v5875_v15, 16  ;;  %v6239_v63 = vld [vmem:[#allocation2 + $0x30] sm:$0xff]  }
 0x180   : > { %4148 = vrot.lane.b32.xlu0 %v5756_v14, %s6331_s20  ;;  %v1809_v53 = vshll.u32 %v1623_v9, 16  ;;  %1420 = vst [vmem:[#allocation2 + $0x84] sm:$0xf] %v1419_v8  ;;  %v1205_v35 = vshrl.u32 %v5873_v23, 16  ;;  %v1208_v30 = vshll.u32 %v5873_v23, 16  ;;  %v1813_v13 = vshrl.u32 %v1623_v9, 16 }
 0x181   : > { %v1806_v36 = vor.u32 %v1805_v2, %v1802_v25  ;;  %v1224_v42 = vrot.slane %v1222_v32, 7  ;;  %v1819_v34 = vshll.u32 %v1624_v24, 16  ;;  %v5712_v38 = vrot.slane %v3186_v61, 9  ;;  %v1429_v4 = vld [vmem:[#allocation2 + $0x98] sm:$0x1]  ;;  %1592 = vst.msk [vmem:[#allocation3 + $0x60] sm:$0xff] %vm497_vm0, %v6239_v63 }
 0x182   : > { %v1811_v39 = vrot.slane %v1809_v53, 5  ;;  %v1207_v47 = vrot.slane %v1205_v35, 7  ;;  %v1815_v49 = vrot.slane %v1813_v13, 4  ;;  %v3312_v51 = vrot.slane %v3187_v28, 5  ;;  %v1422_v60 = vld [vmem:[#allocation2 + $0x8c] sm:$0x1] }
 0x183   : > { %v1807_v48 = vrot.slane %v1806_v36, 4  ;;  %v1227_v56 = vor.u32 %v1225_v11, %v1224_v42  ;;  %v1229_v58 = vrot.slane %v1224_v42, 4  ;;  %v1821_v57 = vrot.slane %v1819_v34, 5  ;;  %v3185_v22 = vld [vmem:[#allocation2 + $0x5c] sm:$0x1]  ;;  %v7098_v36 = vpop.permute.xlu1 %2411 }
 0x184   : > { %v3315_v43 = vrot.slane %v3188_v37, 5  ;;  %v1210_v1 = vor.u32 %v1208_v30, %v1207_v47  ;;  %v1212_v3 = vrot.slane %v1207_v47, 4  ;;  %v1816_v26 = vor.u32 %v1815_v49, %v1811_v39  ;;  %v1619_v7 = vld [vmem:[#allocation2 + $0x3c] sm:$0xf]  ;;  %v1620_v17 = vld [vmem:[#allocation2 + $0x40] sm:$0xf] }
 0x185   : > { %v1812_v5 = vsel %vm6563_vm12, %v1807_v48, %v1811_v39  ;;  %v1228_v9 = vsel %vm6632_vm15, %v1220_v6, %v1227_v56  ;;  %v1430_v59 = vsel %vm6514_vm3, %v1229_v58, %v1429_v4  ;;  %v3313_v14 = vsel %vm6554_vm9, %v5712_v38, %v3312_v51  ;;  %v1621_v20 = vld [vmem:[#allocation2 + $0x44] sm:$0x1]  ;;  %v2176_v2 = vld [vmem:[#allocation2 + $0x60] sm:$0xe]  ;;  %v2178_v28 = vld [vmem:[#allocation2 + $0x68] sm:$0x1] }
 0x186   : > { %v3314_v15 = vrot.slane %v3312_v51, 4  ;;  %1428 = vst.msk [vmem:[#allocation2 + $0x94] sm:$0xf] %vm817_vm6, %v1228_v9  ;;  %1431 = vst [vmem:[#allocation2 + $0x98] sm:$0x1] %v1430_v59  ;;  %v1211_v23 = vsel %vm6632_vm15, %v1203_v12, %v1210_v1  ;;  %v1423_v6 = vsel %vm6514_vm3, %v1212_v3, %v1422_v60  ;;  %v1817_v24 = vrot.slane %v1816_v26, 4  ;;  %v7110_v9 = vpop.permute.xlu0 %2087 }
 0x187   : > { %v5711_v25 = vrot.slane %v3183_v45, 9  ;;  %v2177_v61 = vld [vmem:[#allocation2 + $0x64] sm:$0xf]  ;;  %1421 = vst.msk [vmem:[#allocation2 + $0x88] sm:$0xf] %vm817_vm6, %v1211_v23  ;;  %v3305_v32 = vrot.slane %v3184_v52, 5 }
 0x188   : > { %1424 = vst [vmem:[#allocation2 + $0x8c] sm:$0x1] %v1423_v6  ;;  %v3316_v8 = vsel %vm6554_vm9, %v3314_v15, %v3315_v43  ;;  %v3308_v11 = vrot.slane %v3185_v22, 5  ;;  %v1776_v53 = vshrl.u32 %v1619_v7, 16  ;;  %v1822_v12 = vsel %vm6563_vm12, %v1817_v24, %v1821_v57  ;;  %v3680_v4 = vld [vmem:[#allocation2 + $0x60] sm:$0xf]  ;;  %v7113_v6 = vpop.permute.xlu1 %3598 }
 0x189   : > { %v5728_v16 = vcombine.low %v3313_v14, %v3316_v8  ;;  %v1779_v35 = vshll.u32 %v1619_v7, 16  ;;  %v1785_v30 = vshll.u32 %v1620_v17, 16  ;;  %v5631_v13 = vcombine.low %v1812_v5, %v1822_v12  ;;  %v3681_v52 = vld [vmem:[#allocation2 + $0x64] sm:$0xf]  ;;  %v3682_v43 = vld [vmem:[#allocation2 + $0x68] sm:$0x1] }
 0x18a   : > { %v3306_v37 = vsel %vm6554_vm9, %v5711_v25, %v3305_v32  ;;  %v3307_v41 = vrot.slane %v3305_v32, 4  ;;  %v1778_v42 = vrot.slane %v1776_v53, 4  ;;  %v1789_v38 = vshrl.u32 %v1620_v17, 16  ;;  %v4227_v63 = vld [vmem:[#allocation2 + $0x6c] sm:$0xe]  ;;  %v6206_v1 = vld [vmem:[#allocation2 + $0x54] sm:$0xff]  }
 0x18b   : > { %3435 = vrot.lane.b32.xlu0 %v5728_v16, %s6330_s16  ;;  %v1781_v39 = vrot.slane %v1779_v35, 5  ;;  %v1787_v34 = vrot.slane %v1785_v30, 5  ;;  %v1795_v45 = vshll.u32 %v1621_v20, 16  ;;  %2099 = vrot.lane.b32.xlu1 %v5631_v13, %s6330_s16  ;;  %v5649_v48 = vrot.slane %v2176_v2, 9  ;;  %v2173_v7 = vld [vmem:[#allocation2 + $0x54] sm:$0xe] }
 0x18c   : > { %v3309_v47 = vsel %vm6554_vm9, %v3307_v41, %v3308_v11  ;;  %v2309_v49 = vrot.slane %v2177_v61, 5  ;;  %v2312_v51 = vrot.slane %v2178_v28, 5  ;;  %v1791_v60 = vrot.slane %v1789_v38, 4  ;;  %v4228_v20 = vld [vmem:[#allocation2 + $0x70] sm:$0xf]  ;;  %v6207_v28 = vld [vmem:[#allocation2 + $0x78] sm:$0xff]  }
 0x18d   : > { %v5727_v56 = vcombine.low %v3306_v37, %v3309_v47  ;;  %v1782_v58 = vor.u32 %v1781_v39, %v1778_v42  ;;  %v1797_v57 = vrot.slane %v1795_v45, 5  ;;  %v3855_v26 = vshrl.u32 %v3680_v4, 16  ;;  %v2174_v23 = vld [vmem:[#allocation2 + $0x58] sm:$0xf]  ;;  %v4229_v8 = vld [vmem:[#allocation2 + $0x74] sm:$0x1] }
 0x18e   : > { %v7108_v3 = vsel %vm6554_vm9, %v5649_v48, %v2309_v49  ;;  %v2311_v5 = vrot.slane %v2309_v49, 4  ;;  %v3858_v22 = vshll.u32 %v3680_v4, 16  ;;  %v1792_v14 = vor.u32 %v1791_v60, %v1787_v34  ;;  %v2175_v32 = vld [vmem:[#allocation2 + $0x5c] sm:$0x1]  ;;  %v4230_v35 = vld [vmem:[#allocation2 + $0x78] sm:$0xe] }
 0x18f   : > { %3433 = vrot.lane.b32.xlu0 %v5727_v56, %s6330_s16  ;;  %v1783_v59 = vrot.slane %v1782_v58, 4  ;;  %v3864_v15 = vshll.u32 %v3681_v52, 16  ;;  %v3868_v17 = vshrl.u32 %v3681_v52, 16  ;;  %2600 = vrot.lane.b32.xlu1 %v6206_v1, %s6331_s20  ;;  %v3857_v25 = vrot.slane %v3855_v26, 4  ;;  %v6241_v4 = vld [vmem:[#allocation2 + $0x24] sm:$0xff]   ;;  %v7124_v56 = vpop.permute.xlu0 %3423  ;;  %v7128_v1 = vpop.permute.xlu1 %2590  ;;  %2136 = vst.msk [vmem:[#allocation3] sm:$0xff] %vm2135_vm1, %v7110_v9 }
 0x190   : > { %v2313_v24 = vsel %vm6554_vm9, %v2311_v5, %v2312_v51  ;;  %v3860_v2 = vrot.slane %v3858_v22, 5  ;;  %v3874_v61 = vshll.u32 %v3682_v43, 16  ;;  %v1793_v53 = vrot.slane %v1792_v14, 4  ;;  %v4231_v51 = vld [vmem:[#allocation2 + $0x7c] sm:$0xf]  ;;  %1591 = vst.msk [vmem:[#allocation3 + $0x48] sm:$0xff] %vm497_vm0, %v6241_v4 }
 0x191   : > { %v1788_v11 = vsel %vm6563_vm12, %v1783_v59, %v1787_v34  ;;  %v5665_v12 = vcombine.low %v7108_v3, %v2313_v24  ;;  %v3866_v16 = vrot.slane %v3864_v15, 5  ;;  %v3870_v13 = vrot.slane %v3868_v17, 4  ;;  %v4232_v52 = vld [vmem:[#allocation2 + $0x80] sm:$0x1]  ;;  %2460 = vst.msk [vmem:[#allocation3] sm:$0xff] %vm2459_vm2, %v7098_v36 }
 0x192   : > { %v3861_v30 = vor.u32 %v3860_v2, %v3857_v25  ;;  %v3876_v37 = vrot.slane %v3874_v61, 5  ;;  %v5776_v41 = vrot.slane %v4227_v63, 9  ;;  %v1798_v42 = vsel %vm6563_vm12, %v1793_v53, %v1797_v57  ;;  %v869_v63 = vld [vmem:[#allocation2 + $0xa8] sm:$0x1]  ;;  %v3678_v61 = vld [vmem:[#allocation2 + $0x58] sm:$0xf] }
 0x193   : > { %3614 = vrot.lane.b32.xlu0 %v6207_v28, %s6329_s15  ;;  %v4353_v39 = vrot.slane %v4228_v20, 5  ;;  %v4356_v38 = vrot.slane %v4229_v8, 5  ;;  %v5648_v45 = vrot.slane %v2173_v7, 9  ;;  %v5630_v34 = vcombine.low %v1788_v11, %v1798_v42  ;;  %v866_v7 = vld [vmem:[#allocation2 + $0x9c] sm:$0x1] }
 0x194   : > { %v3862_v47 = vrot.slane %v3861_v30, 4  ;;  %v3871_v48 = vor.u32 %v3870_v13, %v3866_v16  ;;  %v2302_v49 = vrot.slane %v2174_v23, 5  ;;  %v2305_v43 = vrot.slane %v2175_v32, 5  ;;  %v3677_v20 = vld [vmem:[#allocation2 + $0x54] sm:$0xf]  ;;  %v7159_v13 = vpop.permute.xlu0 %3421 }
 0x195   : > { %v4354_v58 = vsel %vm6554_vm9, %v5776_v41, %v4353_v39  ;;  %v4355_v60 = vrot.slane %v4353_v39, 4  ;;  %v5777_v57 = vrot.slane %v4230_v35, 9  ;;  %2097 = vrot.lane.b32.xlu1 %v5630_v34, %s6330_s16  ;;  %v4360_v14 = vrot.slane %v4231_v51, 5  ;;  %v3679_v35 = vld [vmem:[#allocation2 + $0x5c] sm:$0x1]  ;;  %v7164_v39 = vpop.permute.xlu1 %2588 }
 0x196   : > { %v3867_v3 = vsel %vm6563_vm12, %v3862_v47, %v3866_v16  ;;  %v3872_v5 = vrot.slane %v3871_v48, 4  ;;  %v2303_v26 = vsel %vm6554_vm9, %v5648_v45, %v2302_v49  ;;  %v2304_v22 = vrot.slane %v2302_v49, 4  ;;  %v7169_v4 = vld [vmem:[%s8123_s4] ss:$0 sm:$0xff]  ;;  %v919_v48 = vld [vmem:[#allocation2 + $0xb0] sm:$0x1] }
 0x197   : > { %v4357_v59 = vsel %vm6554_vm9, %v4355_v60, %v4356_v38  ;;  %v4363_v15 = vrot.slane %v4232_v52, 5  ;;  %v779_v17 = vadd.f32 %v6885_v27, %v7049_v21  ;;  %v870_v2 = vsel %vm6514_vm3, 0, %v869_v63  ;;  %v7153_v21 = vld [vmem:[%s8122_s3] ss:$0 sm:$0xff]  ;;  %v916_v60 = vld [vmem:[#allocation2 + $0xa4] sm:$0x1] }
 0x198   : > { %v3877_v23 = vsel %vm6563_vm12, %v3872_v5, %v3876_v37  ;;  %v5792_v24 = vcombine.low %v4354_v58, %v4357_v59  ;;  %v2306_v25 = vsel %vm6554_vm9, %v2304_v22, %v2305_v43  ;;  %v4361_v11 = vsel %vm6554_vm9, %v5777_v57, %v4360_v14  ;;  %871 = vst [vmem:[#allocation2 + $0xa8] sm:$0x1] %v870_v2  ;;  %v1628_v5 = vld [vmem:[#allocation2 + $0x60] sm:$0xf]  ;;  %v3693_v40 = vld [vmem:[#allocation2 + $0x94] sm:$0xf] }
 0x199   : > { %v5759_v8 = vcombine.low %v3867_v3, %v3877_v23  ;;  %v5664_v32 = vcombine.low %v2303_v26, %v2306_v25  ;;  %v4362_v53 = vrot.slane %v4360_v14, 4  ;;  %2427 = vrot.lane.b32.xlu1 %v5665_v12, %s6329_s15  ;;  %v811_v27 = vmax.f32 %v779_v17, 0.0  ;;  %v6209_v17 = vld [vmem:[#allocation2 + $0x78] sm:$0xff]   ;;  %2637 = vst.msk [vmem:[#allocation3] sm:$0xff] %vm2636_vm4, %v7164_v39 }
 0x19a   : > { %4485 = vst.msk [vmem:[#allocation3 + $0xb8] sm:$0xff] %vm497_vm0, %v5792_v24  ;;  %v738_v28 = vmul.f32 %v7153_v21, %v6836_v33  ;;  %v867_v16 = vsel %vm6514_vm3, 0, %v866_v7  ;;  %v3831_v30 = vshrl.u32 %v3677_v20, 16  ;;  %v3834_v37 = vshll.u32 %v3677_v20, 16  ;;  %v6208_v33 = vld [vmem:[#allocation2 + $0x6c] sm:$0xff]   ;;  %v7184_v24 = vpop.permute.xlu0 %3602 }
 0x19b   : > { %4154 = vrot.lane.b32.xlu0 %v5759_v8, %s6331_s20  ;;  %v4364_v12 = vsel %vm6554_vm9, %v4362_v53, %v4363_v15  ;;  %868 = vst [vmem:[#allocation2 + $0x9c] sm:$0x1] %v867_v16  ;;  %v3840_v41 = vshll.u32 %v3678_v61, 16  ;;  %v3844_v42 = vshrl.u32 %v3678_v61, 16  ;;  %v5878_v45 = vpack.c.bf16 %v811_v27, %v811_v27  ;;  %v1629_v16 = vld [vmem:[#allocation2 + $0x64] sm:$0xf] }
 0x19c   : > { %v5793_v38 = vcombine.low %v4361_v11, %v4364_v12  ;;  %v777_v34 = vadd.f32 %v7169_v4, %v738_v28  ;;  %v3833_v47 = vrot.slane %v3831_v30, 4  ;;  %v3836_v49 = vrot.slane %v3834_v37, 5  ;;  %v7188_v11 = vpop.permute.xlu1 %2415 }
 0x19d   : > { %v3842_v51 = vrot.slane %v3840_v41, 5  ;;  %v3846_v52 = vrot.slane %v3844_v42, 4  ;;  %v3850_v58 = vshll.u32 %v3679_v35, 16  ;;  %2425 = vrot.lane.b32.xlu1 %v5664_v32, %s6329_s15  ;;  %v1248_v43 = vshrl.u32 %v5878_v45, 16  ;;  %v1630_v41 = vld [vmem:[#allocation2 + $0x68] sm:$0x1] }
 0x19e   : > { %4486 = vst.msk [vmem:[#allocation3 + $0xd0] sm:$0xff] %vm497_vm0, %v5793_v38  ;;  %v1251_v57 = vshll.u32 %v5878_v45, 16  ;;  %v809_v63 = vmax.f32 %v777_v34, 0.0  ;;  %v741_v3 = vmul.f32 %v7153_v21, %v6842_v18  ;;  %v3837_v26 = vor.u32 %v3836_v49, %v3833_v47 }
 0x19f   : > { %3612 = vrot.lane.b32.xlu0 %v6208_v33, %s6329_s15  ;;  %v3847_v22 = vor.u32 %v3846_v52, %v3842_v51  ;;  %v3852_v7 = vrot.slane %v3850_v58, 5  ;;  %v920_v59 = vsel %vm6524_vm5, 0, %v919_v48  ;;  %v7179_v14 = vrot.slane %v1248_v43, 7  ;;  %v1439_v15 = vld [vmem:[#allocation2 + $0xa8] sm:$0xf] }
 0x1a0   : > { %v5876_v20 = vpack.c.bf16 %v809_v63, %v809_v63  ;;  %v780_v23 = vadd.f32 %v7169_v4, %v741_v3  ;;  %921 = vst [vmem:[#allocation2 + $0xb0] sm:$0x1] %v920_v59  ;;  %v739_v18 = vmul.f32 %v7153_v21, %v6847_v44  ;;  %v3838_v2 = vrot.slane %v3837_v26, 4  ;;  %v3192_v58 = vld [vmem:[#allocation2 + $0x78] sm:$0xe]  ;;  %v7207_v26 = vpop.permute.xlu0 %4142 }
 0x1a1   : > { %v4517_v25 = vld [vmem:[#allocation3 + $0xb8] sm:$0xff]  ;;  %v3848_v61 = vrot.slane %v3847_v22, 4  ;;  %v917_v8 = vsel %vm6524_vm5, 0, %v916_v60  ;;  %v1848_v32 = vshrl.u32 %v1628_v5, 16  ;;  %v1253_v53 = vor.u32 %v1251_v57, %v7179_v14  ;;  %2606 = vrot.lane.b32.xlu1 %v6209_v17, %s6331_s20  ;;  %v3193_v3 = vld [vmem:[#allocation2 + $0x7c] sm:$0xf] }
 0x1a2   : > { %6106 = vmatmul.mubr.msk.bf16.gmra.mrb[44].mxu0 %vm497_vm0, %v4517_v25  ;;  %v1254_v27 = vrot.slane %v7179_v14, 4  ;;  %v1231_v44 = vshrl.u32 %v5876_v20, 16  ;;  %v1234_v28 = vshll.u32 %v5876_v20, 16  ;;  %918 = vst [vmem:[#allocation2 + $0xa4] sm:$0x1] %v917_v8  ;;  %v3843_v35 = vsel %vm6563_vm12, %v3838_v2, %v3842_v51  ;;  %v6245_v22 = vld [vmem:[#allocation2 + $0x48] sm:$0xff]   ;;  %v7209_v20 = vpop.permute.xlu1 %2413 }
 0x1a3   : > { %v3853_v30 = vsel %vm6563_vm12, %v3848_v61, %v3852_v7  ;;  %v812_v12 = vmax.f32 %v780_v23, 0.0  ;;  %v778_v37 = vadd.f32 %v7169_v4, %v739_v18  ;;  %v1440_v42 = vsel %vm6625_vm14, %v1253_v53, %v1439_v15  ;;  %v1432_v33 = vld [vmem:[#allocation2 + $0x9c] sm:$0xf]  ;;  %v3194_v17 = vld [vmem:[#allocation2 + $0x80] sm:$0x1]  ;;  %1594 = vst.msk [vmem:[#allocation3 + $0x90] sm:$0xff] %vm497_vm0, %v6245_v22 }
 0x1a4   : > { %v7201_v38 = vrot.slane %v1231_v44, 7  ;;  %v5758_v45 = vcombine.low %v3843_v35, %v3853_v30  ;;  %v1850_v34 = vrot.slane %v1848_v32, 4  ;;  %1441 = vst [vmem:[#allocation2 + $0xa8] sm:$0xf] %v1440_v42  ;;  %v1851_v51 = vshll.u32 %v1628_v5, 16 }
 0x1a5   : > { %v4520_v47 = vld [vmem:[#allocation3 + $0xd0] sm:$0xff]  ;;  %v5879_v48 = vpack.c.bf16 %v812_v12, %v812_v12  ;;  %v810_v49 = vmax.f32 %v778_v37, 0.0  ;;  %v1857_v52 = vshll.u32 %v1629_v16, 16  ;;  %v1861_v57 = vshrl.u32 %v1629_v16, 16 }
 0x1a6   : > { %6109 = vmatprep.mubr.msk.bf16.mxu0 %vm497_vm0, %v4520_v47  ;;  %v1236_v60 = vor.u32 %v1234_v28, %v7201_v38  ;;  %v1237_v43 = vrot.slane %v7201_v38, 4  ;;  %4152 = vrot.lane.b32.xlu0 %v5758_v45, %s6331_s20  ;;  %v1867_v63 = vshll.u32 %v1630_v41, 16  ;;  %v1853_v5 = vrot.slane %v1851_v51, 5  ;;  %v3189_v61 = vld [vmem:[#allocation2 + $0x6c] sm:$0xe]  ;;  %v7224_v22 = vpop.permute.xlu1 %2594 }
 0x1a7   : > { %v1256_v7 = vshrl.u32 %v5879_v48, 16  ;;  %v1259_v59 = vshll.u32 %v5879_v48, 16  ;;  %v5877_v15 = vpack.c.bf16 %v810_v49, %v810_v49  ;;  %v1859_v18 = vrot.slane %v1857_v52, 5  ;;  %v3190_v28 = vld [vmem:[#allocation2 + $0x70] sm:$0xf]  ;;  %v7216_v52 = vpop.permute.xlu0 %3600 }
 0x1a8   : > { %v1433_v23 = vsel %vm6625_vm14, %v1236_v60, %v1432_v33  ;;  %v1863_v25 = vrot.slane %v1861_v57, 4  ;;  %v1869_v2 = vrot.slane %v1867_v63, 5  ;;  %v1854_v44 = vor.u32 %v1853_v5, %v1850_v34  ;;  %v1443_v16 = vld [vmem:[#allocation2 + $0xb0] sm:$0x1]  ;;  %v3191_v63 = vld [vmem:[#allocation2 + $0x74] sm:$0x1] }
 0x1a9   : > { %1434 = vst [vmem:[#allocation2 + $0x9c] sm:$0xf] %v1433_v23  ;;  %v1258_v8 = vrot.slane %v1256_v7, 7  ;;  %v1239_v32 = vshrl.u32 %v5877_v15, 16  ;;  %v1242_v53 = vshll.u32 %v5877_v15, 16  ;;  %v5714_v30 = vrot.slane %v3192_v58, 9 }
 0x1aa   : > { %v1864_v35 = vor.u32 %v1863_v25, %v1859_v18  ;;  %v3326_v12 = vrot.slane %v3193_v3, 5  ;;  %v3329_v37 = vrot.slane %v3194_v17, 5  ;;  %v1436_v33 = vld [vmem:[#allocation2 + $0xa4] sm:$0x1]  ;;  %v1855_v45 = vrot.slane %v1854_v44, 4 }
 0x1ab   : > { %v1261_v41 = vor.u32 %v1259_v59, %v1258_v8  ;;  %v1263_v42 = vrot.slane %v1258_v8, 4  ;;  %v1241_v38 = vrot.slane %v1239_v32, 7  ;;  %v5713_v51 = vrot.slane %v3189_v61, 9  ;;  %v1625_v3 = vld [vmem:[#allocation2 + $0x54] sm:$0xf] }
 0x1ac   : > { %v1865_v47 = vrot.slane %v1864_v35, 4  ;;  %v3327_v48 = vsel %vm6554_vm9, %v5714_v30, %v3326_v12  ;;  %v3328_v49 = vrot.slane %v3326_v12, 4  ;;  %v1860_v7 = vsel %vm6563_vm12, %v1855_v45, %v1859_v18  ;;  %v1626_v15 = vld [vmem:[#allocation2 + $0x58] sm:$0xf]  ;;  %v1627_v5 = vld [vmem:[#allocation2 + $0x5c] sm:$0x1] }
 0x1ad   : > { %v1262_v34 = vsel %vm6632_vm15, %v1254_v27, %v1261_v41  ;;  %v1444_v58 = vsel %vm6514_vm3, %v1263_v42, %v1443_v16  ;;  %v1244_v60 = vor.u32 %v1242_v53, %v1241_v38  ;;  %v1246_v57 = vrot.slane %v1241_v38, 4  ;;  %v2182_v8 = vld [vmem:[#allocation2 + $0x78] sm:$0xe]  ;;  %v2183_v32 = vld [vmem:[#allocation2 + $0x7c] sm:$0xf] }
 0x1ae   : > { %1442 = vst.msk [vmem:[#allocation2 + $0xac] sm:$0xf] %vm817_vm6, %v1262_v34  ;;  %1445 = vst [vmem:[#allocation2 + $0xb0] sm:$0x1] %v1444_v58  ;;  %v1870_v14 = vsel %vm6563_vm12, %v1865_v47, %v1869_v2  ;;  %v3330_v27 = vsel %vm6554_vm9, %v3328_v49, %v3329_v37  ;;  %v3319_v59 = vrot.slane %v3190_v28, 5  ;;  %v3322_v44 = vrot.slane %v3191_v63, 5  ;;  %v7244_v47 = vpop.permute.xlu0 %3427 }
 0x1af   : > { %v1245_v17 = vsel %vm6632_vm15, %v1237_v43, %v1244_v60  ;;  %v1437_v23 = vsel %vm6514_vm3, %v1246_v57, %v1436_v33  ;;  %v5633_v25 = vcombine.low %v1860_v7, %v1870_v14  ;;  %v5730_v61 = vcombine.low %v3327_v48, %v3330_v27  ;;  %v2184_v18 = vld [vmem:[#allocation2 + $0x80] sm:$0x1]  ;;  %v3686_v16 = vld [vmem:[#allocation2 + $0x78] sm:$0xf]  ;;  %v3687_v45 = vld [vmem:[#allocation2 + $0x7c] sm:$0xf] }
 0x1b0   : > { %1435 = vst.msk [vmem:[#allocation2 + $0xa0] sm:$0xf] %vm817_vm6, %v1245_v17  ;;  %1438 = vst [vmem:[#allocation2 + $0xa4] sm:$0x1] %v1437_v23  ;;  %v3320_v2 = vsel %vm6554_vm9, %v5713_v51, %v3319_v59  ;;  %v3321_v53 = vrot.slane %v3319_v59, 4  ;;  %v1824_v28 = vshrl.u32 %v1625_v3, 16 }
 0x1b1   : > { %v6246_v35 = vld [vmem:[#allocation2 + $0x3c] sm:$0xff]   ;;  %2103 = vrot.lane.b32.xlu1 %v5633_v25, %s6330_s16  ;;  %3439 = vrot.lane.b32.xlu0 %v5730_v61, %s6330_s16  ;;  %v1827_v43 = vshll.u32 %v1625_v3, 16  ;;  %v1833_v30 = vshll.u32 %v1626_v15, 16  ;;  %v1837_v12 = vshrl.u32 %v1626_v15, 16  ;;  %v1843_v37 = vshll.u32 %v1627_v5, 16  ;;  %v6210_v48 = vld [vmem:[#allocation2 + $0x6c] sm:$0xff]  }
 0x1b2   : > { %v3323_v41 = vsel %vm6554_vm9, %v3321_v53, %v3322_v44  ;;  %v1826_v42 = vrot.slane %v1824_v28, 4  ;;  %v5651_v38 = vrot.slane %v2182_v8, 9  ;;  %v2323_v33 = vrot.slane %v2183_v32, 5  ;;  %1593 = vst.msk [vmem:[#allocation3 + $0x78] sm:$0xff] %vm497_vm0, %v6246_v35  ;;  %v3688_v60 = vld [vmem:[#allocation2 + $0x80] sm:$0x1]  ;;  %v7247_v57 = vpop.permute.xlu1 %2091 }
 0x1b3   : > { %v5729_v49 = vcombine.low %v3320_v2, %v3323_v41  ;;  %v1829_v51 = vrot.slane %v1827_v43, 5  ;;  %v1835_v34 = vrot.slane %v1833_v30, 5  ;;  %v1839_v58 = vrot.slane %v1837_v12, 4  ;;  %v4233_v17 = vld [vmem:[#allocation2 + $0x84] sm:$0xe]  ;;  %v6211_v28 = vld [vmem:[#allocation2 + $0x90] sm:$0xff]  }
 0x1b4   : > { %v1845_v63 = vrot.slane %v1843_v37, 5  ;;  %v7251_v3 = vsel %vm6554_vm9, %v5651_v38, %v2323_v33  ;;  %v2325_v7 = vrot.slane %v2323_v33, 4  ;;  %v2326_v14 = vrot.slane %v2184_v18, 5  ;;  %v4234_v32 = vld [vmem:[#allocation2 + $0x88] sm:$0xf]  ;;  %v7260_v33 = vpop.permute.xlu0 %3425  ;;  %2138 = vst.msk [vmem:[#allocation3 + $0x30] sm:$0xff] %vm2135_vm1, %v7247_v57 }
 0x1b5   : > { %2604 = vrot.lane.b32.xlu1 %v6210_v48, %s6331_s20  ;;  %3437 = vrot.lane.b32.xlu0 %v5729_v49, %s6330_s16  ;;  %v1830_v27 = vor.u32 %v1829_v51, %v1826_v42  ;;  %v1840_v59 = vor.u32 %v1839_v58, %v1835_v34  ;;  %v3903_v15 = vshrl.u32 %v3686_v16, 16  ;;  %v3906_v5 = vshll.u32 %v3686_v16, 16  ;;  %v2179_v2 = vld [vmem:[#allocation2 + $0x6c] sm:$0xe]  ;;  %v2180_v53 = vld [vmem:[#allocation2 + $0x70] sm:$0xf] }
 0x1b6   : > { %v2327_v23 = vsel %vm6554_vm9, %v2325_v7, %v2326_v14  ;;  %v3912_v25 = vshll.u32 %v3687_v45, 16  ;;  %v3916_v61 = vshrl.u32 %v3687_v45, 16  ;;  %v3922_v8 = vshll.u32 %v3688_v60, 16  ;;  %v4235_v30 = vld [vmem:[#allocation2 + $0x8c] sm:$0x1]  ;;  %v7258_v38 = vpop.permute.xlu1 %2592  ;;  %2462 = vst.msk [vmem:[#allocation3 + $0x30] sm:$0xff] %vm2459_vm2, %v7188_v11 }
 0x1b7   : > { %v1831_v44 = vrot.slane %v1830_v27, 4  ;;  %v1841_v18 = vrot.slane %v1840_v59, 4  ;;  %v5667_v35 = vcombine.low %v7251_v3, %v2327_v23  ;;  %v3905_v43 = vrot.slane %v3903_v15, 4  ;;  %v2181_v42 = vld [vmem:[#allocation2 + $0x74] sm:$0x1]  ;;  %2639 = vst.msk [vmem:[#allocation3 + $0x30] sm:$0xff] %vm2636_vm4, %v7258_v38 }
 0x1b8   : > { %v3908_v12 = vrot.slane %v3906_v5, 5  ;;  %v3914_v37 = vrot.slane %v3912_v25, 5  ;;  %v3918_v16 = vrot.slane %v3916_v61, 4  ;;  %v3924_v41 = vrot.slane %v3922_v8, 5  ;;  %v4236_v58 = vld [vmem:[#allocation2 + $0x90] sm:$0xe] }
 0x1b9   : > { %v1836_v45 = vsel %vm6563_vm12, %v1831_v44, %v1835_v34  ;;  %v1846_v48 = vsel %vm6563_vm12, %v1841_v18, %v1845_v63  ;;  %3618 = vrot.lane.b32.xlu0 %v6211_v28, %s6329_s15  ;;  %v5778_v49 = vrot.slane %v4233_v17, 9  ;;  %v4367_v51 = vrot.slane %v4234_v32, 5  ;;  %v4237_v27 = vld [vmem:[#allocation2 + $0x94] sm:$0xf]  ;;  %v4238_v34 = vld [vmem:[#allocation2 + $0x98] sm:$0x1] }
 0x1ba   : > { %v5632_v60 = vcombine.low %v1836_v45, %v1846_v48  ;;  %v3909_v3 = vor.u32 %v3908_v12, %v3905_v43  ;;  %v3919_v7 = vor.u32 %v3918_v16, %v3914_v37  ;;  %v4370_v14 = vrot.slane %v4235_v30, 5  ;;  %v3683_v8 = vld [vmem:[#allocation2 + $0x6c] sm:$0xf]  ;;  %v3684_v12 = vld [vmem:[#allocation2 + $0x70] sm:$0xf]  ;;  %v7278_v45 = vpop.permute.xlu0 %3606 }
 0x1bb   : > { %v4368_v59 = vsel %vm6554_vm9, %v5778_v49, %v4367_v51  ;;  %v4369_v15 = vrot.slane %v4367_v51, 4  ;;  %v5650_v5 = vrot.slane %v2179_v2, 9  ;;  %v2316_v23 = vrot.slane %v2180_v53, 5  ;;  %v3685_v16 = vld [vmem:[#allocation2 + $0x74] sm:$0x1] }
 0x1bc   : > { %2101 = vrot.lane.b32.xlu1 %v5632_v60, %s6330_s16  ;;  %v3910_v63 = vrot.slane %v3909_v3, 4  ;;  %v3920_v25 = vrot.slane %v3919_v7, 4  ;;  %v2319_v61 = vrot.slane %v2181_v42, 5  ;;  %v5779_v17 = vrot.slane %v4236_v58, 9  ;;  %v2090_v42 = vpop.permute.xlu1 %2089  ;;  %v2656_v60 = vld [vmem:[#allocation2 + $0x18] sm:$0xf] }
 0x1bd   : > { %v4371_v32 = vsel %vm6554_vm9, %v4369_v15, %v4370_v14  ;;  %v2317_v44 = vsel %vm6554_vm9, %v5650_v5, %v2316_v23  ;;  %v2318_v18 = vrot.slane %v2316_v23, 4  ;;  %v4374_v28 = vrot.slane %v4237_v27, 5  ;;  %v2658_v7 = vld [vmem:[#allocation2 + $0x20] sm:$0x1]  ;;  %v2657_v5 = vld [vmem:[#allocation2 + $0x1c] sm:$0xf] }
 0x1be   : > { %v3915_v2 = vsel %vm6563_vm12, %v3910_v63, %v3914_v37  ;;  %v3925_v53 = vsel %vm6563_vm12, %v3920_v25, %v3924_v41  ;;  %v5794_v43 = vcombine.low %v4368_v59, %v4371_v32  ;;  %v4377_v30 = vrot.slane %v4238_v34, 5  ;;  %2137 = vst.msk [vmem:[#allocation3 + $0x18] sm:$0xff] %vm2135_vm1, %v2090_v42  ;;  %v1634_v25 = vld [vmem:[#allocation2 + $0x78] sm:$0xf]  ;;  %v1636_v42 = vld [vmem:[#allocation2 + $0x80] sm:$0x1] }
 0x1bf   : > { %v5761_v48 = vcombine.low %v3915_v2, %v3925_v53  ;;  %v2320_v49 = vsel %vm6554_vm9, %v2318_v18, %v2319_v61  ;;  %v4375_v51 = vsel %vm6554_vm9, %v5779_v17, %v4374_v28  ;;  %v4376_v58 = vrot.slane %v4374_v28, 4  ;;  %v6215_v61 = vld [vmem:[#allocation2 + $0x84] sm:$0xff]   ;;  %v1635_v2 = vld [vmem:[#allocation2 + $0x7c] sm:$0xf]  ;;  %2461 = vst.msk [vmem:[#allocation3 + $0x18] sm:$0xff] %vm2459_vm2, %v7209_v20 }
 0x1c0   : > { %2431 = vrot.lane.b32.xlu1 %v5667_v35, %s6329_s15  ;;  %4487 = vst.msk [vmem:[#allocation3 + $0xe8] sm:$0xff] %vm497_vm0, %v5794_v43  ;;  %v5666_v37 = vcombine.low %v2317_v44, %v2320_v49  ;;  %v3879_v41 = vshrl.u32 %v3683_v8, 16  ;;  %v3882_v3 = vshll.u32 %v3683_v8, 16  ;;  %v3888_v27 = vshll.u32 %v3684_v12, 16  ;;  %v7296_v53 = vpop.permute.xlu1 %2419  ;;  %v7298_v43 = vpop.permute.xlu0 %4146  ;;  %v6218_v49 = vld [vmem:[#allocation2 + $0x90] sm:$0xff]  }
 0x1c1   : > { %4158 = vrot.lane.b32.xlu0 %v5761_v48, %s6331_s20  ;;  %v4378_v14 = vsel %vm6554_vm9, %v4376_v58, %v4377_v30  ;;  %v3892_v59 = vshrl.u32 %v3684_v12, 16  ;;  %v3898_v15 = vshll.u32 %v3685_v16, 16  ;;  %v2726_v63 = vshrl.u32 %v2656_v60, 16  ;;  %2638 = vst.msk [vmem:[#allocation3 + $0x18] sm:$0xff] %vm2636_vm4, %v7128_v1 }
 0x1c2   : > { %v5795_v35 = vcombine.low %v4375_v51, %v4378_v14  ;;  %v3881_v23 = vrot.slane %v3879_v41, 4  ;;  %v3884_v34 = vrot.slane %v3882_v3, 5  ;;  %v3890_v17 = vrot.slane %v3888_v27, 5  ;;  %v3198_v41 = vld [vmem:[#allocation2 + $0x90] sm:$0xe] }
 0x1c3   : > { %v3894_v8 = vrot.slane %v3892_v59, 4  ;;  %v3900_v32 = vrot.slane %v3898_v15, 5  ;;  %v2729_v44 = vshll.u32 %v2656_v60, 16  ;;  %v2728_v18 = vrot.slane %v2726_v63, 4  ;;  %v3199_v15 = vld [vmem:[#allocation2 + $0x94] sm:$0xf] }
 0x1c4   : > { %2429 = vrot.lane.b32.xlu1 %v5666_v37, %s6329_s15  ;;  %4488 = vst.msk [vmem:[#allocation3 + $0x100] sm:$0xff] %vm497_vm0, %v5795_v35  ;;  %v3885_v9 = vor.u32 %v3884_v34, %v3881_v23  ;;  %v2745_v28 = vshll.u32 %v2658_v7, 16  ;;  %v2735_v57 = vshll.u32 %v2657_v5, 16  ;;  %v2739_v16 = vshrl.u32 %v2657_v5, 16  ;;  %v6247_v63 = vld [vmem:[#allocation2 + $0x60] sm:$0xff]  }
 0x1c5   : > { %3616 = vrot.lane.b32.xlu0 %v6215_v61, %s6329_s15  ;;  %v3895_v30 = vor.u32 %v3894_v8, %v3890_v17  ;;  %v2731_v12 = vrot.slane %v2729_v44, 5  ;;  %v1896_v48 = vshrl.u32 %v1634_v25, 16  ;;  %v1899_v37 = vshll.u32 %v1634_v25, 16  ;;  %1596 = vst.msk [vmem:[#allocation3 + $0xc0] sm:$0xff] %vm497_vm0, %v6247_v63 }
 0x1c6   : > { %v3886_v51 = vrot.slane %v3885_v9, 4  ;;  %v2747_v58 = vrot.slane %v2745_v28, 5  ;;  %v2737_v60 = vrot.slane %v2735_v57, 5  ;;  %v2741_v27 = vrot.slane %v2739_v16, 4  ;;  %v3200_v9 = vld [vmem:[#allocation2 + $0x98] sm:$0x1]  ;;  %v7307_v16 = vpop.permute.xlu1 %2417 }
 0x1c7   : > { %v4523_v3 = vld [vmem:[#allocation3 + $0xe8] sm:$0xff]  ;;  %v3896_v7 = vrot.slane %v3895_v30, 4  ;;  %v2732_v14 = vor.u32 %v2731_v12, %v2728_v18  ;;  %v1898_v59 = vrot.slane %v1896_v48, 4  ;;  %v1901_v35 = vrot.slane %v1899_v37, 5  ;;  %v7309_v48 = vpop.permute.xlu0 %3604 }
 0x1c8   : > { %6110 = vmatmul.mubr.msk.bf16.gmra.mrb[48].mxu0 %vm497_vm0, %v4523_v3  ;;  %2610 = vrot.lane.b32.xlu1 %v6218_v49, %s6331_s20  ;;  %v3891_v5 = vsel %vm6563_vm12, %v3886_v51, %v3890_v17  ;;  %v1905_v23 = vshll.u32 %v1635_v2, 16  ;;  %v1909_v34 = vshrl.u32 %v1635_v2, 16  ;;  %v2742_v8 = vor.u32 %v2741_v27, %v2737_v60  ;;  %v875_v12 = vld [vmem:[#allocation2 + $0xc0] sm:$0x1]  ;;  %v2655_v27 = vld [vmem:[#allocation2 + $0x14] sm:$0x1] }
 0x1c9   : > { %v3901_v25 = vsel %vm6563_vm12, %v3896_v7, %v3900_v32  ;;  %v2733_v61 = vrot.slane %v2732_v14, 4  ;;  %v1915_v44 = vshll.u32 %v1636_v42, 16  ;;  %v1902_v28 = vor.u32 %v1901_v35, %v1898_v59  ;;  %v2653_v42 = vld [vmem:[#allocation2 + $0xc] sm:$0xf]  ;;  %v6248_v59 = vld [vmem:[#allocation2 + $0x54] sm:$0xff]  }
 0x1ca   : > { %v5760_v18 = vcombine.low %v3891_v5, %v3901_v25  ;;  %v1907_v57 = vrot.slane %v1905_v23, 5  ;;  %v1911_v30 = vrot.slane %v1909_v34, 4  ;;  %v2743_v32 = vrot.slane %v2742_v8, 4  ;;  %1595 = vst.msk [vmem:[#allocation3 + $0xa8] sm:$0xff] %vm497_vm0, %v6248_v59  ;;  %v7343_v8 = vpop.permute.xlu1 %2598 }
 0x1cb   : > { %v4526_v17 = vld [vmem:[#allocation3 + $0x100] sm:$0xff]  ;;  %v2738_v2 = vsel %vm6563_vm12, %v2733_v61, %v2737_v60  ;;  %v1917_v49 = vrot.slane %v1915_v44, 5  ;;  %v5716_v51 = vrot.slane %v3198_v41, 9  ;;  %v1903_v37 = vrot.slane %v1902_v28, 4  ;;  %v2654_v41 = vld [vmem:[#allocation2 + $0x10] sm:$0xf]  ;;  %v4145_v44 = vpop.permute.xlu0 %4144 }
 0x1cc   : > { %6113 = vmatprep.mubr.msk.bf16.mxu0 %vm497_vm0, %v4526_v17  ;;  %4156 = vrot.lane.b32.xlu0 %v5760_v18, %s6331_s20  ;;  %v1912_v3 = vor.u32 %v1911_v30, %v1907_v57  ;;  %v3340_v7 = vrot.slane %v3199_v15, 5  ;;  %v3343_v14 = vrot.slane %v3200_v9, 5  ;;  %v2748_v5 = vsel %vm6563_vm12, %v2743_v32, %v2747_v58  ;;  %v872_v61 = vld [vmem:[#allocation2 + $0xb4] sm:$0x1]  ;;  %v925_v28 = vld [vmem:[#allocation2 + $0xc8] sm:$0x1] }
 0x1cd   : > { %v744_v60 = vmul.f32 %v7153_v21, %v6939_v31  ;;  %v5690_v35 = vcombine.low %v2738_v2, %v2748_v5  ;;  %v1908_v23 = vsel %vm6563_vm12, %v1903_v37, %v1907_v57  ;;  %v876_v63 = vsel %vm6514_vm3, 0, %v875_v12  ;;  %v3195_v57 = vld [vmem:[#allocation2 + $0x84] sm:$0xe]  ;;  %v3197_v37 = vld [vmem:[#allocation2 + $0x8c] sm:$0x1] }
 0x1ce   : > { %v1913_v34 = vrot.slane %v1912_v3, 4  ;;  %v3341_v15 = vsel %vm6554_vm9, %v5716_v51, %v3340_v7  ;;  %v3342_v31 = vrot.slane %v3340_v7, 4  ;;  %v2702_v25 = vshrl.u32 %v2653_v42, 16  ;;  %877 = vst [vmem:[#allocation2 + $0xc0] sm:$0x1] %v876_v63 }
 0x1cf   : > { %v783_v58 = vadd.f32 %v7169_v4, %v744_v60  ;;  %3150 = vst.msk [vmem:[#allocation3 + $0x20] sm:$0xff] %vm497_vm0, %v5690_v35  ;;  %v2705_v11 = vshll.u32 %v2653_v42, 16  ;;  %v2721_v39 = vshll.u32 %v2655_v27, 16  ;;  %v2711_v20 = vshll.u32 %v2654_v41, 16  ;;  %v3196_v42 = vld [vmem:[#allocation2 + $0x88] sm:$0xf] }
 0x1d0   : > { %v1918_v36 = vsel %vm6563_vm12, %v1913_v34, %v1917_v49  ;;  %3470 = vst.msk [vmem:[#allocation3 + $0x20] sm:$0xff] %vm2135_vm1, %v7124_v56  ;;  %v3344_v1 = vsel %vm6554_vm9, %v3342_v31, %v3343_v14  ;;  %v2704_v18 = vrot.slane %v2702_v25, 4  ;;  %v2715_v49 = vshrl.u32 %v2654_v41, 16  ;;  %v6223_v60 = vld [vmem:[#allocation2 + $0x84] sm:$0xff]  }
 0x1d1   : > { %v5635_v38 = vcombine.low %v1908_v23, %v1918_v36  ;;  %v815_v9 = vmax.f32 %v783_v58, 0.0  ;;  %v5732_v30 = vcombine.low %v3341_v15, %v3344_v1  ;;  %v2707_v12 = vrot.slane %v2705_v11, 5  ;;  %3647 = vst.msk [vmem:[#allocation3 + $0x20] sm:$0xff] %vm2459_vm2, %v7216_v52  ;;  %v922_v36 = vld [vmem:[#allocation2 + $0xbc] sm:$0x1] }
 0x1d2   : > { %v2723_v17 = vrot.slane %v2721_v39, 5  ;;  %v2713_v2 = vrot.slane %v2711_v20, 5  ;;  %v742_v56 = vmul.f32 %v7153_v21, %v6956_v46  ;;  %v873_v51 = vsel %vm6514_vm3, 0, %v872_v61  ;;  %4191 = vst.msk [vmem:[#allocation3 + $0x20] sm:$0xff] %vm2636_vm4, %v4145_v44 }
 0x1d3   : > { %2107 = vrot.lane.b32.xlu1 %v5635_v38, %s6330_s16  ;;  %v5882_v32 = vpack.c.bf16 %v815_v9, %v815_v9  ;;  %3443 = vrot.lane.b32.xlu0 %v5732_v30, %s6330_s16  ;;  %v2708_v3 = vor.u32 %v2707_v12, %v2704_v18  ;;  %874 = vst [vmem:[#allocation2 + $0xb4] sm:$0x1] %v873_v51  ;;  %v926_v7 = vsel %vm6524_vm5, 0, %v925_v28  ;;  %v5715_v14 = vrot.slane %v3195_v57, 9  ;;  %v1631_v57 = vld [vmem:[#allocation2 + $0x6c] sm:$0xf] }
 0x1d4   : > { %v745_v52 = vmul.f32 %v7153_v21, %v6965_v62  ;;  %v2717_v59 = vrot.slane %v2715_v49, 4  ;;  %v781_v5 = vadd.f32 %v7169_v4, %v742_v56  ;;  %927 = vst [vmem:[#allocation2 + $0xc8] sm:$0x1] %v926_v7  ;;  %v3333_v23 = vrot.slane %v3196_v42, 5  ;;  %v1632_v49 = vld [vmem:[#allocation2 + $0x70] sm:$0xf] }
 0x1d5   : > { %v1282_v27 = vshrl.u32 %v5882_v32, 16  ;;  %v1285_v46 = vshll.u32 %v5882_v32, 16  ;;  %v2709_v41 = vrot.slane %v2708_v3, 4  ;;  %v3336_v34 = vrot.slane %v3197_v37, 5  ;;  %v2096_v15 = vpop.permute.xlu1 %2095  ;;  %v1453_v62 = vld [vmem:[#allocation2 + $0xc0] sm:$0xf] }
 0x1d6   : > { %v784_v35 = vadd.f32 %v7169_v4, %v745_v52  ;;  %v2718_v58 = vor.u32 %v2717_v59, %v2713_v2  ;;  %v813_v63 = vmax.f32 %v781_v5, 0.0  ;;  %v743_v25 = vmul.f32 %v7153_v21, %v6973_v19  ;;  %2140 = vst.msk [vmem:[#allocation3 + $0x60] sm:$0xff] %vm2135_vm1, %v2096_v15  ;;  %v1633_v56 = vld [vmem:[#allocation2 + $0x74] sm:$0x1]  ;;  %v2188_v5 = vld [vmem:[#allocation2 + $0x90] sm:$0xe] }
 0x1d7   : > { %v7364_v31 = vrot.slane %v1282_v27, 7  ;;  %2608 = vrot.lane.b32.xlu1 %v6223_v60, %s6331_s20  ;;  %v2714_v11 = vsel %vm6563_vm12, %v2709_v41, %v2713_v2  ;;  %v3334_v20 = vsel %vm6554_vm9, %v5715_v14, %v3333_v23  ;;  %v3335_v61 = vrot.slane %v3333_v23, 4  ;;  %2464 = vst.msk [vmem:[#allocation3 + $0x60] sm:$0xff] %vm2459_vm2, %v7296_v53  ;;  %v2189_v60 = vld [vmem:[#allocation2 + $0x94] sm:$0xf]  ;;  %v7392_v41 = vpop.permute.xlu0 %3431 }
 0x1d8   : > { %v816_v39 = vmax.f32 %v784_v35, 0.0  ;;  %v2719_v1 = vrot.slane %v2718_v58, 4  ;;  %v5880_v19 = vpack.c.bf16 %v813_v63, %v813_v63  ;;  %v782_v18 = vadd.f32 %v7169_v4, %v743_v25  ;;  %v3692_v58 = vld [vmem:[#allocation2 + $0x90] sm:$0xf] }
 0x1d9   : > { %v1287_v44 = vor.u32 %v1285_v46, %v7364_v31  ;;  %v1288_v38 = vrot.slane %v7364_v31, 4  ;;  %v3337_v9 = vsel %vm6554_vm9, %v3335_v61, %v3336_v34  ;;  %v923_v28 = vsel %vm6524_vm5, 0, %v922_v36  ;;  %v2597_v30 = vpop.permute.xlu1 %2596 }
 0x1da   : > { %v5883_v21 = vpack.c.bf16 %v816_v39, %v816_v39  ;;  %v2724_v12 = vsel %vm6563_vm12, %v2719_v1, %v2723_v17  ;;  %v1265_v2 = vshrl.u32 %v5880_v19, 16  ;;  %v1268_v32 = vshll.u32 %v5880_v19, 16  ;;  %924 = vst [vmem:[#allocation2 + $0xbc] sm:$0x1] %v923_v28  ;;  %2641 = vst.msk [vmem:[#allocation3 + $0x60] sm:$0xff] %vm2636_vm4, %v2597_v30  ;;  %v6227_v39 = vld [vmem:[#allocation2 + $0xa8] sm:$0xff]  }
 0x1db   : > { %v1454_v53 = vsel %vm6625_vm14, %v1287_v44, %v1453_v62  ;;  %v5689_v4 = vcombine.low %v2714_v11, %v2724_v12  ;;  %v5731_v42 = vcombine.low %v3334_v20, %v3337_v9  ;;  %v814_v3 = vmax.f32 %v782_v18, 0.0  ;;  %v1446_v17 = vld [vmem:[#allocation2 + $0xb4] sm:$0xf]  ;;  %v1457_v34 = vld [vmem:[#allocation2 + $0xc8] sm:$0x1]  ;;  %v6249_v20 = vld [vmem:[#allocation2 + $0x78] sm:$0xff]  }
 0x1dc   : > { %1455 = vst [vmem:[#allocation2 + $0xc0] sm:$0xf] %v1454_v53  ;;  %v1290_v51 = vshrl.u32 %v5883_v21, 16  ;;  %v1293_v55 = vshll.u32 %v5883_v21, 16  ;;  %v7388_v37 = vrot.slane %v1265_v2, 7  ;;  %v1872_v52 = vshrl.u32 %v1631_v57, 16 }
 0x1dd   : > { %v1875_v7 = vshll.u32 %v1631_v57, 16  ;;  %3149 = vst.msk [vmem:[#allocation3 + $0x8] sm:$0xff] %vm497_vm0, %v5689_v4  ;;  %3441 = vrot.lane.b32.xlu0 %v5731_v42, %s6330_s16  ;;  %v1881_v27 = vshll.u32 %v1632_v49, 16  ;;  %v1885_v46 = vshrl.u32 %v1632_v49, 16  ;;  %v1891_v59 = vshll.u32 %v1633_v56, 16  ;;  %v6250_v21 = vld [vmem:[#allocation2 + $0x6c] sm:$0xff]  }
 0x1de   : > { %v1292_v14 = vrot.slane %v1290_v51, 7  ;;  %3469 = vst.msk [vmem:[#allocation3 + $0x8] sm:$0xff] %vm2135_vm1, %v7159_v13  ;;  %v1270_v35 = vor.u32 %v1268_v32, %v7388_v37  ;;  %v1271_v23 = vrot.slane %v7388_v37, 4  ;;  %v5881_v15 = vpack.c.bf16 %v814_v3, %v814_v3  ;;  %v7398_v62 = vld [vmem:[#allocation2 + $0x98] sm:$0x1]  ;;  %v7418_v51 = vpop.permute.xlu0 %3429 }
 0x1df   : > { %v1874_v31 = vrot.slane %v1872_v52, 4  ;;  %3646 = vst.msk [vmem:[#allocation3 + $0x8] sm:$0xff] %vm2459_vm2, %v7113_v6  ;;  %v1877_v36 = vrot.slane %v1875_v7, 5  ;;  %v1883_v11 = vrot.slane %v1881_v27, 5  ;;  %v1887_v1 = vrot.slane %v1885_v46, 4 }
 0x1e0   : > { %v1295_v63 = vor.u32 %v1293_v55, %v1292_v14  ;;  %v1297_v25 = vrot.slane %v1292_v14, 4  ;;  %v1447_v13 = vsel %vm6625_vm14, %v1270_v35, %v1446_v17  ;;  %v1273_v61 = vshrl.u32 %v5881_v15, 16  ;;  %4190 = vst.msk [vmem:[#allocation3 + $0x8] sm:$0xff] %vm2636_vm4, %v7207_v26  ;;  %v2094_v19 = vpop.permute.xlu1 %2093  ;;  %v3694_v32 = vld [vmem:[#allocation2 + $0x98] sm:$0x1] }
 0x1e1   : > { %v1276_v44 = vshll.u32 %v5881_v15, 16  ;;  %1448 = vst [vmem:[#allocation2 + $0xb4] sm:$0xf] %v1447_v13  ;;  %v1878_v18 = vor.u32 %v1877_v36, %v1874_v31  ;;  %v1893_v28 = vrot.slane %v1891_v59, 5  ;;  %3622 = vrot.lane.b32.xlu0 %v6227_v39, %s6329_s15  ;;  %2139 = vst.msk [vmem:[#allocation3 + $0x48] sm:$0xff] %vm2135_vm1, %v2094_v19  ;;  %v1888_v57 = vor.u32 %v1887_v1, %v1883_v11  ;;  %v4494_v13 = vld [vmem:[#allocation3] sm:$0xff] }
 0x1e2   : > { %v1296_v6 = vsel %vm6632_vm15, %v1288_v38, %v1295_v63  ;;  %v1458_v9 = vsel %vm6514_vm3, %v1297_v25, %v1457_v34  ;;  %1598 = vst.msk [vmem:[#allocation3 + $0xf0] sm:$0xff] %vm497_vm0, %v6249_v20  ;;  %v1275_v26 = vrot.slane %v1273_v61, 7  ;;  %v5653_v30 = vrot.slane %v2188_v5, 9  ;;  %1597 = vst.msk [vmem:[#allocation3 + $0xd8] sm:$0xff] %vm497_vm0, %v6250_v21  ;;  %v1450_v38 = vld [vmem:[#allocation2 + $0xbc] sm:$0x1] }
 0x1e3   : > { %1456 = vst.msk [vmem:[#allocation2 + $0xc4] sm:$0xf] %vm817_vm6, %v1296_v6  ;;  %1459 = vst [vmem:[#allocation2 + $0xc8] sm:$0x1] %v1458_v9  ;;  %v2337_v53 = vrot.slane %v2189_v60, 5  ;;  %v1879_v12 = vrot.slane %v1878_v18, 4  ;;  %v7436_v6 = vpop.permute.xlu0 %3610 }
 0x1e4   : > { %2463 = vst.msk [vmem:[#allocation3 + $0x48] sm:$0xff] %vm2459_vm2, %v7307_v16  ;;  %v2340_v2 = vrot.slane %v7398_v62, 5  ;;  %v3951_v49 = vshrl.u32 %v3692_v58, 16  ;;  %v3954_v56 = vshll.u32 %v3692_v58, 16  ;;  %v4239_v4 = vld [vmem:[#allocation2 + $0x9c] sm:$0xe]  ;;  %v1278_v55 = vor.u32 %v1276_v44, %v1275_v26 }
 0x1e5   : > { %2640 = vst.msk [vmem:[#allocation3 + $0x48] sm:$0xff] %vm2636_vm4, %v7224_v22  ;;  %v1280_v42 = vrot.slane %v1275_v26, 4  ;;  %v1889_v37 = vrot.slane %v1888_v57, 4  ;;  %v2338_v16 = vsel %vm6554_vm9, %v5653_v30, %v2337_v53  ;;  %v4240_v3 = vld [vmem:[#allocation2 + $0xa0] sm:$0xf]  ;;  %v1884_v7 = vsel %vm6563_vm12, %v1879_v12, %v1883_v11  ;;  %v7442_v12 = vpop.permute.xlu1 %2423 }
 0x1e6   : > { %v4241_v52 = vld [vmem:[#allocation2 + $0xa4] sm:$0x1]  ;;  %v2339_v17 = vrot.slane %v2337_v53, 4  ;;  %v3953_v14 = vrot.slane %v3951_v49, 4  ;;  %v3956_v27 = vrot.slane %v3954_v56, 5  ;;  %v1279_v22 = vsel %vm6632_vm15, %v1271_v23, %v1278_v55  ;;  %v4498_v23 = vld [vmem:[#allocation3 + $0x20] sm:$0xff] }
 0x1e7   : > { %v2185_v46 = vld [vmem:[#allocation2 + $0x84] sm:$0xe]  ;;  %v2186_v59 = vld [vmem:[#allocation2 + $0x88] sm:$0xf]  ;;  %v2187_v5 = vld [vmem:[#allocation2 + $0x8c] sm:$0x1]  ;;  %v1451_v60 = vsel %vm6514_vm3, %v1280_v42, %v1450_v38  ;;  %v1894_v35 = vsel %vm6563_vm12, %v1889_v37, %v1893_v28 }
 0x1e8   : > { %v3960_v34 = vshll.u32 %v3693_v40, 16  ;;  %1449 = vst.msk [vmem:[#allocation2 + $0xb8] sm:$0xf] %vm817_vm6, %v1279_v22  ;;  %1452 = vst [vmem:[#allocation2 + $0xbc] sm:$0x1] %v1451_v60  ;;  %v5634_v15 = vcombine.low %v1884_v7, %v1894_v35  ;;  %v2341_v31 = vsel %vm6554_vm9, %v2339_v17, %v2340_v2  ;;  %v3957_v62 = vor.u32 %v3956_v27, %v3953_v14  ;;  %v4495_v54 = vld [vmem:[#allocation3 + $0x8] sm:$0xff]  ;;  %v7455_v60 = vpop.permute.xlu0 %4150 }
 0x1e9   : > { %v3964_v58 = vshrl.u32 %v3693_v40, 16  ;;  %v4242_v63 = vld [vmem:[#allocation2 + $0xa8] sm:$0xe]  ;;  %v4243_v25 = vld [vmem:[#allocation2 + $0xac] sm:$0xf]  ;;  %v5669_v36 = vcombine.low %v2338_v16, %v2341_v31  ;;  %v3970_v11 = vshll.u32 %v3694_v32, 16  ;;  %4766 = vmatprep.mubr.bf16.mxu1 %v4495_v54 }
 0x1ea   : > { %v3962_v50 = vrot.slane %v3960_v34, 5  ;;  %v5780_v39 = vrot.slane %v4239_v4, 9  ;;  %v2662_v20 = vld [vmem:[#allocation2 + $0x30] sm:$0xf]  ;;  %2105 = vrot.lane.b32.xlu1 %v5634_v15, %s6330_s16  ;;  %v3958_v61 = vrot.slane %v3957_v62, 4  ;;  %v4381_v1 = vrot.slane %v4240_v3, 5  ;;  %4767 = vmatmul.mubr.bf16.vlgmr.msra.gmra.mrb[0].mxu1 %v4494_v13 }
 0x1eb   : > { %v3966_v44 = vrot.slane %v3964_v58, 4  ;;  %v4384_v19 = vrot.slane %v4241_v52, 5  ;;  %v4244_v21 = vld [vmem:[#allocation2 + $0xb0] sm:$0x1]  ;;  %v3972_v9 = vrot.slane %v3970_v11, 5  ;;  %v5652_v18 = vrot.slane %v2185_v46, 9  ;;  %4774 = vmatprep.mubr.bf16.mxu1 %v4498_v23 }
 0x1ec   : > { %v2330_v28 = vrot.slane %v2186_v59, 5  ;;  %v2333_v40 = vrot.slane %v2187_v5, 5  ;;  %v3963_v26 = vsel %vm6563_vm12, %v3958_v61, %v3962_v50  ;;  %v4382_v30 = vsel %vm6554_vm9, %v5780_v39, %v4381_v1  ;;  %v2663_v38 = vld [vmem:[#allocation2 + $0x34] sm:$0xf]  ;;  %v2664_v4 = vld [vmem:[#allocation2 + $0x38] sm:$0x1] }
 0x1ed   : > { %v3967_v57 = vor.u32 %v3966_v44, %v3962_v50  ;;  %v4383_v53 = vrot.slane %v4381_v1, 4  ;;  %v5781_v49 = vrot.slane %v4242_v63, 9  ;;  %v4388_v56 = vrot.slane %v4243_v25, 5  ;;  %v1640_v14 = vld [vmem:[#allocation2 + $0x90] sm:$0xf] }
 0x1ee   : > { %v2331_v2 = vsel %vm6554_vm9, %v5652_v18, %v2330_v28  ;;  %v2332_v32 = vrot.slane %v2330_v28, 4  ;;  %2435 = vrot.lane.b32.xlu1 %v5669_v36, %s6329_s15  ;;  %v4391_v37 = vrot.slane %v4244_v21, 5  ;;  %v2774_v16 = vshrl.u32 %v2662_v20, 16  ;;  %v1641_v22 = vld [vmem:[#allocation2 + $0x94] sm:$0xf]  ;;  %v7461_v36 = vpop.permute.xlu1 %2421  ;;  %v6232_v18 = vld [vmem:[#allocation2 + $0x9c] sm:$0xff]  }
 0x1ef   : > { %v3968_v55 = vrot.slane %v3967_v57, 4  ;;  %v4385_v42 = vsel %vm6554_vm9, %v4383_v53, %v4384_v19  ;;  %v4389_v7 = vsel %vm6554_vm9, %v5781_v49, %v4388_v56  ;;  %v4390_v17 = vrot.slane %v4388_v56, 4  ;;  %v4497_v62 = vld [vmem:[#allocation3 + $0x18] sm:$0xff]  ;;  %v1642_v54 = vld [vmem:[#allocation2 + $0x98] sm:$0x1] }
 0x1f0   : > { %v5796_v3 = vcombine.low %v4382_v30, %v4385_v42  ;;  %v2334_v52 = vsel %vm6554_vm9, %v2332_v32, %v2333_v40  ;;  %v2776_v59 = vrot.slane %v2774_v16, 4  ;;  %v2777_v5 = vshll.u32 %v2662_v20, 16  ;;  %v3689_v13 = vld [vmem:[#allocation2 + $0x84] sm:$0xf]  ;;  %v3690_v21 = vld [vmem:[#allocation2 + $0x88] sm:$0xf]  ;;  %v7465_v32 = vpop.permute.xlu0 %3608 }
 0x1f1   : > { %v3973_v27 = vsel %vm6563_vm12, %v3968_v55, %v3972_v9  ;;  %v5668_v46 = vcombine.low %v2331_v2, %v2334_v52  ;;  %v4392_v34 = vsel %vm6554_vm9, %v4390_v17, %v4391_v37  ;;  %v2783_v15 = vshll.u32 %v2663_v38, 16  ;;  %v6251_v9 = vld [vmem:[#allocation2 + $0x90] sm:$0xff]   ;;  %v3691_v55 = vld [vmem:[#allocation2 + $0x8c] sm:$0x1]  ;;  %v6252_v37 = vld [vmem:[#allocation2 + $0x84] sm:$0xff]  }
 0x1f2   : > { %v5763_v35 = vcombine.low %v3963_v26, %v3973_v27  ;;  %4489 = vst.msk [vmem:[#allocation3 + $0x118] sm:$0xff] %vm497_vm0, %v5796_v3  ;;  %v2787_v31 = vshrl.u32 %v2663_v38, 16  ;;  %v5797_v58 = vcombine.low %v4389_v7, %v4392_v34  ;;  %v2779_v63 = vrot.slane %v2777_v5, 5  ;;  %4775 = vmatmul.mubr.bf16.gmra.mrb[4].mxu1 %v4497_v62  ;;  %1600 = vst.msk [vmem:[#allocation3 + $0x120] sm:$0xff] %vm497_vm0, %v6251_v9  ;;  %v7471_v27 = vpop.permute.xlu1 %2602 }
 0x1f3   : > { %2433 = vrot.lane.b32.xlu1 %v5668_v46, %s6329_s15  ;;  %v2793_v25 = vshll.u32 %v2664_v4, 16  ;;  %v1944_v23 = vshrl.u32 %v1640_v14, 16  ;;  %v2785_v50 = vrot.slane %v2783_v15, 5  ;;  %v1947_v39 = vshll.u32 %v1640_v14, 16  ;;  %v2659_v14 = vld [vmem:[#allocation2 + $0x24] sm:$0xf] }
 0x1f4   : > { %4162 = vrot.lane.b32.xlu0 %v5763_v35, %s6331_s20  ;;  %v2789_v11 = vrot.slane %v2787_v31, 4  ;;  %v1953_v20 = vshll.u32 %v1641_v22, 16  ;;  %4490 = vst.msk [vmem:[#allocation3 + $0x130] sm:$0xff] %vm497_vm0, %v5797_v58  ;;  %v2780_v61 = vor.u32 %v2779_v63, %v2776_v59  ;;  %v1957_v19 = vshrl.u32 %v1641_v22, 16  ;;  %v2661_v35 = vld [vmem:[#allocation2 + $0x2c] sm:$0x1] }
 0x1f5   : > { %v2795_v44 = vrot.slane %v2793_v25, 5  ;;  %v1946_v1 = vrot.slane %v1944_v23, 4  ;;  %v1949_v40 = vrot.slane %v1947_v39, 5  ;;  %v1963_v57 = vshll.u32 %v1642_v54, 16  ;;  %1599 = vst.msk [vmem:[#allocation3 + $0x108] sm:$0xff] %vm497_vm0, %v6252_v37 }
 0x1f6   : > { %v2790_v28 = vor.u32 %v2789_v11, %v2785_v50  ;;  %v1955_v26 = vrot.slane %v1953_v20, 5  ;;  %v2781_v30 = vrot.slane %v2780_v61, 4  ;;  %v1959_v53 = vrot.slane %v1957_v19, 4  ;;  %v2660_v58 = vld [vmem:[#allocation2 + $0x28] sm:$0xf]  ;;  %v4149_v19 = vpop.permute.xlu0 %4148 }
 0x1f7   : > { %v3927_v38 = vshrl.u32 %v3689_v13, 16  ;;  %v3930_v2 = vshll.u32 %v3689_v13, 16  ;;  %v1950_v56 = vor.u32 %v1949_v40, %v1946_v1  ;;  %v1965_v4 = vrot.slane %v1963_v57, 5  ;;  %v3204_v63 = vld [vmem:[#allocation2 + $0xa8] sm:$0xe] }
 0x1f8   : > { %3620 = vrot.lane.b32.xlu0 %v6232_v18, %s6329_s15  ;;  %v2791_v49 = vrot.slane %v2790_v28, 4  ;;  %v3936_v42 = vshll.u32 %v3690_v21, 16  ;;  %v2786_v3 = vsel %vm6563_vm12, %v2781_v30, %v2785_v50  ;;  %v1960_v52 = vor.u32 %v1959_v53, %v1955_v26  ;;  %v3205_v39 = vld [vmem:[#allocation2 + $0xac] sm:$0xf]  ;;  %v3206_v1 = vld [vmem:[#allocation2 + $0xb0] sm:$0x1] }
 0x1f9   : > { %v4529_v16 = vld [vmem:[#allocation3 + $0x118] sm:$0xff]  ;;  %v3929_v7 = vrot.slane %v3927_v38, 4  ;;  %v3932_v17 = vrot.slane %v3930_v2, 5  ;;  %v1951_v59 = vrot.slane %v1950_v56, 4  ;;  %v3940_v22 = vshrl.u32 %v3690_v21, 16  ;;  %v6235_v56 = vld [vmem:[#allocation2 + $0x9c] sm:$0xff]  }
 0x1fa   : > { %6114 = vmatmul.mubr.msk.bf16.gmra.mrb[52].mxu0 %vm497_vm0, %v4529_v16  ;;  %v2796_v46 = vsel %vm6563_vm12, %v2791_v49, %v2795_v44  ;;  %v3938_v5 = vrot.slane %v3936_v42, 5  ;;  %v1961_v15 = vrot.slane %v1960_v52, 4  ;;  %v3946_v62 = vshll.u32 %v3691_v55, 16  ;;  %v1637_v40 = vld [vmem:[#allocation2 + $0x84] sm:$0xf] }
 0x1fb   : > { %v5692_v34 = vcombine.low %v2786_v3, %v2796_v46  ;;  %v3933_v31 = vor.u32 %v3932_v17, %v3929_v7  ;;  %v4532_v25 = vld [vmem:[#allocation3 + $0x130] sm:$0xff]  ;;  %v1956_v54 = vsel %vm6563_vm12, %v1951_v59, %v1955_v26  ;;  %v3942_v23 = vrot.slane %v3940_v22, 4  ;;  %v3201_v7 = vld [vmem:[#allocation2 + $0x9c] sm:$0xe]  ;;  %v3202_v17 = vld [vmem:[#allocation2 + $0xa0] sm:$0xf] }
 0x1fc   : > { %v2750_v50 = vshrl.u32 %v2659_v14, 16  ;;  %v2753_v11 = vshll.u32 %v2659_v14, 16  ;;  %6117 = vmatprep.mubr.msk.bf16.mxu0 %vm497_vm0, %v4532_v25  ;;  %v1966_v20 = vsel %vm6563_vm12, %v1961_v15, %v1965_v4  ;;  %v3948_v61 = vrot.slane %v3946_v62, 5  ;;  %v1638_v38 = vld [vmem:[#allocation2 + $0x88] sm:$0xf] }
 0x1fd   : > { %3152 = vst.msk [vmem:[#allocation3 + $0x50] sm:$0xff] %vm497_vm0, %v5692_v34  ;;  %v3934_v13 = vrot.slane %v3933_v31, 4  ;;  %v2769_v44 = vshll.u32 %v2661_v35, 16  ;;  %v5637_v21 = vcombine.low %v1956_v54, %v1966_v20  ;;  %v3943_v9 = vor.u32 %v3942_v23, %v3938_v5  ;;  %v2100_v2 = vpop.permute.xlu1 %2099  ;;  %v1639_v42 = vld [vmem:[#allocation2 + $0x8c] sm:$0x1] }
 0x1fe   : > { %3472 = vst.msk [vmem:[#allocation3 + $0x50] sm:$0xff] %vm2135_vm1, %v7244_v47  ;;  %v2752_v18 = vrot.slane %v2750_v50, 4  ;;  %v2755_v28 = vrot.slane %v2753_v11, 5  ;;  %v2759_v30 = vshll.u32 %v2660_v58, 16  ;;  %v2763_v53 = vshrl.u32 %v2660_v58, 16  ;;  %2142 = vst.msk [vmem:[#allocation3 + $0x90] sm:$0xff] %vm2135_vm1, %v2100_v2 }
 0x1ff   : > { %v3939_v26 = vsel %vm6563_vm12, %v3934_v13, %v3938_v5  ;;  %v2771_v57 = vrot.slane %v2769_v44, 5  ;;  %3649 = vst.msk [vmem:[#allocation3 + $0x50] sm:$0xff] %vm2459_vm2, %v7309_v48  ;;  %2111 = vrot.lane.b32.xlu1 %v5637_v21, %s6330_s16  ;;  %v3944_v49 = vrot.slane %v3943_v9, 4  ;;  %v5718_v4 = vrot.slane %v3204_v63, 9  ;;  %2466 = vst.msk [vmem:[#allocation3 + $0x90] sm:$0xff] %vm2459_vm2, %v7442_v12 }
 0x200   : > { %v2756_v47 = vor.u32 %v2755_v28, %v2752_v18  ;;  %v3354_v55 = vrot.slane %v3205_v39, 5  ;;  %4193 = vst.msk [vmem:[#allocation3 + $0x50] sm:$0xff] %vm2636_vm4, %v4149_v19  ;;  %v2761_v37 = vrot.slane %v2759_v30, 5  ;;  %v2765_v16 = vrot.slane %v2763_v53, 4  ;;  %v3203_v5 = vld [vmem:[#allocation2 + $0xa4] sm:$0x1]  ;;  %v7505_v19 = vpop.permute.xlu0 %3435 }
 0x201   : > { %v3357_v3 = vrot.slane %v3206_v1, 5  ;;  %v1920_v52 = vshrl.u32 %v1637_v40, 16  ;;  %v3949_v48 = vsel %vm6563_vm12, %v3944_v49, %v3948_v61  ;;  %v1923_v15 = vshll.u32 %v1637_v40, 16  ;;  %v2601_v31 = vpop.permute.xlu1 %2600  ;;  %v2191_v25 = vld [vmem:[#allocation2 + $0x9c] sm:$0xe] }
 0x202   : > { %v2757_v14 = vrot.slane %v2756_v47, 4  ;;  %v3355_v46 = vsel %vm6554_vm9, %v5718_v4, %v3354_v55  ;;  %v3356_v59 = vrot.slane %v3354_v55, 4  ;;  %v5762_v22 = vcombine.low %v3939_v26, %v3949_v48  ;;  %2643 = vst.msk [vmem:[#allocation3 + $0x90] sm:$0xff] %vm2636_vm4, %v2601_v31  ;;  %v2192_v39 = vld [vmem:[#allocation2 + $0xa0] sm:$0xf] }
 0x203   : > { %v2766_v35 = vor.u32 %v2765_v16, %v2761_v37  ;;  %v1922_v34 = vrot.slane %v1920_v52, 4  ;;  %2612 = vrot.lane.b32.xlu1 %v6235_v56, %s6331_s20  ;;  %v1929_v58 = vshll.u32 %v1638_v38, 16  ;;  %v1933_v63 = vshrl.u32 %v1638_v38, 16  ;;  %v2193_v1 = vld [vmem:[#allocation2 + $0xa4] sm:$0x1] }
 0x204   : > { %v2762_v62 = vsel %vm6563_vm12, %v2757_v14, %v2761_v37  ;;  %v3358_v12 = vsel %vm6554_vm9, %v3356_v59, %v3357_v3  ;;  %4160 = vrot.lane.b32.xlu0 %v5762_v22, %s6331_s20  ;;  %v1925_v50 = vrot.slane %v1923_v15, 5  ;;  %v1939_v11 = vshll.u32 %v1639_v42, 16  ;;  %v3698_v40 = vld [vmem:[#allocation2 + $0xa8] sm:$0xf]  ;;  %v3699_v2 = vld [vmem:[#allocation2 + $0xac] sm:$0xf]  ;;  %v7534_v31 = vpop.permute.xlu0 %3433 }
 0x205   : > { %v2767_v54 = vrot.slane %v2766_v35, 4  ;;  %v5734_v23 = vcombine.low %v3355_v46, %v3358_v12  ;;  %v1931_v20 = vrot.slane %v1929_v58, 5  ;;  %v1935_v13 = vrot.slane %v1933_v63, 4  ;;  %v3700_v49 = vld [vmem:[#allocation2 + $0xb0] sm:$0x1] }
 0x206   : > { %v5717_v61 = vrot.slane %v3201_v7, 9  ;;  %v3347_v44 = vrot.slane %v3202_v17, 5  ;;  %v1926_v9 = vor.u32 %v1925_v50, %v1922_v34  ;;  %v1941_v18 = vrot.slane %v1939_v11, 5  ;;  %v3695_v42 = vld [vmem:[#allocation2 + $0x9c] sm:$0xf]  ;;  %v7512_v37 = vpop.f32.mrb[32].mxu0 }
 0x207   : > { %v2772_v21 = vsel %vm6563_vm12, %v2767_v54, %v2771_v57  ;;  %v3350_v28 = vrot.slane %v3203_v5, 5  ;;  %v1936_v30 = vor.u32 %v1935_v13, %v1931_v20  ;;  %v5654_v56 = vrot.slane %v2191_v25, 9  ;;  %v2098_v57 = vpop.permute.xlu1 %2097  ;;  %v7518_v17 = vpop.f32.mrb[33].mxu0  ;;  %v3696_v5 = vld [vmem:[#allocation2 + $0xa0] sm:$0xf] }
 0x208   : > { %v5691_v26 = vcombine.low %v2762_v62, %v2772_v21  ;;  %v3348_v53 = vsel %vm6554_vm9, %v5717_v61, %v3347_v44  ;;  %v3349_v38 = vrot.slane %v3347_v44, 4  ;;  %3447 = vrot.lane.b32.xlu0 %v5734_v23, %s6330_s16  ;;  %v1927_v47 = vrot.slane %v1926_v9, 4  ;;  %2141 = vst.msk [vmem:[#allocation3 + $0x78] sm:$0xff] %vm2135_vm1, %v2098_v57  ;;  %v7528_v22 = vpop.f32.mrb[34].mxu0  ;;  %v3697_v63 = vld [vmem:[#allocation2 + $0xa4] sm:$0x1] }
 0x209   : > { %v2344_v4 = vrot.slane %v2192_v39, 5  ;;  %v2347_v55 = vrot.slane %v2193_v1, 5  ;;  %v1937_v16 = vrot.slane %v1936_v30, 4  ;;  %v3999_v52 = vshrl.u32 %v3698_v40, 16  ;;  %2465 = vst.msk [vmem:[#allocation3 + $0x78] sm:$0xff] %vm2459_vm2, %v7461_v36  ;;  %v7538_v62 = vpop.f32.mrb[35].mxu0 }
 0x20a   : > { %3151 = vst.msk [vmem:[#allocation3 + $0x38] sm:$0xff] %vm497_vm0, %v5691_v26  ;;  %v3351_v3 = vsel %vm6554_vm9, %v3349_v38, %v3350_v28  ;;  %v4002_v7 = vshll.u32 %v3698_v40, 16  ;;  %v1932_v48 = vsel %vm6563_vm12, %v1927_v47, %v1931_v20  ;;  %v4008_v15 = vshll.u32 %v3699_v2, 16  ;;  %v1646_v11 = vld [vmem:[#allocation2 + $0xa8] sm:$0xf] }
 0x20b   : > { %3471 = vst.msk [vmem:[#allocation3 + $0x38] sm:$0xff] %vm2135_vm1, %v7260_v33  ;;  %v5733_v14 = vcombine.low %v3348_v53, %v3351_v3  ;;  %v2345_v46 = vsel %vm6554_vm9, %v5654_v56, %v2344_v4  ;;  %v2346_v59 = vrot.slane %v2344_v4, 4  ;;  %v1942_v33 = vsel %vm6563_vm12, %v1937_v16, %v1941_v18  ;;  %v1648_v40 = vld [vmem:[#allocation2 + $0xb0] sm:$0x1]  ;;  %v6253_v30 = vld [vmem:[#allocation2 + $0xa8] sm:$0xff]   ;;  %v7548_v56 = vpop.permute.xlu0 %3614  ;;  %v7550_v4 = vpop.permute.xlu1 %2427 }
 0x20c   : > { %3648 = vst.msk [vmem:[#allocation3 + $0x38] sm:$0xff] %vm2459_vm2, %v7184_v24  ;;  %v4001_v35 = vrot.slane %v3999_v52, 4  ;;  %v4004_v34 = vrot.slane %v4002_v7, 5  ;;  %v5636_v12 = vcombine.low %v1932_v48, %v1942_v33  ;;  %v4012_v36 = vshrl.u32 %v3699_v2, 16  ;;  %v2668_v47 = vld [vmem:[#allocation2 + $0x48] sm:$0xf] }
 0x20d   : > { %2642 = vst.msk [vmem:[#allocation3 + $0x78] sm:$0xff] %vm2636_vm4, %v7343_v8  ;;  %3445 = vrot.lane.b32.xlu0 %v5733_v14, %s6330_s16  ;;  %4192 = vst.msk [vmem:[#allocation3 + $0x38] sm:$0xff] %vm2636_vm4, %v7298_v43  ;;  %v2348_v24 = vsel %vm6554_vm9, %v2346_v59, %v2347_v55  ;;  %v4018_v58 = vshll.u32 %v3700_v49, 16  ;;  %v4010_v23 = vrot.slane %v4008_v15, 5  ;;  %v3975_v50 = vshrl.u32 %v3695_v42, 16  ;;  %v6254_v55 = vld [vmem:[#allocation2 + $0x9c] sm:$0xff]  }
 0x20e   : > { %v5670_v25 = vcombine.low %v2345_v46, %v2348_v24  ;;  %v4005_v54 = vor.u32 %v4004_v34, %v4001_v35  ;;  %v1647_v8 = vld [vmem:[#allocation2 + $0xac] sm:$0xf]  ;;  %2109 = vrot.lane.b32.xlu1 %v5636_v12, %s6330_s16  ;;  %v4014_v39 = vrot.slane %v4012_v36, 4  ;;  %v3978_v13 = vshll.u32 %v3695_v42, 16  ;;  %1602 = vst.msk [vmem:[#allocation3 + $0x150] sm:$0xff] %vm497_vm0, %v6253_v30  ;;  %1601 = vst.msk [vmem:[#allocation3 + $0x138] sm:$0xff] %vm497_vm0, %v6254_v55 }
 0x20f   : > { %v4020_v20 = vrot.slane %v4018_v58, 5  ;;  %v3984_v61 = vshll.u32 %v3696_v5, 16  ;;  %v3977_v43 = vrot.slane %v3975_v50, 4  ;;  %v3988_v1 = vshrl.u32 %v3696_v5, 16  ;;  %v6237_v57 = vld [vmem:[#allocation2 + $0xa8] sm:$0xff]  }
 0x210   : > { %v4006_v44 = vrot.slane %v4005_v54, 4  ;;  %v3994_v21 = vshll.u32 %v3697_v63, 16  ;;  %v4015_v9 = vor.u32 %v4014_v39, %v4010_v23  ;;  %v3980_v18 = vrot.slane %v3978_v13, 5  ;;  %v2669_v7 = vld [vmem:[#allocation2 + $0x4c] sm:$0xf] }
 0x211   : > { %v3986_v28 = vrot.slane %v3984_v61, 5  ;;  %v1992_v26 = vshrl.u32 %v1646_v11, 16  ;;  %v3990_v38 = vrot.slane %v3988_v1, 4  ;;  %v1995_v49 = vshll.u32 %v1646_v11, 16  ;;  %v4504_v48 = vld [vmem:[#allocation3 + $0x50] sm:$0xff]  ;;  %v7565_v1 = vpop.permute.xlu1 %2425 }
 0x212   : > { %v4011_v53 = vsel %vm6563_vm12, %v4006_v44, %v4010_v23  ;;  %v3996_v2 = vrot.slane %v3994_v21, 5  ;;  %2437 = vrot.lane.b32.xlu1 %v5670_v25, %s6329_s15  ;;  %v4016_v42 = vrot.slane %v4015_v9, 4  ;;  %v3981_v16 = vor.u32 %v3980_v18, %v3977_v43  ;;  %v2670_v33 = vld [vmem:[#allocation2 + $0x50] sm:$0x1]  ;;  %v1643_v36 = vld [vmem:[#allocation2 + $0x9c] sm:$0xf]  ;;  %v7563_v43 = vpop.permute.xlu0 %4154 }
 0x213   : > { %v1994_v3 = vrot.slane %v1992_v26, 4  ;;  %v2001_v52 = vshll.u32 %v1647_v8, 16  ;;  %v3991_v14 = vor.u32 %v3990_v38, %v3986_v28  ;;  %v1997_v46 = vrot.slane %v1995_v49, 5  ;;  %v4500_v58 = vld [vmem:[#allocation3 + $0x30] sm:$0xff]  ;;  %v1645_v38 = vld [vmem:[#allocation2 + $0xa4] sm:$0x1] }
 0x214   : > { %v2005_v59 = vshrl.u32 %v1647_v8, 16  ;;  %v2011_v5 = vshll.u32 %v1648_v40, 16  ;;  %v4501_v35 = vld [vmem:[#allocation3 + $0x38] sm:$0xff]  ;;  %v4021_v34 = vsel %vm6563_vm12, %v4016_v42, %v4020_v20  ;;  %v3982_v15 = vrot.slane %v3981_v16, 4  ;;  %v1644_v40 = vld [vmem:[#allocation2 + $0xa0] sm:$0xf] }
 0x215   : > { %v2003_v12 = vrot.slane %v2001_v52, 5  ;;  %v2822_v24 = vshrl.u32 %v2668_v47, 16  ;;  %4782 = vmatprep.mubr.bf16.mxu1 %v4501_v35  ;;  %v5765_v63 = vcombine.low %v4011_v53, %v4021_v34  ;;  %v3992_v25 = vrot.slane %v3991_v14, 4  ;;  %v2665_v16 = vld [vmem:[#allocation2 + $0x3c] sm:$0xf]  ;;  %v4503_v34 = vld [vmem:[#allocation3 + $0x48] sm:$0xff] }
 0x216   : > { %v1998_v54 = vor.u32 %v1997_v46, %v1994_v3  ;;  %v2007_v23 = vrot.slane %v2005_v59, 4  ;;  %4783 = vmatmul.mubr.bf16.gmra.mrb[8].mxu1 %v4500_v58  ;;  %2614 = vrot.lane.b32.xlu1 %v6237_v57, %s6331_s20  ;;  %v3987_v50 = vsel %vm6563_vm12, %v3982_v15, %v3986_v28  ;;  %v2013_v11 = vrot.slane %v2011_v5, 5  ;;  %v4245_v57 = vld [vmem:[#allocation2 + $0xb4] sm:$0xe]  ;;  %v4246_v14 = vld [vmem:[#allocation2 + $0xb8] sm:$0xf] }
 0x217   : > { %v2824_v8 = vrot.slane %v2822_v24, 4  ;;  %v2825_v39 = vshll.u32 %v2668_v47, 16  ;;  %4790 = vmatprep.mubr.bf16.mxu1 %v4504_v48  ;;  %4166 = vrot.lane.b32.xlu0 %v5765_v63, %s6331_s20  ;;  %v3997_v20 = vsel %vm6563_vm12, %v3992_v25, %v3996_v2  ;;  %v2831_v44 = vshll.u32 %v2669_v7, 16  ;;  %v4247_v35 = vld [vmem:[#allocation2 + $0xbc] sm:$0x1]  ;;  %v6238_v15 = vld [vmem:[#allocation2 + $0xb4] sm:$0xff]   ;;  %v7572_v63 = vpop.permute.xlu0 %3612  ;;  %v7574_v25 = vpop.permute.xlu1 %2606 }
 0x218   : > { %v1999_v13 = vrot.slane %v1998_v54, 4  ;;  %v2008_v61 = vor.u32 %v2007_v23, %v2003_v12  ;;  %v5764_v21 = vcombine.low %v3987_v50, %v3997_v20  ;;  %v2835_v18 = vshrl.u32 %v2669_v7, 16 }
 0x219   : > { %v2827_v9 = vrot.slane %v2825_v39, 5  ;;  %v2841_v28 = vshll.u32 %v2670_v33, 16  ;;  %v2833_v53 = vrot.slane %v2831_v44, 5  ;;  %v1968_v49 = vshrl.u32 %v1643_v36, 16  ;;  %v2666_v44 = vld [vmem:[#allocation2 + $0x40] sm:$0xf] }
 0x21a   : > { %v2004_v26 = vsel %vm6563_vm12, %v1999_v13, %v2003_v12  ;;  %v2009_v30 = vrot.slane %v2008_v61, 4  ;;  %v2837_v47 = vrot.slane %v2835_v18, 4  ;;  %v1971_v42 = vshll.u32 %v1643_v36, 16 }
 0x21b   : > { %v2828_v2 = vor.u32 %v2827_v9, %v2824_v8  ;;  %v2843_v55 = vrot.slane %v2841_v28, 5  ;;  %4164 = vrot.lane.b32.xlu0 %v5764_v21, %s6331_s20  ;;  %v1970_v52 = vrot.slane %v1968_v49, 4  ;;  %v1977_v7 = vshll.u32 %v1644_v40, 16  ;;  %v2667_v8 = vld [vmem:[#allocation2 + $0x44] sm:$0x1] }
 0x21c   : > { %v2014_v3 = vsel %vm6563_vm12, %v2009_v30, %v2013_v11  ;;  %v1981_v48 = vshrl.u32 %v1644_v40, 16  ;;  %v2838_v5 = vor.u32 %v2837_v47, %v2833_v53  ;;  %v1973_v33 = vrot.slane %v1971_v42, 5  ;;  %v6240_v30 = vld [vmem:[#allocation2 + $0xc0] sm:$0xff]   ;;  %v2195_v47 = vld [vmem:[#allocation2 + $0xac] sm:$0xf] }
 0x21d   : > { %v5639_v46 = vcombine.low %v2004_v26, %v2014_v3  ;;  %v2829_v59 = vrot.slane %v2828_v2, 4  ;;  %v1979_v12 = vrot.slane %v1977_v7, 5  ;;  %v1987_v36 = vshll.u32 %v1645_v38, 16  ;;  %v4248_v49 = vld [vmem:[#allocation2 + $0xc0] sm:$0xe] }
 0x21e   : > { %v1983_v24 = vrot.slane %v1981_v48, 4  ;;  %v5782_v58 = vrot.slane %v4245_v57, 9  ;;  %4791 = vmatmul.mubr.bf16.gmra.mrb[12].mxu1 %v4503_v34  ;;  %v2839_v23 = vrot.slane %v2838_v5, 4  ;;  %v1974_v50 = vor.u32 %v1973_v33, %v1970_v52  ;;  %v2194_v2 = vld [vmem:[#allocation2 + $0xa8] sm:$0xe]  ;;  %v4153_v33 = vpop.permute.xlu0 %4152 }
 0x21f   : > { %2115 = vrot.lane.b32.xlu1 %v5639_v46, %s6330_s16  ;;  %v2834_v54 = vsel %vm6563_vm12, %v2829_v59, %v2833_v53  ;;  %v4395_v11 = vrot.slane %v4246_v14, 5  ;;  %3624 = vrot.lane.b32.xlu0 %v6238_v15, %s6329_s15  ;;  %v1989_v20 = vrot.slane %v1987_v36, 5  ;;  %v4398_v13 = vrot.slane %v4247_v35, 5  ;;  %v4249_v52 = vld [vmem:[#allocation2 + $0xc4] sm:$0xf] }
 0x220   : > { %v1984_v39 = vor.u32 %v1983_v24, %v1979_v12  ;;  %v2798_v61 = vshrl.u32 %v2665_v16, 16  ;;  %v2844_v21 = vsel %vm6563_vm12, %v2839_v23, %v2843_v55  ;;  %v1975_v9 = vrot.slane %v1974_v50, 4  ;;  %v4250_v7 = vld [vmem:[#allocation2 + $0xc8] sm:$0x1]  ;;  %v2196_v59 = vld [vmem:[#allocation2 + $0xb0] sm:$0x1] }
 0x221   : > { %v4396_v18 = vsel %vm6554_vm9, %v5782_v58, %v4395_v11  ;;  %v4397_v28 = vrot.slane %v4395_v11, 4  ;;  %v5694_v40 = vcombine.low %v2834_v54, %v2844_v21  ;;  %v2801_v38 = vshll.u32 %v2665_v16, 16  ;;  %v3207_v5 = vld [vmem:[#allocation2 + $0xb4] sm:$0xe]  ;;  %v3208_v36 = vld [vmem:[#allocation2 + $0xb8] sm:$0xf] }
 0x222   : > { %v1985_v26 = vrot.slane %v1984_v39, 4  ;;  %v2800_v53 = vrot.slane %v2798_v61, 4  ;;  %v1980_v42 = vsel %vm6563_vm12, %v1975_v9, %v1979_v12  ;;  %v2817_v55 = vshll.u32 %v2667_v8, 16  ;;  %v3209_v11 = vld [vmem:[#allocation2 + $0xbc] sm:$0x1] }
 0x223   : > { %v4399_v57 = vsel %vm6554_vm9, %v4397_v28, %v4398_v13  ;;  %v2807_v3 = vshll.u32 %v2666_v44, 16  ;;  %3154 = vst.msk [vmem:[#allocation3 + $0x80] sm:$0xff] %vm497_vm0, %v5694_v40  ;;  %3626 = vrot.lane.b32.xlu0 %v6240_v30, %s6329_s15  ;;  %v2803_v16 = vrot.slane %v2801_v38, 5  ;;  %v2811_v46 = vshrl.u32 %v2666_v44, 16  ;;  %v2104_v35 = vpop.permute.xlu1 %2103  ;;  %v3701_v13 = vld [vmem:[#allocation2 + $0xb4] sm:$0xf] }
 0x224   : > { %v1990_v48 = vsel %vm6563_vm12, %v1985_v26, %v1989_v20  ;;  %v5798_v14 = vcombine.low %v4396_v18, %v4399_v57  ;;  %3474 = vst.msk [vmem:[#allocation3 + $0x80] sm:$0xff] %vm2135_vm1, %v7392_v41  ;;  %v2819_v15 = vrot.slane %v2817_v55, 5  ;;  %v5783_v24 = vrot.slane %v4248_v49, 9  ;;  %2144 = vst.msk [vmem:[#allocation3 + $0xc0] sm:$0xff] %vm2135_vm1, %v2104_v35  ;;  %v3702_v26 = vld [vmem:[#allocation2 + $0xb8] sm:$0xf] }
 0x225   : > { %v5638_v34 = vcombine.low %v1980_v42, %v1990_v48  ;;  %v2809_v12 = vrot.slane %v2807_v3, 5  ;;  %v2804_v58 = vor.u32 %v2803_v16, %v2800_v53  ;;  %v2813_v54 = vrot.slane %v2811_v46, 4  ;;  %3651 = vst.msk [vmem:[#allocation3 + $0x80] sm:$0xff] %vm2459_vm2, %v7465_v32  ;;  %2468 = vst.msk [vmem:[#allocation3 + $0xc0] sm:$0xff] %vm2459_vm2, %v7550_v4  ;;  %v7613_v42 = vpop.permute.xlu0 %3439  ;;  %v2197_v48 = vld [vmem:[#allocation2 + $0xb4] sm:$0xe] }
 0x226   : > { %4491 = vst.msk [vmem:[#allocation3 + $0x148] sm:$0xff] %vm497_vm0, %v5798_v14  ;;  %v4402_v23 = vrot.slane %v4249_v52, 5  ;;  %v4405_v50 = vrot.slane %v4250_v7, 5  ;;  %v5655_v41 = vrot.slane %v2194_v2, 9  ;;  %v2351_v8 = vrot.slane %v2195_v47, 5  ;;  %v7607_v30 = vpop.f32.mrb[36].mxu0 }
 0x227   : > { %2113 = vrot.lane.b32.xlu1 %v5638_v34, %s6330_s16  ;;  %v2354_v39 = vrot.slane %v2196_v59, 5  ;;  %v5719_v20 = vrot.slane %v3207_v5, 9  ;;  %4195 = vst.msk [vmem:[#allocation3 + $0x80] sm:$0xff] %vm2636_vm4, %v4153_v33  ;;  %v2805_v61 = vrot.slane %v2804_v58, 4  ;;  %v2814_v44 = vor.u32 %v2813_v54, %v2809_v12  ;;  %v2605_v18 = vpop.permute.xlu1 %2604  ;;  %v3703_v2 = vld [vmem:[#allocation2 + $0xbc] sm:$0x1] }
 0x228   : > { %v4403_v21 = vsel %vm6554_vm9, %v5783_v24, %v4402_v23  ;;  %v4404_v9 = vrot.slane %v4402_v23, 4  ;;  %v2352_v32 = vsel %vm6554_vm9, %v5655_v41, %v2351_v8  ;;  %v2353_v4 = vrot.slane %v2351_v8, 4  ;;  %2645 = vst.msk [vmem:[#allocation3 + $0xc0] sm:$0xff] %vm2636_vm4, %v2605_v18  ;;  %v7615_v57 = vpop.f32.mrb[37].mxu0  ;;  %v2198_v14 = vld [vmem:[#allocation2 + $0xb8] sm:$0xf] }
 0x229   : > { %v3361_v28 = vrot.slane %v3208_v36, 5  ;;  %v3364_v40 = vrot.slane %v3209_v11, 5  ;;  %v2810_v53 = vsel %vm6563_vm12, %v2805_v61, %v2809_v12  ;;  %v2815_v38 = vrot.slane %v2814_v44, 4  ;;  %v7621_v16 = vpop.f32.mrb[38].mxu0  ;;  %v2199_v35 = vld [vmem:[#allocation2 + $0xbc] sm:$0x1] }
 0x22a   : > { %v4406_v49 = vsel %vm6554_vm9, %v4404_v9, %v4405_v50  ;;  %v4023_v47 = vshrl.u32 %v3701_v13, 16  ;;  %v2355_v3 = vsel %vm6554_vm9, %v2353_v4, %v2354_v39  ;;  %v4026_v33 = vshll.u32 %v3701_v13, 16  ;;  %v7625_v34 = vpop.f32.mrb[39].mxu0  ;;  %v3704_v23 = vld [vmem:[#allocation2 + $0xc0] sm:$0xf]  ;;  %v6242_v9 = vld [vmem:[#allocation2 + $0xb4] sm:$0xff]  }
 0x22b   : > { %v5799_v55 = vcombine.low %v4403_v21, %v4406_v49  ;;  %v3362_v52 = vsel %vm6554_vm9, %v5719_v20, %v3361_v28  ;;  %v3363_v7 = vrot.slane %v3361_v28, 4  ;;  %v2820_v46 = vsel %vm6563_vm12, %v2815_v38, %v2819_v15  ;;  %v3705_v8 = vld [vmem:[#allocation2 + $0xc4] sm:$0xf]  ;;  %v6255_v21 = vld [vmem:[#allocation2 + $0xb4] sm:$0xff]   ;;  %v3706_v4 = vld [vmem:[#allocation2 + $0xc8] sm:$0x1] }
 0x22c   : > { %v5671_v59 = vcombine.low %v2352_v32, %v2355_v3  ;;  %v4025_v5 = vrot.slane %v4023_v47, 4  ;;  %v5693_v24 = vcombine.low %v2810_v53, %v2820_v46  ;;  %v4032_v58 = vshll.u32 %v3702_v26, 16  ;;  %1603 = vst.msk [vmem:[#allocation3 + $0x168] sm:$0xff] %vm497_vm0, %v6255_v21  ;;  %v1649_v3 = vld [vmem:[#allocation2 + $0xb4] sm:$0xf] }
 0x22d   : > { %v4535_v12 = vld [vmem:[#allocation3 + $0x148] sm:$0xff]  ;;  %4492 = vst.msk [vmem:[#allocation3 + $0x160] sm:$0xff] %vm497_vm0, %v5799_v55  ;;  %v3365_v36 = vsel %vm6554_vm9, %v3363_v7, %v3364_v40  ;;  %v4036_v54 = vshrl.u32 %v3702_v26, 16  ;;  %v4028_v50 = vrot.slane %v4026_v33, 5  ;;  %v4042_v11 = vshll.u32 %v3703_v2, 16  ;;  %v7636_v26 = vpop.permute.xlu0 %3437 }
 0x22e   : > { %6118 = vmatmul.mubr.msk.bf16.gmra.mrb[56].mxu0 %vm497_vm0, %v4535_v12  ;;  %2439 = vrot.lane.b32.xlu1 %v5671_v59, %s6329_s15  ;;  %v5735_v15 = vcombine.low %v3362_v52, %v3365_v36  ;;  %v5656_v41 = vrot.slane %v2197_v48, 9  ;;  %3153 = vst.msk [vmem:[#allocation3 + $0x68] sm:$0xff] %vm497_vm0, %v5693_v24  ;;  %v4034_v39 = vrot.slane %v4032_v58, 5  ;;  %v2358_v13 = vrot.slane %v2198_v14, 5  ;;  %v2102_v44 = vpop.permute.xlu1 %2101  ;;  %v1650_v14 = vld [vmem:[#allocation2 + $0xb8] sm:$0xf] }
 0x22f   : > { %v4038_v20 = vrot.slane %v4036_v54, 4  ;;  %v2361_v61 = vrot.slane %v2199_v35, 5  ;;  %3473 = vst.msk [vmem:[#allocation3 + $0x68] sm:$0xff] %vm2135_vm1, %v7418_v51  ;;  %v4029_v18 = vor.u32 %v4028_v50, %v4025_v5  ;;  %v4044_v32 = vrot.slane %v4042_v11, 5  ;;  %2143 = vst.msk [vmem:[#allocation3 + $0xa8] sm:$0xff] %vm2135_vm1, %v2102_v44 }
 0x230   : > { %3449 = vrot.lane.b32.xlu0 %v5735_v15, %s6330_s16  ;;  %v4047_v28 = vshrl.u32 %v3704_v23, 16  ;;  %v4050_v40 = vshll.u32 %v3704_v23, 16  ;;  %3650 = vst.msk [vmem:[#allocation3 + $0x68] sm:$0xff] %vm2459_vm2, %v7278_v45  ;;  %v2359_v38 = vsel %vm6554_vm9, %v5656_v41, %v2358_v13  ;;  %v2360_v51 = vrot.slane %v2358_v13, 4  ;;  %2467 = vst.msk [vmem:[#allocation3 + $0xa8] sm:$0xff] %vm2459_vm2, %v7565_v1 }
 0x231   : > { %v4039_v53 = vor.u32 %v4038_v20, %v4034_v39  ;;  %v4056_v49 = vshll.u32 %v3705_v8, 16  ;;  %v4030_v2 = vrot.slane %v4029_v18, 4  ;;  %4194 = vst.msk [vmem:[#allocation3 + $0x68] sm:$0xff] %vm2636_vm4, %v7455_v60  ;;  %v4060_v45 = vshrl.u32 %v3705_v8, 16  ;;  %2644 = vst.msk [vmem:[#allocation3 + $0xa8] sm:$0xff] %vm2636_vm4, %v7471_v27 }
 0x232   : > { %2616 = vrot.lane.b32.xlu1 %v6242_v9, %s6331_s20  ;;  %v4049_v47 = vrot.slane %v4047_v28, 4  ;;  %v4052_v55 = vrot.slane %v4050_v40, 5  ;;  %v2362_v7 = vsel %vm6554_vm9, %v2360_v51, %v2361_v61  ;;  %v4066_v48 = vshll.u32 %v3706_v4, 16  ;;  %v1651_v35 = vld [vmem:[#allocation2 + $0xbc] sm:$0x1]  ;;  %v7655_v12 = vpop.permute.xlu1 %2431 }
 0x233   : > { %v4040_v52 = vrot.slane %v4039_v53, 4  ;;  %v4058_v1 = vrot.slane %v4056_v49, 5  ;;  %v4035_v59 = vsel %vm6563_vm12, %v4030_v2, %v4034_v39  ;;  %v5672_v5 = vcombine.low %v2359_v38, %v2362_v7  ;;  %v3210_v54 = vld [vmem:[#allocation2 + $0xc0] sm:$0xe]  ;;  %v3211_v41 = vld [vmem:[#allocation2 + $0xc4] sm:$0xf]  ;;  %v7661_v39 = vpop.permute.xlu0 %3618 }
 0x234   : > { %v4538_v46 = vld [vmem:[#allocation3 + $0x160] sm:$0xff]  ;;  %v4053_v60 = vor.u32 %v4052_v55, %v4049_v47  ;;  %v4062_v33 = vrot.slane %v4060_v45, 4  ;;  %v4068_v24 = vrot.slane %v4066_v48, 5  ;;  %v2016_v36 = vshrl.u32 %v1649_v3, 16  ;;  %v2674_v8 = vld [vmem:[#allocation2 + $0x60] sm:$0xf] }
 0x235   : > { %6121 = vmatprep.mubr.msk.bf16.mxu0 %vm497_vm0, %v4538_v46  ;;  %v4045_v27 = vsel %vm6563_vm12, %v4040_v52, %v4044_v32  ;;  %v2019_v58 = vshll.u32 %v1649_v3, 16  ;;  %v2025_v11 = vshll.u32 %v1650_v14, 16  ;;  %v2029_v61 = vshrl.u32 %v1650_v14, 16  ;;  %v3212_v21 = vld [vmem:[#allocation2 + $0xc8] sm:$0x1]  ;;  %v4510_v2 = vld [vmem:[#allocation3 + $0x80] sm:$0xff] }
 0x236   : > { %v5766_v23 = vcombine.low %v4035_v59, %v4045_v27  ;;  %2441 = vrot.lane.b32.xlu1 %v5672_v5, %s6329_s15  ;;  %v4054_v15 = vrot.slane %v4053_v60, 4  ;;  %v4063_v50 = vor.u32 %v4062_v33, %v4058_v1  ;;  %v2018_v20 = vrot.slane %v2016_v36, 4  ;;  %v2675_v28 = vld [vmem:[#allocation2 + $0x64] sm:$0xf]  ;;  %v2676_v45 = vld [vmem:[#allocation2 + $0x68] sm:$0x1] }
 0x237   : > { %v2021_v13 = vrot.slane %v2019_v58, 5  ;;  %v2035_v44 = vshll.u32 %v1651_v35, 16  ;;  %v2027_v32 = vrot.slane %v2025_v11, 5  ;;  %v5720_v4 = vrot.slane %v3210_v54, 9  ;;  %v4506_v7 = vld [vmem:[#allocation3 + $0x60] sm:$0xff] }
 0x238   : > { %4168 = vrot.lane.b32.xlu0 %v5766_v23, %s6331_s20  ;;  %v4059_v9 = vsel %vm6563_vm12, %v4054_v15, %v4058_v1  ;;  %v4064_v18 = vrot.slane %v4063_v50, 4  ;;  %v2031_v53 = vrot.slane %v2029_v61, 4  ;;  %v3368_v51 = vrot.slane %v3211_v41, 5  ;;  %v4507_v49 = vld [vmem:[#allocation3 + $0x68] sm:$0xff]  ;;  %v7668_v1 = vpop.permute.xlu1 %2429  ;;  %v3707_v5 = vld [vmem:[#allocation2 + $0xcc] sm:$0xf] }
 0x239   : > { %v2022_v40 = vor.u32 %v2021_v13, %v2018_v20  ;;  %v2037_v38 = vrot.slane %v2035_v44, 5  ;;  %v3371_v55 = vrot.slane %v3212_v21, 5  ;;  %v2870_v3 = vshrl.u32 %v2674_v8, 16  ;;  %4798 = vmatprep.mubr.bf16.mxu1 %v4507_v49  ;;  %v3708_v41 = vld [vmem:[#allocation2 + $0xd0] sm:$0xf] }
 0x23a   : > { %v4069_v47 = vsel %vm6563_vm12, %v4064_v18, %v4068_v24  ;;  %v2873_v52 = vshll.u32 %v2674_v8, 16  ;;  %v2032_v46 = vor.u32 %v2031_v53, %v2027_v32  ;;  %v3369_v59 = vsel %vm6554_vm9, %v5720_v4, %v3368_v51  ;;  %4799 = vmatmul.mubr.bf16.gmra.mrb[16].mxu1 %v4506_v7  ;;  %v7672_v24 = vpop.permute.xlu0 %4158  ;;  %v3709_v8 = vld [vmem:[#allocation2 + $0xd4] sm:$0x1]  ;;  %v6244_v53 = vld [vmem:[#allocation2 + $0xcc] sm:$0xff]   ;;  %v2672_v7 = vld [vmem:[#allocation2 + $0x58] sm:$0xf] }
 0x23b   : > { %v5767_v48 = vcombine.low %v4059_v9, %v4069_v47  ;;  %v2023_v14 = vrot.slane %v2022_v40, 4  ;;  %v3370_v60 = vrot.slane %v3368_v51, 4  ;;  %v2872_v33 = vrot.slane %v2870_v3, 4  ;;  %4806 = vmatprep.mubr.bf16.mxu1 %v4510_v2  ;;  %v2671_v9 = vld [vmem:[#allocation2 + $0x54] sm:$0xf] }
 0x23c   : > { %v2875_v35 = vrot.slane %v2873_v52, 5  ;;  %v2879_v27 = vshll.u32 %v2675_v28, 16  ;;  %v2033_v58 = vrot.slane %v2032_v46, 4  ;;  %v2883_v54 = vshrl.u32 %v2675_v28, 16  ;;  %v7681_v40 = vpop.permute.xlu1 %2610 }
 0x23d   : > { %4170 = vrot.lane.b32.xlu0 %v5767_v48, %s6331_s20  ;;  %v2028_v36 = vsel %vm6563_vm12, %v2023_v14, %v2027_v32  ;;  %v2889_v23 = vshll.u32 %v2676_v45, 16  ;;  %v3372_v15 = vsel %vm6554_vm9, %v3370_v60, %v3371_v55  ;;  %v4071_v20 = vshrl.u32 %v3707_v5, 16  ;;  %v2673_v55 = vld [vmem:[#allocation2 + $0x5c] sm:$0x1]  ;;  %v4509_v48 = vld [vmem:[#allocation3 + $0x78] sm:$0xff] }
 0x23e   : > { %v2876_v50 = vor.u32 %v2875_v35, %v2872_v33  ;;  %v2881_v11 = vrot.slane %v2879_v27, 5  ;;  %v2038_v13 = vsel %vm6563_vm12, %v2033_v58, %v2037_v38  ;;  %v5736_v61 = vcombine.low %v3369_v59, %v3372_v15  ;;  %v7687_v14 = vpop.permute.xlu0 %3616  ;;  %v6243_v33 = vld [vmem:[#allocation2 + $0xc0] sm:$0xff]  }
 0x23f   : > { %v2885_v44 = vrot.slane %v2883_v54, 4  ;;  %v2891_v21 = vrot.slane %v2889_v23, 5  ;;  %v5640_v18 = vcombine.low %v2028_v36, %v2038_v13  ;;  %v4073_v4 = vrot.slane %v4071_v20, 4  ;;  %v2680_v54 = vld [vmem:[#allocation2 + $0x78] sm:$0xf] }
 0x240   : > { %v2877_v32 = vrot.slane %v2876_v50, 4  ;;  %v4074_v28 = vshll.u32 %v3707_v5, 16  ;;  %v4080_v49 = vshll.u32 %v3708_v41, 16  ;;  %v4084_v2 = vshrl.u32 %v3708_v41, 16  ;;  %v2681_v41 = vld [vmem:[#allocation2 + $0x7c] sm:$0xf] }
 0x241   : > { %3451 = vrot.lane.b32.xlu0 %v5736_v61, %s6330_s16  ;;  %v2886_v51 = vor.u32 %v2885_v44, %v2881_v11  ;;  %v4090_v47 = vshll.u32 %v3709_v8, 16  ;;  %2117 = vrot.lane.b32.xlu1 %v5640_v18, %s6330_s16  ;;  %v2846_v3 = vshrl.u32 %v2671_v9, 16  ;;  %v2849_v52 = vshll.u32 %v2671_v9, 16  ;;  %s426_s16 = scalar_lea.vmem %s8147_s0, %s5850_s17 }
 0x242   : > { %v2882_v38 = vsel %vm6563_vm12, %v2877_v32, %v2881_v11  ;;  %v4076_v45 = vrot.slane %v4074_v28, 5  ;;  %v4082_v59 = vrot.slane %v4080_v49, 5  ;;  %v4086_v5 = vrot.slane %v4084_v2, 4  ;;  %4807 = vmatmul.mubr.bf16.gmra.mrb[20].mxu1 %v4509_v48  ;;  %v2677_v2 = vld [vmem:[#allocation2 + $0x6c] sm:$0xf] }
 0x243   : > { %v2887_v46 = vrot.slane %v2886_v51, 4  ;;  %v4092_v60 = vrot.slane %v4090_v47, 5  ;;  %v2848_v27 = vrot.slane %v2846_v3, 4  ;;  %v2851_v36 = vrot.slane %v2849_v52, 5  ;;  %v4157_v47 = vpop.permute.xlu0 %4156  ;;  %v2679_v52 = vld [vmem:[#allocation2 + $0x74] sm:$0x1] }
 0x244   : > { %v4077_v35 = vor.u32 %v4076_v45, %v4073_v4  ;;  %v2865_v58 = vshll.u32 %v2673_v55, 16  ;;  %v4087_v15 = vor.u32 %v4086_v5, %v4082_v59  ;;  %v2855_v50 = vshll.u32 %v2672_v7, 16  ;;  %v2682_v4 = vld [vmem:[#allocation2 + $0x80] sm:$0x1] }
 0x245   : > { %3628 = vrot.lane.b32.xlu0 %v6244_v53, %s6329_s15  ;;  %v2892_v23 = vsel %vm6563_vm12, %v2887_v46, %v2891_v21  ;;  %v2859_v11 = vshrl.u32 %v2672_v7, 16  ;;  %2618 = vrot.lane.b32.xlu1 %v6243_v33, %s6331_s20  ;;  %v2852_v13 = vor.u32 %v2851_v36, %v2848_v27  ;;  %v2108_v44 = vpop.permute.xlu1 %2107  ;;  %v2918_v28 = vshrl.u32 %v2680_v54, 16  ;;  %v2678_v7 = vld [vmem:[#allocation2 + $0x70] sm:$0xf]  ;;  %s5552_s15 = sshll.u32 %s419_s18, 6 }
 0x246   : > { %v5696_v8 = vcombine.low %v2882_v38, %v2892_v23  ;;  %v4078_v20 = vrot.slane %v4077_v35, 4  ;;  %v2867_v61 = vrot.slane %v2865_v58, 5  ;;  %v4088_v9 = vrot.slane %v4087_v15, 4  ;;  %2146 = vst.msk [vmem:[#allocation3 + $0xf0] sm:$0xff] %vm2135_vm1, %v2108_v44  ;;  %v2686_v23 = vld [vmem:[#allocation2 + $0x90] sm:$0xf] }
 0x247   : > { %v2857_v18 = vrot.slane %v2855_v50, 5  ;;  %v2861_v32 = vrot.slane %v2859_v11, 4  ;;  %v2853_v53 = vrot.slane %v2852_v13, 4  ;;  %v2921_v51 = vshll.u32 %v2680_v54, 16  ;;  %2470 = vst.msk [vmem:[#allocation3 + $0xf0] sm:$0xff] %vm2459_vm2, %v7655_v12 }
 0x248   : > { %3156 = vst.msk [vmem:[#allocation3 + $0xb0] sm:$0xff] %vm497_vm0, %v5696_v8  ;;  %v4083_v21 = vsel %vm6563_vm12, %v4078_v20, %v4082_v59  ;;  %v2927_v49 = vshll.u32 %v2681_v41, 16  ;;  %v4093_v55 = vsel %vm6563_vm12, %v4088_v9, %v4092_v60  ;;  %v2920_v45 = vrot.slane %v2918_v28, 4  ;;  %v2688_v9 = vld [vmem:[#allocation2 + $0x98] sm:$0x1] }
 0x249   : > { %3476 = vst.msk [vmem:[#allocation3 + $0xb0] sm:$0xff] %vm2135_vm1, %v7505_v19  ;;  %v2862_v38 = vor.u32 %v2861_v32, %v2857_v18  ;;  %v2931_v3 = vshrl.u32 %v2681_v41, 16  ;;  %v5768_v48 = vcombine.low %v4083_v21, %v4093_v55  ;;  %v2858_v46 = vsel %vm6563_vm12, %v2853_v53, %v2857_v18  ;;  %v2609_v5 = vpop.permute.xlu1 %2608  ;;  %v2687_v41 = vld [vmem:[#allocation2 + $0x94] sm:$0xf] }
 0x24a   : > { %3653 = vst.msk [vmem:[#allocation3 + $0xb0] sm:$0xff] %vm2459_vm2, %v7572_v63  ;;  %v2923_v59 = vrot.slane %v2921_v51, 5  ;;  %v2929_v12 = vrot.slane %v2927_v49, 5  ;;  %v2937_v35 = vshll.u32 %v2682_v4, 16  ;;  %v2894_v27 = vshrl.u32 %v2677_v2, 16 }
 0x24b   : > { %v2863_v33 = vrot.slane %v2862_v38, 4  ;;  %v2933_v19 = vrot.slane %v2931_v3, 4  ;;  %4197 = vst.msk [vmem:[#allocation3 + $0xb0] sm:$0xff] %vm2636_vm4, %v4157_v47  ;;  %2647 = vst.msk [vmem:[#allocation3 + $0xf0] sm:$0xff] %vm2636_vm4, %v2609_v5  ;;  %4172 = vrot.lane.b32.xlu0 %v5768_v48, %s6331_s20  ;;  %v2897_v36 = vshll.u32 %v2677_v2, 16  ;;  %v2913_v58 = vshll.u32 %v2679_v52, 16 }
 0x24c   : > { %v2924_v60 = vor.u32 %v2923_v59, %v2920_v45  ;;  %v2903_v54 = vshll.u32 %v2678_v7, 16  ;;  %v2939_v50 = vrot.slane %v2937_v35, 5  ;;  %v2896_v11 = vrot.slane %v2894_v27, 4  ;;  %v2683_v47 = vld [vmem:[#allocation2 + $0x84] sm:$0xf] }
 0x24d   : > { %v2868_v63 = vsel %vm6563_vm12, %v2863_v33, %v2867_v61  ;;  %v2934_v15 = vor.u32 %v2933_v19, %v2929_v12  ;;  %v2899_v13 = vrot.slane %v2897_v36, 5  ;;  %v2915_v44 = vrot.slane %v2913_v58, 5  ;;  %v7712_v18 = vpop.f32.mrb[40].mxu0  ;;  %v2684_v27 = vld [vmem:[#allocation2 + $0x88] sm:$0xf]  ;;  %v3444_v58 = vpop.permute.xlu0 %3443 }
 0x24e   : > { %v5695_v8 = vcombine.low %v2858_v46, %v2868_v63  ;;  %v2925_v20 = vrot.slane %v2924_v60, 4  ;;  %v2905_v4 = vrot.slane %v2903_v54, 5  ;;  %v2907_v28 = vshrl.u32 %v2678_v7, 16  ;;  %v7714_v53 = vpop.f32.mrb[41].mxu0  ;;  %v2685_v7 = vld [vmem:[#allocation2 + $0x8c] sm:$0x1] }
 0x24f   : > { %v2935_v32 = vrot.slane %v2934_v15, 4  ;;  %v2966_v21 = vshrl.u32 %v2686_v23, 16  ;;  %v2900_v51 = vor.u32 %v2899_v13, %v2896_v11  ;;  %v2969_v49 = vshll.u32 %v2686_v23, 16  ;;  %v7719_v55 = vpop.f32.mrb[42].mxu0  ;;  %v2692_v23 = vld [vmem:[#allocation2 + $0xa8] sm:$0xf] }
 0x250   : > { %3155 = vst.msk [vmem:[#allocation3 + $0x98] sm:$0xff] %vm497_vm0, %v5695_v8  ;;  %v2930_v61 = vsel %vm6563_vm12, %v2925_v20, %v2929_v12  ;;  %v2975_v2 = vshll.u32 %v2687_v41, 16  ;;  %v2909_v45 = vrot.slane %v2907_v28, 4  ;;  %v2979_v52 = vshrl.u32 %v2687_v41, 16  ;;  %v7725_v48 = vpop.f32.mrb[43].mxu0 }
 0x251   : > { %3475 = vst.msk [vmem:[#allocation3 + $0x98] sm:$0xff] %vm2135_vm1, %v7534_v31  ;;  %v2940_v38 = vsel %vm6563_vm12, %v2935_v32, %v2939_v50  ;;  %v2968_v3 = vrot.slane %v2966_v21, 4  ;;  %v2901_v59 = vrot.slane %v2900_v51, 4  ;;  %v2971_v12 = vrot.slane %v2969_v49, 5  ;;  %v2694_v49 = vld [vmem:[#allocation2 + $0xb0] sm:$0x1] }
 0x252   : > { %3652 = vst.msk [vmem:[#allocation3 + $0x98] sm:$0xff] %vm2459_vm2, %v7436_v6  ;;  %v5698_v46 = vcombine.low %v2930_v61, %v2940_v38  ;;  %v2977_v5 = vrot.slane %v2975_v2, 5  ;;  %v2910_v31 = vor.u32 %v2909_v45, %v2905_v4  ;;  %v2981_v33 = vrot.slane %v2979_v52, 4  ;;  %v2689_v2 = vld [vmem:[#allocation2 + $0x9c] sm:$0xf] }
 0x253   : > { %4196 = vst.msk [vmem:[#allocation3 + $0x98] sm:$0xff] %vm2636_vm4, %v7563_v43  ;;  %v2985_v19 = vshll.u32 %v2688_v9, 16  ;;  %v2942_v35 = vshrl.u32 %v2683_v47, 16  ;;  %v2906_v60 = vsel %vm6563_vm12, %v2901_v59, %v2905_v4  ;;  %v2972_v36 = vor.u32 %v2971_v12, %v2968_v3  ;;  %v2693_v4 = vld [vmem:[#allocation2 + $0xac] sm:$0xf] }
 0x254   : > { %3158 = vst.msk [vmem:[#allocation3 + $0xe0] sm:$0xff] %vm497_vm0, %v5698_v46  ;;  %v2945_v6 = vshll.u32 %v2683_v47, 16  ;;  %v2961_v54 = vshll.u32 %v2685_v7, 16  ;;  %v2911_v63 = vrot.slane %v2910_v31, 4  ;;  %v2982_v43 = vor.u32 %v2981_v33, %v2977_v5  ;;  %v2691_v3 = vld [vmem:[#allocation2 + $0xa4] sm:$0x1]  ;;  %v3442_v46 = vpop.permute.xlu0 %3441 }
 0x255   : > { %3478 = vst.msk [vmem:[#allocation3 + $0xe0] sm:$0xff] %vm2135_vm1, %v7613_v42  ;;  %v2987_v15 = vrot.slane %v2985_v19, 5  ;;  %v2944_v50 = vrot.slane %v2942_v35, 4  ;;  %v2973_v11 = vrot.slane %v2972_v36, 4  ;;  %v2951_v20 = vshll.u32 %v2684_v27, 16  ;;  %v4516_v59 = vld [vmem:[#allocation3 + $0xb0] sm:$0xff] }
 0x256   : > { %3655 = vst.msk [vmem:[#allocation3 + $0xe0] sm:$0xff] %vm2459_vm2, %v7687_v14  ;;  %v2947_v41 = vrot.slane %v2945_v6, 5  ;;  %v2963_v8 = vrot.slane %v2961_v54, 5  ;;  %v2916_v13 = vsel %vm6563_vm12, %v2911_v63, %v2915_v44  ;;  %v2983_v9 = vrot.slane %v2982_v43, 4  ;;  %v4512_v31 = vld [vmem:[#allocation3 + $0x90] sm:$0xff] }
 0x257   : > { %v2955_v32 = vshrl.u32 %v2684_v27, 16  ;;  %v3014_v28 = vshrl.u32 %v2692_v23, 16  ;;  %v5697_v21 = vcombine.low %v2906_v60, %v2916_v13  ;;  %v2978_v42 = vsel %vm6563_vm12, %v2973_v11, %v2977_v5  ;;  %v2690_v60 = vld [vmem:[#allocation2 + $0xa0] sm:$0xf] }
 0x258   : > { %v2948_v61 = vor.u32 %v2947_v41, %v2944_v50  ;;  %v2953_v51 = vrot.slane %v2951_v20, 5  ;;  %v2988_v14 = vsel %vm6563_vm12, %v2983_v9, %v2987_v15  ;;  %v3017_v45 = vshll.u32 %v2692_v23, 16 }
 0x259   : > { %v2957_v47 = vrot.slane %v2955_v32, 4  ;;  %v3016_v38 = vrot.slane %v3014_v28, 4  ;;  %3157 = vst.msk [vmem:[#allocation3 + $0xc8] sm:$0xff] %vm497_vm0, %v5697_v21  ;;  %v5700_v52 = vcombine.low %v2978_v42, %v2988_v14  ;;  %v3023_v12 = vshll.u32 %v2693_v4, 16  ;;  %v2697_v32 = vld [vmem:[#allocation2 + $0xbc] sm:$0x1]  ;;  %v7762_v21 = vpop.permute.xlu0 %3622 }
 0x25a   : > { %v4513_v44 = vld [vmem:[#allocation3 + $0x98] sm:$0xff]  ;;  %v2949_v7 = vrot.slane %v2948_v61, 4  ;;  %v3027_v5 = vshrl.u32 %v2693_v4, 16  ;;  %3477 = vst.msk [vmem:[#allocation3 + $0xc8] sm:$0xff] %vm2135_vm1, %v7636_v26  ;;  %v3019_v19 = vrot.slane %v3017_v45, 5  ;;  %v3033_v35 = vshll.u32 %v2694_v49, 16 }
 0x25b   : > { %4814 = vmatprep.mubr.bf16.mxu1 %v4513_v44  ;;  %v2958_v33 = vor.u32 %v2957_v47, %v2953_v51  ;;  %v2990_v27 = vshrl.u32 %v2689_v2, 16  ;;  %3654 = vst.msk [vmem:[#allocation3 + $0xc8] sm:$0xff] %vm2459_vm2, %v7548_v56  ;;  %v3025_v6 = vrot.slane %v3023_v12, 5  ;;  %v2993_v23 = vshll.u32 %v2689_v2, 16  ;;  %v2695_v26 = vld [vmem:[#allocation2 + $0xb4] sm:$0xf] }
 0x25c   : > { %4815 = vmatmul.mubr.bf16.gmra.mrb[24].mxu1 %v4512_v31  ;;  %3160 = vst.msk [vmem:[#allocation3 + $0x110] sm:$0xff] %vm497_vm0, %v5700_v52  ;;  %v2954_v36 = vsel %vm6563_vm12, %v2949_v7, %v2953_v51  ;;  %v3029_v54 = vrot.slane %v3027_v5, 4  ;;  %v2106_v43 = vpop.permute.xlu1 %2105  ;;  %v3020_v15 = vor.u32 %v3019_v19, %v3016_v38  ;;  %v3035_v56 = vrot.slane %v3033_v35, 5  ;;  %v2696_v49 = vld [vmem:[#allocation2 + $0xb8] sm:$0xf]  ;;  %v4515_v44 = vld [vmem:[#allocation3 + $0xa8] sm:$0xff] }
 0x25d   : > { %4198 = vst.msk [vmem:[#allocation3 + $0xc8] sm:$0xff] %vm2636_vm4, %v7672_v24  ;;  %v2959_v63 = vrot.slane %v2958_v33, 4  ;;  %4822 = vmatprep.mubr.bf16.mxu1 %v4516_v59  ;;  %v2992_v50 = vrot.slane %v2990_v27, 4  ;;  %v2995_v41 = vrot.slane %v2993_v23, 5  ;;  %v3009_v20 = vshll.u32 %v2691_v3, 16 }
 0x25e   : > { %3480 = vst.msk [vmem:[#allocation3 + $0x110] sm:$0xff] %vm2135_vm1, %v3444_v58  ;;  %2145 = vst.msk [vmem:[#allocation3 + $0xd8] sm:$0xff] %vm2135_vm1, %v2106_v43  ;;  %v3030_v11 = vor.u32 %v3029_v54, %v3025_v6  ;;  %v2999_v13 = vshll.u32 %v2690_v60, 16  ;;  %v3021_v24 = vrot.slane %v3020_v15, 4  ;;  %v3003_v58 = vshrl.u32 %v2690_v60, 16 }
 0x25f   : > { %v2964_v9 = vsel %vm6563_vm12, %v2959_v63, %v2963_v8  ;;  %2469 = vst.msk [vmem:[#allocation3 + $0xd8] sm:$0xff] %vm2459_vm2, %v7668_v1  ;;  %v3038_v4 = vshrl.u32 %v2695_v26, 16  ;;  %v2996_v61 = vor.u32 %v2995_v41, %v2992_v50  ;;  %v3011_v51 = vrot.slane %v3009_v20, 5  ;;  %v2698_v47 = vld [vmem:[#allocation2 + $0xc0] sm:$0xf] }
 0x260   : > { %v5699_v28 = vcombine.low %v2954_v36, %v2964_v9  ;;  %2646 = vst.msk [vmem:[#allocation3 + $0xd8] sm:$0xff] %vm2636_vm4, %v7574_v25  ;;  %v3031_v42 = vrot.slane %v3030_v11, 4  ;;  %v3026_v8 = vsel %vm6563_vm12, %v3021_v24, %v3025_v6  ;;  %v3001_v2 = vrot.slane %v2999_v13, 5  ;;  %v2699_v5 = vld [vmem:[#allocation2 + $0xc4] sm:$0xf]  ;;  %v2436_v23 = vpop.permute.xlu1 %2435 }
 0x261   : > { %v3005_v14 = vrot.slane %v3003_v58, 4  ;;  %v3040_v1 = vrot.slane %v3038_v4, 4  ;;  %v2997_v45 = vrot.slane %v2996_v61, 4  ;;  %v3041_v25 = vshll.u32 %v2695_v26, 16  ;;  %v2700_v27 = vld [vmem:[#allocation2 + $0xc8] sm:$0x1] }
 0x262   : > { %3159 = vst.msk [vmem:[#allocation3 + $0xf8] sm:$0xff] %vm497_vm0, %v5699_v28  ;;  %v3036_v38 = vsel %vm6563_vm12, %v3031_v42, %v3035_v56  ;;  %v3057_v3 = vshll.u32 %v2697_v32, 16  ;;  %v3047_v59 = vshll.u32 %v2696_v49, 16  ;;  %v3051_v12 = vshrl.u32 %v2696_v49, 16  ;;  %v4251_v56 = vld [vmem:[#allocation2 + $0xcc] sm:$0xe] }
 0x263   : > { %3479 = vst.msk [vmem:[#allocation3 + $0xf8] sm:$0xff] %vm2135_vm1, %v3442_v46  ;;  %v5702_v52 = vcombine.low %v3026_v8, %v3036_v38  ;;  %v3006_v7 = vor.u32 %v3005_v14, %v3001_v2  ;;  %v3002_v33 = vsel %vm6563_vm12, %v2997_v45, %v3001_v2  ;;  %v3043_v19 = vrot.slane %v3041_v25, 5  ;;  %v4252_v13 = vld [vmem:[#allocation2 + $0xd0] sm:$0xf]  ;;  %v4253_v9 = vld [vmem:[#allocation2 + $0xd4] sm:$0x1] }
 0x264   : > { %3656 = vst.msk [vmem:[#allocation3 + $0xf8] sm:$0xff] %vm2459_vm2, %v7661_v39  ;;  %4823 = vmatmul.mubr.bf16.gmra.mrb[28].mxu1 %v4515_v44  ;;  %v4519_v31 = vld [vmem:[#allocation3 + $0xc8] sm:$0xff]  ;;  %v3059_v35 = vrot.slane %v3057_v3, 5  ;;  %v3062_v60 = vshrl.u32 %v2698_v47, 16  ;;  %v3049_v36 = vrot.slane %v3047_v59, 5  ;;  %v3053_v6 = vrot.slane %v3051_v12, 4 }
 0x265   : > { %4830 = vmatprep.mubr.bf16.mxu1 %v4519_v31  ;;  %3162 = vst.msk [vmem:[#allocation3 + $0x140] sm:$0xff] %vm497_vm0, %v5702_v52  ;;  %v3007_v46 = vrot.slane %v3006_v7, 4  ;;  %v3065_v54 = vshll.u32 %v2698_v47, 16  ;;  %v3044_v63 = vor.u32 %v3043_v19, %v3040_v1  ;;  %v3071_v43 = vshll.u32 %v2699_v5, 16  ;;  %v4518_v47 = vld [vmem:[#allocation3 + $0xc0] sm:$0xff]  ;;  %v2434_v25 = vpop.permute.xlu1 %2433 }
 0x266   : > { %v4163_v26 = vpop.permute.xlu0 %4162  ;;  %v3064_v39 = vrot.slane %v3062_v60, 4  ;;  %v3075_v15 = vshrl.u32 %v2699_v5, 16  ;;  %v3054_v11 = vor.u32 %v3053_v6, %v3049_v36  ;;  %v3081_v20 = vshll.u32 %v2700_v27, 16 }
 0x267   : > { %4200 = vst.msk [vmem:[#allocation3 + $0xf8] sm:$0xff] %vm2636_vm4, %v4163_v26  ;;  %v3012_v50 = vsel %vm6563_vm12, %v3007_v46, %v3011_v51  ;;  %v3067_v41 = vrot.slane %v3065_v54, 5  ;;  %v3045_v58 = vrot.slane %v3044_v63, 4  ;;  %v3073_v32 = vrot.slane %v3071_v43, 5  ;;  %v4521_v26 = vld [vmem:[#allocation3 + $0xd8] sm:$0xff] }
 0x268   : > { %v5701_v24 = vcombine.low %v3002_v33, %v3012_v50  ;;  %v3077_v4 = vrot.slane %v3075_v15, 4  ;;  %v3055_v28 = vrot.slane %v3054_v11, 4  ;;  %v3083_v61 = vrot.slane %v3081_v20, 5  ;;  %v4524_v15 = vld [vmem:[#allocation3 + $0xf0] sm:$0xff] }
 0x269   : > { %v3068_v42 = vor.u32 %v3067_v41, %v3064_v39  ;;  %v5784_v49 = vrot.slane %v4251_v56, 9  ;;  %v3050_v2 = vsel %vm6563_vm12, %v3045_v58, %v3049_v36  ;;  %v4409_v14 = vrot.slane %v4252_v13, 5 }
 0x26a   : > { %v3621_v8 = vpop.permute.xlu0 %3620  ;;  %3161 = vst.msk [vmem:[#allocation3 + $0x128] sm:$0xff] %vm497_vm0, %v5701_v24  ;;  %v3078_v51 = vor.u32 %v3077_v4, %v3073_v32  ;;  %v4412_v1 = vrot.slane %v4253_v9, 5  ;;  %v3060_v38 = vsel %vm6563_vm12, %v3055_v28, %v3059_v35 }
 0x26b   : > { %3657 = vst.msk [vmem:[#allocation3 + $0x110] sm:$0xff] %vm2459_vm2, %v3621_v8  ;;  %v3069_v45 = vrot.slane %v3068_v42, 4  ;;  %v5703_v3 = vcombine.low %v3050_v2, %v3060_v38  ;;  %v4410_v52 = vsel %vm6554_vm9, %v5784_v49, %v4409_v14  ;;  %v4411_v7 = vrot.slane %v4409_v14, 4 }
 0x26c   : > { %4831 = vmatmul.mubr.bf16.gmra.mrb[32].mxu1 %v4518_v47  ;;  %v3079_v44 = vrot.slane %v3078_v51, 4 }
 0x26d   : > { %v3074_v59 = vsel %vm6563_vm12, %v3069_v45, %v3073_v32  ;;  %3163 = vst.msk [vmem:[#allocation3 + $0x158] sm:$0xff] %vm497_vm0, %v5703_v3  ;;  %v4413_v5 = vsel %vm6554_vm9, %v4411_v7, %v4412_v1 }
 0x26e   : > { %v3084_v12 = vsel %vm6563_vm12, %v3079_v44, %v3083_v61  ;;  %v5800_v33 = vcombine.low %v4410_v52, %v4413_v5  ;;  %v4525_v39 = vld [vmem:[#allocation3 + $0xf8] sm:$0xff] }
 0x26f   : > { %v5704_v31 = vcombine.low %v3074_v59, %v3084_v12 }
 0x270   : > { %4493 = vst.msk [vmem:[#allocation3 + $0x178] sm:$0xff] %vm497_vm0, %v5800_v33 }
 0x271   : > { %3164 = vst.msk [vmem:[#allocation3 + $0x170] sm:$0xff] %vm497_vm0, %v5704_v31  ;;  %v2112_v19 = vpop.permute.xlu1 %2111 }
 0x272   : > { %2148 = vst.msk [vmem:[#allocation3 + $0x120] sm:$0xff] %vm2135_vm1, %v2112_v19 }
 0x273   : > { %2472 = vst.msk [vmem:[#allocation3 + $0x120] sm:$0xff] %vm2459_vm2, %v2436_v23 }
 0x275   : > { %v2613_v35 = vpop.permute.xlu1 %2612  ;;  %v7797_v27 = vpop.f32.mrb[44].mxu0 }
 0x276   : > { %v4161_v60 = vpop.permute.xlu0 %4160  ;;  %2649 = vst.msk [vmem:[#allocation3 + $0x120] sm:$0xff] %vm2636_vm4, %v2613_v35  ;;  %v7800_v29 = vpop.f32.mrb[45].mxu0 }
 0x277   : > { %4199 = vst.msk [vmem:[#allocation3 + $0xe0] sm:$0xff] %vm2636_vm4, %v4161_v60  ;;  %v7803_v10 = vpop.f32.mrb[46].mxu0  ;;  %v4541_v46 = vld [vmem:[#allocation3 + $0x178] sm:$0xff] }
 0x278   : > { %v7805_v36 = vpop.f32.mrb[47].mxu0  ;;  %6122 = vmatmul.mubr.msk.bf16.gmra.mrb[60].mxu0 %vm497_vm0, %v4541_v46 }
 0x27a   : > { %v3448_v6 = vpop.permute.xlu0 %3447 }
 0x27b   : > { %3482 = vst.msk [vmem:[#allocation3 + $0x140] sm:$0xff] %vm2135_vm1, %v3448_v6 }
 0x27d   : > { %v4530_v28 = vld [vmem:[#allocation3 + $0x120] sm:$0xff] }
 0x27e   : > { %v4522_v23 = vld [vmem:[#allocation3 + $0xe0] sm:$0xff] }
 0x27f   : > { %v3446_v54 = vpop.permute.xlu0 %3445  ;;  %4838 = vmatprep.mubr.bf16.mxu1 %v4522_v23 }
 0x280   : > { %3481 = vst.msk [vmem:[#allocation3 + $0x128] sm:$0xff] %vm2135_vm1, %v3446_v54  ;;  %v2110_v63 = vpop.permute.xlu1 %2109  ;;  %4839 = vmatmul.mubr.bf16.gmra.mrb[36].mxu1 %v4521_v26 }
 0x281   : > { %3658 = vst.msk [vmem:[#allocation3 + $0x128] sm:$0xff] %vm2459_vm2, %v7762_v21  ;;  %4846 = vmatprep.mubr.bf16.mxu1 %v4525_v39 }
 0x282   : > { %2147 = vst.msk [vmem:[#allocation3 + $0x108] sm:$0xff] %vm2135_vm1, %v2110_v63 }
 0x283   : > { %2471 = vst.msk [vmem:[#allocation3 + $0x108] sm:$0xff] %vm2459_vm2, %v2434_v25 }
 0x284   : > { %2648 = vst.msk [vmem:[#allocation3 + $0x108] sm:$0xff] %vm2636_vm4, %v7681_v40  ;;  %v2438_v43 = vpop.permute.xlu1 %2437 }
 0x288   : > { %4847 = vmatmul.mubr.bf16.gmra.mrb[40].mxu1 %v4524_v15  ;;  %v2615_v50 = vpop.permute.xlu1 %2614 }
 0x289   : > { %v4167_v56 = vpop.permute.xlu0 %4166 }
 0x28a   : > { %4202 = vst.msk [vmem:[#allocation3 + $0x128] sm:$0xff] %vm2636_vm4, %v4167_v56 }
 0x28b   : > { %v4527_v13 = vld [vmem:[#allocation3 + $0x108] sm:$0xff] }
 0x28d   : > { %v4165_v11 = vpop.permute.xlu0 %4164 }
 0x28e   : > { %4201 = vst.msk [vmem:[#allocation3 + $0x110] sm:$0xff] %vm2636_vm4, %v4165_v11 }
 0x291   : > { %v2116_v21 = vpop.permute.xlu1 %2115  ;;  %v3625_v41 = vpop.permute.xlu0 %3624  ;;  %v4531_v40 = vld [vmem:[#allocation3 + $0x128] sm:$0xff] }
 0x292   : > { %2150 = vst.msk [vmem:[#allocation3 + $0x150] sm:$0xff] %vm2135_vm1, %v2116_v21  ;;  %v7858_v21 = vld [vmem:[%s8125_s6] ss:$0 sm:$0xff] }
 0x293   : > { %3659 = vst.msk [vmem:[#allocation3 + $0x140] sm:$0xff] %vm2459_vm2, %v3625_v41 }
 0x295   : > { %v4528_v20 = vld [vmem:[#allocation3 + $0x110] sm:$0xff]  ;;  %v3627_v24 = vpop.permute.xlu0 %3626 }
 0x296   : > { %4854 = vmatprep.mubr.bf16.mxu1 %v4528_v20 }
 0x297   : > { %4855 = vmatmul.mubr.bf16.gmra.mrb[44].mxu1 %v4527_v13 }
 0x298   : > { %4862 = vmatprep.mubr.bf16.mxu1 %v4531_v40 }
 0x299   : > { %v2114_v9 = vpop.permute.xlu1 %2113 }
 0x29a   : > { %2149 = vst.msk [vmem:[#allocation3 + $0x138] sm:$0xff] %vm2135_vm1, %v2114_v9 }
 0x29b   : > { %2473 = vst.msk [vmem:[#allocation3 + $0x138] sm:$0xff] %vm2459_vm2, %v2438_v43  ;;  %v7823_v58 = vpop.f32.mrb[48].mxu0 }
 0x29c   : > { %2650 = vst.msk [vmem:[#allocation3 + $0x138] sm:$0xff] %vm2636_vm4, %v2615_v50  ;;  %v7825_v32 = vpop.f32.mrb[49].mxu0 }
 0x29d   : > { %v7827_v4 = vpop.f32.mrb[50].mxu0 }
 0x29e   : > { %v7829_v42 = vpop.f32.mrb[51].mxu0 }
 0x29f   : > { %4863 = vmatmul.mubr.bf16.gmra.mrb[48].mxu1 %v4530_v28 }
 0x2a0   : > { %v2440_v61 = vpop.permute.xlu1 %2439 }
 0x2a1   : > { %2474 = vst.msk [vmem:[#allocation3 + $0x150] sm:$0xff] %vm2459_vm2, %v2440_v61 }
 0x2a2   : > { %v3450_v49 = vpop.permute.xlu0 %3449 }
 0x2a3   : > { %3483 = vst.msk [vmem:[#allocation3 + $0x158] sm:$0xff] %vm2135_vm1, %v3450_v49  ;;  %v4533_v38 = vld [vmem:[#allocation3 + $0x138] sm:$0xff] }
 0x2a4   : > { %3660 = vst.msk [vmem:[#allocation3 + $0x158] sm:$0xff] %vm2459_vm2, %v3627_v24  ;;  %v2617_v8 = vpop.permute.xlu1 %2616 }
 0x2a5   : > { %2651 = vst.msk [vmem:[#allocation3 + $0x150] sm:$0xff] %vm2636_vm4, %v2617_v8 }
 0x2a8   : > { %v2442_v51 = vpop.permute.xlu1 %2441 }
 0x2aa   : > { %v4169_v2 = vpop.permute.xlu0 %4168 }
 0x2ab   : > { %4203 = vst.msk [vmem:[#allocation3 + $0x140] sm:$0xff] %vm2636_vm4, %v4169_v2 }
 0x2ac   : > { %v4536_v52 = vld [vmem:[#allocation3 + $0x150] sm:$0xff] }
 0x2af   : > { %v4171_v14 = vpop.permute.xlu0 %4170 }
 0x2b0   : > { %4204 = vst.msk [vmem:[#allocation3 + $0x158] sm:$0xff] %vm2636_vm4, %v4171_v14 }
 0x2b2   : > { %v4534_v1 = vld [vmem:[#allocation3 + $0x140] sm:$0xff] }
 0x2b3   : > { %v3452_v47 = vpop.permute.xlu0 %3451  ;;  %4870 = vmatprep.mubr.bf16.mxu1 %v4534_v1  ;;  %v2118_v45 = vpop.permute.xlu1 %2117 }
 0x2b4   : > { %3484 = vst.msk [vmem:[#allocation3 + $0x170] sm:$0xff] %vm2135_vm1, %v3452_v47  ;;  %4871 = vmatmul.mubr.bf16.gmra.mrb[52].mxu1 %v4533_v38  ;;  %2151 = vst.msk [vmem:[#allocation3 + $0x168] sm:$0xff] %vm2135_vm1, %v2118_v45 }
 0x2b5   : > { %2475 = vst.msk [vmem:[#allocation3 + $0x168] sm:$0xff] %vm2459_vm2, %v2442_v51 }
 0x2b7   : > { %v3629_v25 = vpop.permute.xlu0 %3628  ;;  %v4537_v3 = vld [vmem:[#allocation3 + $0x158] sm:$0xff]  ;;  %v2619_v44 = vpop.permute.xlu1 %2618 }
 0x2b8   : > { %3661 = vst.msk [vmem:[#allocation3 + $0x170] sm:$0xff] %vm2459_vm2, %v3629_v25  ;;  %4878 = vmatprep.mubr.bf16.mxu1 %v4537_v3 }
 0x2b9   : > { %2652 = vst.msk [vmem:[#allocation3 + $0x168] sm:$0xff] %vm2636_vm4, %v2619_v44 }
 0x2bc   : > { %4879 = vmatmul.mubr.bf16.gmra.mrb[56].mxu1 %v4536_v52 }
 0x2bd   : > { %v4173_v7 = vpop.permute.xlu0 %4172  ;;  %v5919_v59 = vpop.f32.mrb[0].mxu1 }
 0x2be   : > { %4205 = vst.msk [vmem:[#allocation3 + $0x170] sm:$0xff] %vm2636_vm4, %v4173_v7  ;;  %v5920_v12 = vpop.f32.mrb[1].mxu1 }
 0x2bf   : > { %v5921_v5 = vadd.f32 %v5920_v12, %v5919_v59  ;;  %v5922_v31 = vpop.f32.mrb[2].mxu1 }
 0x2c0   : > { %v5923_v33 = vpop.f32.mrb[3].mxu1  ;;  %v4539_v54 = vld [vmem:[#allocation3 + $0x168] sm:$0xff] }
 0x2c1   : > { %v4930_v19 = vadd.f32 %v5921_v5, %v7518_v17  ;;  %v5924_v35 = vadd.f32 %v5923_v33, %v5922_v31 }
 0x2c3   : > { %v4933_v60 = vadd.f32 %v5924_v35, %v7538_v62 }
 0x2c5   : > { %v4540_v46 = vld [vmem:[#allocation3 + $0x170] sm:$0xff]  ;;  %v5925_v6 = vpop.f32.mrb[4].mxu1  ;;  %v5064_v41 = vmul.f32 %v7858_v21, %v4933_v60 }
 0x2c6   : > { %4886 = vmatprep.mubr.bf16.mxu1 %v4540_v46  ;;  %v5926_v23 = vpop.f32.mrb[5].mxu1 }
 0x2c7   : > { %4887 = vmatmul.mubr.bf16.gmra.mrb[60].mxu1 %v4539_v54  ;;  %v5927_v26 = vadd.f32 %v5926_v23, %v5925_v6  ;;  %v5928_v63 = vpop.f32.mrb[6].mxu1 }
 0x2c8   : > { %v5929_v39 = vpop.f32.mrb[7].mxu1 }
 0x2c9   : > { %v4938_v43 = vadd.f32 %v7512_v37, %v5927_v26  ;;  %v5930_v15 = vadd.f32 %v5929_v39, %v5928_v63  ;;  %v5063_v37 = vmul.f32 %v7858_v21, %v4930_v19 }
 0x2cb   : > { %v4941_v56 = vadd.f32 %v7528_v22, %v5930_v15  ;;  %v7865_v22 = vld [vmem:[%s8126_s7] ss:$0 sm:$0xff]  ;;  %v5065_v8 = vmul.f32 %v7858_v21, %v4938_v43 }
 0x2cc   : > { %v5103_v20 = vadd.f32 %v7865_v22, %v5064_v41  ;;  %v5102_v13 = vadd.f32 %v7865_v22, %v5063_v37 }
 0x2cd   : > { %v7847_v50 = vpop.f32.mrb[52].mxu0  ;;  %v5066_v28 = vmul.f32 %v7858_v21, %v4941_v56  ;;  %v5104_v45 = vadd.f32 %v7865_v22, %v5065_v8 }
 0x2ce   : > { %v7849_v17 = vpop.f32.mrb[53].mxu0  ;;  %v5135_v40 = vmax.f32 %v5103_v20, 0.0  ;;  %v5134_v9 = vmax.f32 %v5102_v13, 0.0 }
 0x2cf   : > { %v7851_v11 = vpop.f32.mrb[54].mxu0  ;;  %v5105_v1 = vadd.f32 %v7865_v22, %v5066_v28  ;;  %v5136_v59 = vmax.f32 %v5104_v45, 0.0 }
 0x2d0   : > { %v7853_v62 = vpop.f32.mrb[55].mxu0  ;;  %v7869_v24 = vpack.c.bf16 %v5135_v40, %v5134_v9 }
 0x2d1   : > { %v5137_v3 = vmax.f32 %v5105_v1, 0.0 }
 0x2d3   : > { %v7881_v60 = vpack.c.bf16 %v5137_v3, %v5136_v59 }
 0x2e9   : > { %v5931_v61 = vpop.f32.mrb[8].mxu1 }
 0x2ea   : > { %v5932_v49 = vpop.f32.mrb[9].mxu1 }
 0x2eb   : > { %v5933_v2 = vadd.f32 %v5932_v49, %v5931_v61  ;;  %v5934_v51 = vpop.f32.mrb[10].mxu1 }
 0x2ec   : > { %v5935_v14 = vpop.f32.mrb[11].mxu1 }
 0x2ed   : > { %v4946_v47 = vadd.f32 %v5933_v2, %v7615_v57  ;;  %v5936_v38 = vadd.f32 %v5935_v14, %v5934_v51 }
 0x2ef   : > { %v4949_v25 = vadd.f32 %v5936_v38, %v7625_v34  ;;  %v5067_v12 = vmul.f32 %v7858_v21, %v4946_v47 }
 0x2f1   : > { %v5068_v44 = vmul.f32 %v7858_v21, %v4949_v25  ;;  %v5937_v52 = vpop.f32.mrb[12].mxu1  ;;  %v5106_v34 = vadd.f32 %v7865_v22, %v5067_v12 }
 0x2f2   : > { %v5938_v7 = vpop.f32.mrb[13].mxu1 }
 0x2f3   : > { %v5939_v5 = vadd.f32 %v5938_v7, %v5937_v52  ;;  %v5940_v31 = vpop.f32.mrb[14].mxu1  ;;  %v5107_v19 = vadd.f32 %v7865_v22, %v5068_v44  ;;  %v5138_v54 = vmax.f32 %v5106_v34, 0.0 }
 0x2f4   : > { %v5941_v33 = vpop.f32.mrb[15].mxu1 }
 0x2f5   : > { %v4954_v57 = vadd.f32 %v7607_v30, %v5939_v5  ;;  %v5942_v35 = vadd.f32 %v5941_v33, %v5940_v31  ;;  %v5139_v6 = vmax.f32 %v5107_v19, 0.0 }
 0x2f7   : > { %v4957_v46 = vadd.f32 %v7621_v16, %v5942_v35  ;;  %v7885_v23 = vpack.c.bf16 %v5139_v6, %v5138_v54  ;;  %v5069_v15 = vmul.f32 %v7858_v21, %v4954_v57 }
 0x2f9   : > { %v5070_v30 = vmul.f32 %v7858_v21, %v4957_v46  ;;  %v5108_v16 = vadd.f32 %v7865_v22, %v5069_v15 }
 0x2fb   : > { %v5109_v56 = vadd.f32 %v7865_v22, %v5070_v30  ;;  %v5140_v20 = vmax.f32 %v5108_v16, 0.0 }
 0x2fd   : > { %v5141_v41 = vmax.f32 %v5109_v56, 0.0 }
 0x2ff   : > { %v7899_v61 = vpack.c.bf16 %v5141_v41, %v5140_v20 }
 0x301   : > { %v7887_v26 = vpop.f32.mrb[56].mxu0 }
 0x302   : > { %v7889_v63 = vpop.f32.mrb[57].mxu0 }
 0x303   : > { %v7891_v39 = vpop.f32.mrb[58].mxu0 }
 0x304   : > { %v7893_v43 = vpop.f32.mrb[59].mxu0 }
 0x30d   : > { %v5943_v37 = vpop.f32.mrb[16].mxu1 }
 0x30e   : > { %v5944_v13 = vpop.f32.mrb[17].mxu1 }
 0x30f   : > { %v5945_v40 = vadd.f32 %v5944_v13, %v5943_v37  ;;  %v5946_v9 = vpop.f32.mrb[18].mxu1 }
 0x310   : > { %v5947_v28 = vpop.f32.mrb[19].mxu1 }
 0x311   : > { %v4962_v49 = vadd.f32 %v5945_v40, %v7714_v53  ;;  %v5948_v8 = vadd.f32 %v5947_v28, %v5946_v9 }
 0x313   : > { %v5071_v2 = vmul.f32 %v7858_v21, %v4962_v49  ;;  %v4965_v51 = vadd.f32 %v5948_v8, %v7725_v48 }
 0x315   : > { %v5110_v14 = vadd.f32 %v7865_v22, %v5071_v2  ;;  %v5072_v1 = vmul.f32 %v7858_v21, %v4965_v51  ;;  %v5949_v47 = vpop.f32.mrb[20].mxu1 }
 0x316   : > { %v5950_v38 = vpop.f32.mrb[21].mxu1 }
 0x317   : > { %v5111_v45 = vadd.f32 %v7865_v22, %v5072_v1  ;;  %v5951_v25 = vadd.f32 %v5950_v38, %v5949_v47  ;;  %v5952_v3 = vpop.f32.mrb[22].mxu1  ;;  %v5142_v52 = vmax.f32 %v5110_v14, 0.0 }
 0x318   : > { %v5953_v44 = vpop.f32.mrb[23].mxu1 }
 0x319   : > { %v5143_v7 = vmax.f32 %v5111_v45, 0.0  ;;  %v4970_v53 = vadd.f32 %v7712_v18, %v5951_v25  ;;  %v5954_v59 = vadd.f32 %v5953_v44, %v5952_v3  ;;  %v7920_v18 = vld [vmem:[%s8128_s9] sm:$0xff]  }
 0x31a   : > { %6049 = vmatprep.mubr.msk.bf16.mxu0 %vm497_vm0, %v7920_v18 }
 0x31b   : > { %v5073_v12 = vmul.f32 %v7858_v21, %v4970_v53  ;;  %v4973_v48 = vadd.f32 %v7719_v55, %v5954_v59  ;;  %v7910_v5 = vpack.c.bf16 %v5143_v7, %v5142_v52 }
 0x31d   : > { %v5074_v31 = vmul.f32 %v7858_v21, %v4973_v48  ;;  %v5112_v33 = vadd.f32 %v7865_v22, %v5073_v12 }
 0x31f   : > { %v5113_v19 = vadd.f32 %v7865_v22, %v5074_v31  ;;  %v5144_v35 = vmax.f32 %v5112_v33, 0.0 }
 0x321   : > { %v5145_v57 = vmax.f32 %v5113_v19, 0.0 }
 0x323   : > { %v7915_v34 = vpack.c.bf16 %v5145_v57, %v5144_v35 }
 0x32f   : > { %v5955_v55 = vpop.f32.mrb[24].mxu1 }
 0x330   : > { %v5956_v46 = vpop.f32.mrb[25].mxu1 }
 0x331   : > { %v5957_v6 = vadd.f32 %v5956_v46, %v5955_v55  ;;  %v5958_v54 = vpop.f32.mrb[26].mxu1 }
 0x332   : > { %v5959_v30 = vpop.f32.mrb[27].mxu1 }
 0x333   : > { %v4978_v15 = vadd.f32 %v5957_v6, %v7800_v29  ;;  %v5960_v56 = vadd.f32 %v5959_v30, %v5958_v54  ;;  %v5388_v6 = vld [vmem:[%s8129_s10] sm:$0xff] }
 0x334   : > { %5394 = vperm.xlu0 %6186, %v5388_v6  }
 0x335   : > { %v5075_v16 = vmul.f32 %v7858_v21, %v4978_v15  ;;  %v4981_v41 = vadd.f32 %v5960_v56, %v7805_v36  ;;  %v5391_v15 = vld [vmem:[%s8129_s10 + $0x18] sm:$0xff] }
 0x337   : > { %v5114_v37 = vadd.f32 %v7865_v22, %v5075_v16  ;;  %v5076_v20 = vmul.f32 %v7858_v21, %v4981_v41  ;;  %v5961_v13 = vpop.f32.mrb[28].mxu1  ;;  %v5390_v16 = vld [vmem:[%s8129_s10 + $0x10] sm:$0xff]  ;;  %v5219_v41 = vsel %vm497_vm0, %v7869_v24, 0  ;;  %v5423_v24 = vld [vmem:[%s8130_s11 + $0x18] sm:$0xff] }
 0x338   : > { %v5962_v40 = vpop.f32.mrb[29].mxu1  ;;  %5409 = vperm.xlu0 %6186, %v5391_v15  }
 0x339   : > { %v5115_v9 = vadd.f32 %v7865_v22, %v5076_v20  ;;  %v5963_v28 = vadd.f32 %v5962_v40, %v5961_v13  ;;  %v5964_v49 = vpop.f32.mrb[30].mxu1  ;;  %v5146_v2 = vmax.f32 %v5114_v37, 0.0  ;;  %v5421_v20 = vld [vmem:[%s8130_s11 + $0x8] sm:$0xff]  ;;  %v5420_v13 = vld [vmem:[%s8130_s11] sm:$0xff] }
 0x33a   : > { %v5965_v8 = vpop.f32.mrb[31].mxu1 }
 0x33b   : > { %v5147_v51 = vmax.f32 %v5115_v9, 0.0  ;;  %v4986_v29 = vadd.f32 %v7797_v27, %v5963_v28  ;;  %v5966_v14 = vadd.f32 %v5965_v8, %v5964_v49  ;;  %v5422_v8 = vld [vmem:[%s8130_s11 + $0x10] sm:$0xff] }
 0x33c   : > { %5431 = vperm.xlu0 %6186, %v5421_v20  }
 0x33d   : > { %v5077_v1 = vmul.f32 %v7858_v21, %v4986_v29  ;;  %v4989_v36 = vadd.f32 %v7803_v10, %v5966_v14  ;;  %v7933_v47 = vpack.c.bf16 %v5147_v51, %v5146_v2 }
 0x33f   : > { %v5116_v38 = vadd.f32 %v7865_v22, %v5077_v1  ;;  %v5078_v45 = vmul.f32 %v7858_v21, %v4989_v36  ;;  %v5967_v25 = vpop.f32.mrb[32].mxu1 }
 0x340   : > { %v5968_v3 = vpop.f32.mrb[33].mxu1  ;;  %5441 = vperm.xlu0 %6186, %v5423_v24  }
 0x341   : > { %v5117_v44 = vadd.f32 %v7865_v22, %v5078_v45  ;;  %v5969_v52 = vadd.f32 %v5968_v3, %v5967_v25  ;;  %v5970_v7 = vpop.f32.mrb[34].mxu1  ;;  %v5148_v59 = vmax.f32 %v5116_v38, 0.0 }
 0x342   : > { %v5971_v53 = vpop.f32.mrb[35].mxu1 }
 0x343   : > { %v5149_v27 = vmax.f32 %v5117_v44, 0.0  ;;  %v4994_v12 = vadd.f32 %v5969_v52, %v7825_v32  ;;  %v5972_v48 = vadd.f32 %v5971_v53, %v5970_v7  ;;  %v5389_v32 = vld [vmem:[%s8129_s10 + $0x8] sm:$0xff] }
 0x344   : > { %5399 = vperm.xlu1 %6187, %v5389_v32  }
 0x345   : > { %v5079_v10 = vmul.f32 %v7858_v21, %v4994_v12  ;;  %v4997_v31 = vadd.f32 %v5972_v48, %v7829_v42  ;;  %v7941_v33 = vpack.c.bf16 %v5149_v27, %v5148_v59 }
 0x347   : > { %v5118_v19 = vadd.f32 %v7865_v22, %v5079_v10  ;;  %v5080_v57 = vmul.f32 %v7858_v21, %v4997_v31 }
 0x348   : > { %5404 = vperm.xlu1 %6187, %v5390_v16  }
 0x349   : > { %v5119_v35 = vadd.f32 %v7865_v22, %v5080_v57  ;;  %v5150_v55 = vmax.f32 %v5118_v19, 0.0  ;;  %v5222_v19 = vsel %vm497_vm0, %v7881_v60, 0 }
 0x34b   : > { %v5151_v46 = vmax.f32 %v5119_v35, 0.0  ;;  %v7952_v54 = vpop.f32.mrb[60].mxu0 }
 0x34c   : > { %v7954_v30 = vpop.f32.mrb[61].mxu0  ;;  %5426 = vperm.xlu1 %6187, %v5420_v13  }
 0x34d   : > { %v5194_v42 = vpack.c.bf16 %v5151_v46, %v5150_v55  ;;  %v7959_v56 = vpop.f32.mrb[62].mxu0 }
 0x34e   : > { %v7967_v37 = vpop.f32.mrb[63].mxu0 }
 0x34f   : > { %6133 = vmatprep.subr.msk.bf16.mxu0 %vm497_vm0, %v5194_v42 }
 0x350   : > { %6034 = vmatpush3.bf16.xpose.msra.mxu0 %v5219_v41  ;;  %5436 = vperm.xlu1 %6187, %v5422_v8  }
 0x353   : > { %v5973_v40 = vpop.f32.mrb[36].mxu1 }
 0x354   : > { %v5974_v9 = vpop.f32.mrb[37].mxu1 }
 0x355   : > { %v5975_v28 = vadd.f32 %v5974_v9, %v5973_v40  ;;  %v5976_v49 = vpop.f32.mrb[38].mxu1 }
 0x356   : > { %v5977_v2 = vpop.f32.mrb[39].mxu1 }
 0x357   : > { %v5002_v51 = vadd.f32 %v7823_v58, %v5975_v28  ;;  %v5978_v29 = vadd.f32 %v5977_v2, %v5976_v49 }
 0x359   : > { %v5081_v14 = vmul.f32 %v7858_v21, %v5002_v51  ;;  %v5005_v1 = vadd.f32 %v7827_v4, %v5978_v29 }
 0x35b   : > { %v5120_v36 = vadd.f32 %v7865_v22, %v5081_v14  ;;  %v5082_v38 = vmul.f32 %v7858_v21, %v5005_v1  ;;  %v5979_v45 = vpop.f32.mrb[40].mxu1 }
 0x35c   : > { %v5980_v25 = vpop.f32.mrb[41].mxu1 }
 0x35d   : > { %v5121_v3 = vadd.f32 %v7865_v22, %v5082_v38  ;;  %v5981_v44 = vadd.f32 %v5980_v25, %v5979_v45  ;;  %v5982_v52 = vpop.f32.mrb[42].mxu1  ;;  %v5152_v53 = vmax.f32 %v5120_v36, 0.0  ;;  %v5228_v45 = vsel %vm497_vm0, %v7899_v61, 0 }
 0x35e   : > { %v5983_v7 = vpop.f32.mrb[43].mxu1 }
 0x35f   : > { %v5153_v58 = vmax.f32 %v5121_v3, 0.0  ;;  %v5010_v59 = vadd.f32 %v5981_v44, %v7849_v17  ;;  %v5984_v27 = vadd.f32 %v5983_v7, %v5982_v52 }
 0x361   : > { %v5083_v12 = vmul.f32 %v7858_v21, %v5010_v59  ;;  %v5013_v4 = vadd.f32 %v5984_v27, %v7853_v62  ;;  %v5195_v48 = vpack.c.bf16 %v5153_v58, %v5152_v53  ;;  %v5225_v62 = vsel %vm497_vm0, %v7885_v23, 0 }
 0x363   : > { %v5122_v10 = vadd.f32 %v7865_v22, %v5083_v12  ;;  %v5084_v31 = vmul.f32 %v7858_v21, %v5013_v4  ;;  %6134 = vmatprep.subr.msk.bf16.mxu0 %vm497_vm0, %v5195_v48 }
 0x364   : > { %6036 = vmatpush3.bf16.xpose.msra.mxu0 %v5222_v19 }
 0x365   : > { %v5123_v57 = vadd.f32 %v7865_v22, %v5084_v31  ;;  %v5154_v35 = vmax.f32 %v5122_v10, 0.0 }
 0x367   : > { %v5155_v17 = vmax.f32 %v5123_v57, 0.0 }
 0x369   : > { %v5196_v55 = vpack.c.bf16 %v5155_v17, %v5154_v35 }
 0x36a   : > { %v5985_v46 = vpop.f32.mrb[44].mxu1 }
 0x36b   : > { %v5986_v6 = vpop.f32.mrb[45].mxu1  ;;  %6135 = vmatprep.subr.msk.bf16.mxu0 %vm497_vm0, %v5196_v55 }
 0x36c   : > { %v5987_v32 = vadd.f32 %v5986_v6, %v5985_v46  ;;  %v5988_v42 = vpop.f32.mrb[46].mxu1  ;;  %6038 = vmatpush3.bf16.xpose.msra.mxu0 %v5225_v62 }
 0x36d   : > { %v5989_v15 = vpop.f32.mrb[47].mxu1 }
 0x36e   : > { %v5018_v16 = vadd.f32 %v7847_v50, %v5987_v32  ;;  %v5990_v60 = vadd.f32 %v5989_v15, %v5988_v42 }
 0x370   : > { %v5085_v41 = vmul.f32 %v7858_v21, %v5018_v16  ;;  %v5021_v20 = vadd.f32 %v7851_v11, %v5990_v60  ;;  %v5234_v16 = vsel %vm497_vm0, %v7915_v34, 0  ;;  %v5237_v34 = vsel %vm497_vm0, %v7933_v47, 0 }
 0x372   : > { %v5124_v13 = vadd.f32 %v7865_v22, %v5085_v41  ;;  %v5086_v40 = vmul.f32 %v7858_v21, %v5021_v20  ;;  %v5991_v9 = vpop.f32.mrb[48].mxu1 }
 0x373   : > { %v5992_v24 = vpop.f32.mrb[49].mxu1 }
 0x374   : > { %v5125_v28 = vadd.f32 %v7865_v22, %v5086_v40  ;;  %v5993_v23 = vadd.f32 %v5992_v24, %v5991_v9  ;;  %v5994_v49 = vpop.f32.mrb[50].mxu1  ;;  %v5156_v2 = vmax.f32 %v5124_v13, 0.0 }
 0x375   : > { %v5995_v8 = vpop.f32.mrb[51].mxu1 }
 0x376   : > { %v5157_v51 = vmax.f32 %v5125_v28, 0.0  ;;  %v5026_v50 = vadd.f32 %v5993_v23, %v7889_v63  ;;  %v5996_v29 = vadd.f32 %v5995_v8, %v5994_v49 }
 0x378   : > { %v5087_v14 = vmul.f32 %v7858_v21, %v5026_v50  ;;  %v5029_v11 = vadd.f32 %v5996_v29, %v7893_v43  ;;  %v5197_v1 = vpack.c.bf16 %v5157_v51, %v5156_v2  ;;  %v5231_v43 = vsel %vm497_vm0, %v7910_v5, 0  ;;  %v5167_v50 = vld [vmem:[%s426_s16 + $0x8] sm:$0xff]  ;;  %v5169_v29 = vld [vmem:[%s426_s16 + $0x18] sm:$0xff] }
 0x37a   : > { %v5126_v36 = vadd.f32 %v7865_v22, %v5087_v14  ;;  %v5088_v38 = vmul.f32 %v7858_v21, %v5029_v11  ;;  %6136 = vmatprep.subr.msk.bf16.mxu0 %vm497_vm0, %v5197_v1  ;;  %v5175_v1 = vpack.c.bf16 %v5169_v29, %v5167_v50 }
 0x37b   : > { %6040 = vmatpush3.bf16.xpose.msra.mxu0 %v5228_v45  ;;  %v5173_v45 = vld [vmem:[%s426_s16 + $0x38] sm:$0xff] }
 0x37c   : > { %v5127_v25 = vadd.f32 %v7865_v22, %v5088_v38  ;;  %v5158_v3 = vmax.f32 %v5126_v36, 0.0  ;;  %v5168_v36 = vld [vmem:[%s426_s16 + $0x10] sm:$0xff]  ;;  %v5171_v38 = vld [vmem:[%s426_s16 + $0x28] sm:$0xff] }
 0x37e   : > { %v5159_v63 = vmax.f32 %v5127_v25, 0.0 }
 0x380   : > { %v5198_v44 = vpack.c.bf16 %v5159_v63, %v5158_v3  ;;  %v5177_v3 = vpack.c.bf16 %v5173_v45, %v5171_v38  ;;  %v5170_v63 = vld [vmem:[%s426_s16 + $0x20] sm:$0xff] }
 0x382   : > { %6137 = vmatprep.subr.msk.bf16.mxu0 %vm497_vm0, %v5198_v44  ;;  %v5172_v44 = vld [vmem:[%s426_s16 + $0x30] sm:$0xff] }
 0x383   : > { %6042 = vmatpush3.bf16.xpose.msra.mxu0 %v5231_v43  ;;  %v6258_v43 = vld [vmem:[%s8127_s8] sm:$0xff]  }
 0x387   : > { %v5997_v52 = vpop.f32.mrb[52].mxu1 }
 0x388   : > { %v5998_v7 = vpop.f32.mrb[53].mxu1 }
 0x389   : > { %v5999_v53 = vadd.f32 %v5998_v7, %v5997_v52  ;;  %v6000_v58 = vpop.f32.mrb[54].mxu1 }
 0x38a   : > { %v6001_v59 = vpop.f32.mrb[55].mxu1 }
 0x38b   : > { %v5034_v27 = vadd.f32 %v7887_v26, %v5999_v53  ;;  %v6002_v61 = vadd.f32 %v6001_v59, %v6000_v58 }
 0x38d   : > { %v5089_v12 = vmul.f32 %v7858_v21, %v5034_v27  ;;  %v5037_v4 = vadd.f32 %v7891_v39, %v6002_v61 }
 0x38f   : > { %v5128_v48 = vadd.f32 %v7865_v22, %v5089_v12  ;;  %v5090_v10 = vmul.f32 %v7858_v21, %v5037_v4  ;;  %v6003_v31 = vpop.f32.mrb[56].mxu1 }
 0x390   : > { %v6004_v19 = vpop.f32.mrb[57].mxu1 }
 0x391   : > { %v5129_v5 = vadd.f32 %v7865_v22, %v5090_v10  ;;  %v6005_v57 = vadd.f32 %v6004_v19, %v6003_v31  ;;  %v6006_v35 = vpop.f32.mrb[58].mxu1  ;;  %v5160_v55 = vmax.f32 %v5128_v48, 0.0 }
 0x392   : > { %v6007_v17 = vpop.f32.mrb[59].mxu1 }
 0x393   : > { %v5161_v46 = vmax.f32 %v5129_v5, 0.0  ;;  %v5042_v26 = vadd.f32 %v6005_v57, %v7954_v30  ;;  %v6008_v6 = vadd.f32 %v6007_v17, %v6006_v35 }
 0x395   : > { %v5091_v62 = vmul.f32 %v7858_v21, %v5042_v26  ;;  %v5045_v39 = vadd.f32 %v6008_v6, %v7967_v37  ;;  %v5199_v32 = vpack.c.bf16 %v5161_v46, %v5160_v55 }
 0x397   : > { %v5130_v42 = vadd.f32 %v7865_v22, %v5091_v62  ;;  %v5092_v15 = vmul.f32 %v7858_v21, %v5045_v39  ;;  %6138 = vmatprep.subr.msk.bf16.mxu0 %vm497_vm0, %v5199_v32 }
 0x398   : > { %6044 = vmatpush3.bf16.xpose.msra.mxu0 %v5234_v16 }
 0x399   : > { %v5131_v60 = vadd.f32 %v7865_v22, %v5092_v15  ;;  %v5162_v30 = vmax.f32 %v5130_v42, 0.0 }
 0x39a   : > { %v6009_v20 = vpop.f32.mrb[60].mxu1 }
 0x39b   : > { %v5163_v41 = vmax.f32 %v5131_v60, 0.0  ;;  %v6010_v13 = vpop.f32.mrb[61].mxu1 }
 0x39c   : > { %v6011_v40 = vadd.f32 %v6010_v13, %v6009_v20  ;;  %v6012_v37 = vpop.f32.mrb[62].mxu1 }
 0x39d   : > { %v5200_v9 = vpack.c.bf16 %v5163_v41, %v5162_v30  ;;  %v6013_v24 = vpop.f32.mrb[63].mxu1 }
 0x39e   : > { %v5050_v28 = vadd.f32 %v7952_v54, %v6011_v40  ;;  %v6014_v23 = vadd.f32 %v6013_v24, %v6012_v37 }
 0x39f   : > { %6139 = vmatprep.subr.msk.bf16.mxu0 %vm497_vm0, %v5200_v9 }
 0x3a0   : > { %6046 = vmatpush3.bf16.xpose.msra.mxu0 %v5237_v34  ;;  %v5093_v49 = vmul.f32 %v7858_v21, %v5050_v28  ;;  %v5053_v8 = vadd.f32 %v7959_v56, %v6014_v23  ;;  %v5240_v56 = vsel %vm497_vm0, %v7941_v33, 0  ;;  %v5176_v33 = vpack.c.bf16 %v5172_v44, %v5170_v63 }
 0x3a2   : > { %v5132_v2 = vadd.f32 %v7865_v22, %v5093_v49  ;;  %v5094_v51 = vmul.f32 %v7858_v21, %v5053_v8  ;;  %v5166_v21 = vld [vmem:[%s426_s16] sm:$0xff]  ;;  %s421_s16 = scalar_lea.vmem [#allocation4], %s5552_s15  ;;  %s6332_s15 = smov [#allocation4]  }
 0x3a3   : > { %v5174_v25 = vpack.c.bf16 %v5168_v36, %v5166_v21  ;;  %s5474_s20 = sshll.u32 %s421_s16, 4  ;;  %s6268_s19 = sshll.u32 %s6332_s15, 4  ;;  %s8074_s20 = int_to_ptr.vmem [resolvable:$true] %s5474_s20  ;;  %s6269_s19 = int_to_ptr.vmem [resolvable:$false] %s6268_s19 }
 0x3a4   : > { %v5133_v54 = vadd.f32 %v7865_v22, %v5094_v51  ;;  %v5164_v14 = vmax.f32 %v5132_v2, 0.0  ;;  %v6257_v22 = vld [vmem:[%s8128_s9 + $0x8] sm:$0xff]   ;;  %s6264_s17 = scalar_lea.vmem %s8074_s20, 1024  ;;  %s6270_s26 = scalar_lea.vmem %s6269_s19, 2048 }
 0x3a5   : > { %p6265_p11 = scmp.ne.s32.totalorder %s8074_s20, %s6264_s17  ;;  %p6271_p0 = scmp.lt.s32.totalorder %s8074_s20, %s6269_s19 }
 0x3a6   : > { %v5165_v47 = vmax.f32 %v5133_v54, 0.0  ;;  %p6272_p1 = scmp.lt.s32.totalorder %s6270_s26, %s6264_s17 }
 0x3a7   : > { %p6266_p12 = pnand %p6265_p11, %p6438_p5 }
 0x3a8   : > { %v5201_v11 = vpack.c.bf16 %v5165_v47, %v5164_v14  ;;  %p6273_p2 = por %p6272_p1, %p6271_p0 }
 0x3a9   : > { %p6267_p13 = pneg %p6266_p12 }
 0x3aa   : > { %6140 = vmatprep.subr.msk.bf16.mxu0 %vm497_vm0, %v5201_v11 }
 0x3ab   : > { %6048 = vmatpush3.bf16.xpose.msra.mxu0 %v5240_v56  ;;  %p6274_p3 = pnand %p6273_p2, %p6267_p13 }
 0x3ac   : > { %5335 = vmatprep.subr.bf16.mxu0 %v5175_v1 }
 0x3b2   : > { %6050 = vmatmul.mubr.msk.bf16.vlgmr.msra.gmra.mrb[64].mxu0 %vm497_vm0, %v7920_v18  ;;  %v6259_v18 = vld [vmem:[%s8127_s8 + $0x8] sm:$0xff]  }
 0x3b3   : > { %5336 = vmatpush1.bf16.msra.mxu0 %v5174_v25  ;;  %6051 = vmatprep.mubr.msk.bf16.mxu0 %vm497_vm0, %v6257_v22  ;;  %v5395_v7 = vpop.permute.xlu0 %5394 }
 0x3b4   : > { %5337 = vmatprep.subr.bf16.mxu0 %v5177_v3 }
 0x3b7   : > { %5338 = vmatpush1.bf16.msra.mxu0 %v5176_v33  ;;  %v5410_v58 = vpop.permute.xlu0 %5409 }
 0x3ba   : > { %6052 = vmatmul.mubr.msk.bf16.gmra.mrb[68].mxu0 %vm497_vm0, %v6257_v22 }
 0x3bb   : > { %5367 = vmatprep.mubr.bf16.mxu0 %v6328_v0  ;;  %v5432_v19 = vpop.permute.xlu0 %5431 }
 0x3bf   : > { %v5442_v16 = vpop.permute.xlu0 %5441 }
 0x3c2   : > { %5843 = vmatmul.mubr.msk.bf16.vlgmr.msra.gmra.mrb[64].mxu0 %vm497_vm0, %v6258_v43 }
 0x3c3   : > { %5377 = vmatprep.mubr.bf16.mxu0 %v6328_v0  ;;  %v5400_v52 = vpop.permute.xlu1 %5399 }
 0x3c7   : > { %v5405_v53 = vpop.permute.xlu1 %5404 }
 0x3ca   : > { %5844 = vmatmul.mubr.msk.bf16.gmra.mrb[68].mxu0 %vm497_vm0, %v6259_v18 }
 0x3cb   : > { %v5427_v12 = vpop.permute.xlu1 %5426 }
 0x3cf   : > { %v5437_v6 = vpop.permute.xlu1 %5436 }
 0x495   : > { %v5369_v59 = vpop.f32.mrb[64].mxu0 }
 0x496   : > { %v5412_v27 = vmul.f32 %v5395_v7, %v5369_v59  ;;  %v5371_v61 = vpop.f32.mrb[65].mxu0 }
 0x497   : > { %v5413_v4 = vmul.f32 %v5395_v7, %v5371_v61  ;;  %v5373_v48 = vpop.f32.mrb[66].mxu0 }
 0x498   : > { %v5444_v0 = vadd.f32 %v5427_v12, %v5412_v27  ;;  %v5414_v10 = vmul.f32 %v5400_v52, %v5373_v48  ;;  %v5375_v31 = vpop.f32.mrb[67].mxu0 }
 0x499   : > { %v5445_v5 = vadd.f32 %v5427_v12, %v5413_v4  ;;  %v5415_v57 = vmul.f32 %v5400_v52, %v5375_v31 }
 0x49a   : > { %5452 = vst [vmem:[%s421_s16] sm:$0xff] %v5444_v0  ;;  %v5446_v35 = vadd.f32 %v5432_v19, %v5414_v10 }
 0x49b   : > { %5453 = vst [vmem:[%s421_s16 + $0x8] sm:$0xff] %v5445_v5  ;;  %v5447_v17 = vadd.f32 %v5432_v19, %v5415_v57 }
 0x49c   : > { %5454 = vst [vmem:[%s421_s16 + $0x10] sm:$0xff] %v5446_v35 }
 0x49d   : > { %5455 = vst [vmem:[%s421_s16 + $0x18] sm:$0xff] %v5447_v17  ;;  %v5379_v55 = vpop.f32.mrb[68].mxu0 }
 0x49e   : > { %v5416_v46 = vmul.f32 %v5405_v53, %v5379_v55  ;;  %v5381_v26 = vpop.f32.mrb[69].mxu0 }
 0x49f   : > { %v5417_v62 = vmul.f32 %v5405_v53, %v5381_v26  ;;  %v5383_v39 = vpop.f32.mrb[70].mxu0 }
 0x4a0   : > { %v5448_v32 = vadd.f32 %v5437_v6, %v5416_v46  ;;  %v5418_v42 = vmul.f32 %v5410_v58, %v5383_v39  ;;  %v5385_v15 = vpop.f32.mrb[71].mxu0 }
 0x4a1   : > { %v5449_v60 = vadd.f32 %v5437_v6, %v5417_v62  ;;  %v5419_v30 = vmul.f32 %v5410_v58, %v5385_v15 }
 0x4a2   : > { %5456 = vst [vmem:[%s421_s16 + $0x20] sm:$0xff] %v5448_v32  ;;  %v5450_v41 = vadd.f32 %v5442_v16, %v5418_v42 }
 0x4a3   : > { %5457 = vst [vmem:[%s421_s16 + $0x28] sm:$0xff] %v5449_v60  ;;  %v5451_v20 = vadd.f32 %v5442_v16, %v5419_v30 }
 0x4a4   : > { %5458 = vst [vmem:[%s421_s16 + $0x30] sm:$0xff] %v5450_v41 }
 0x4a5   : > { %5459 = vst [vmem:[%s421_s16 + $0x38] sm:$0xff] %v5451_v20 }
 0x4a6   : > { %6277 = shalt.err (!%p6274_p3)
}
 0x4a7   : > { %s6278_s18 = scalar_lea.hbm %s8072_s29, 1024  ;;  %s6282_s15 = scalar_lea.hbm %s8131_s12, 2048 }
 0x4a8   : > { %p6279_p4 = scmp.ne.s32.totalorder %s8072_s29, %s6278_s18  ;;  %p6283_p9 = scmp.lt.u32.totalorder %s8072_s29, %s8131_s12 }
 0x4a9   : > { %p6284_p10 = scmp.lt.u32.totalorder %s6282_s15, %s6278_s18  ;;  %p6286_p12 = scmp.lt.u32.totalorder %s6278_s18, %s8072_s29 }
 0x4aa   : > { %p6280_p7 = pnand %p6279_p4, %p6438_p5 }
 0x4ab   : > { %p6285_p11 = por %p6284_p10, %p6283_p9 }
 0x4ac   : > { %p6281_p8 = pneg %p6280_p7 }
 0x4ad   : > { %p6287_p13 = por %p6286_p12, %p6285_p11 }
 0x4af   : > { %p6288_p0 = pnand %p6287_p13, %p6281_p8 }
 0x4b1   : > { %6291 = shalt.err (!%p6288_p0)
}
 0x4b2   : > { %s6333_s17 = smov 256   ;;  %s6334_s26 = smov 16  }
 0x4b3   : > { %6141 = dma.vmem_to_hbm [thread:$0]  (%p6438_p5), %s8074_s20, 1024, %s8072_s29, %s8078_s25, %s6333_s17, %s6333_s17, %s6334_s26  }
 0x4b4 PF: > { %p6147_p1 = scmp.ge.s32.totalorder %s6326_s24, 2  ;;  %s5489_s0 = sand.u32 1, %s6314_s21  }
 0x4b5   : > { %s5490_s18 = scalar_lea.sflag [#allocation5], %s5489_s0 }
 0x4b6   : > { %p6144_p2 = pnand %p6147_p1, %p6442_p6 }
 0x4b8   : > { %6309 = dma.done.wait (!%p6144_p2), %s5490_s18, 1024  }
 0x4b9   : > { %6311 = vsyncadd (!%p6144_p2), %s5490_s18, 4294966272  ;;  %p22_p3 = scmp.ge.s32.totalorder %s6425_s27, 4   ;;  %s8148_s21 = smov %s6318_s22 }
 0x4ba   : > { %s8149_s22 = smov %s6322_s23  ;;  %s8150_s23 = smov %s6436_s30 }
 0x4bb   : > { %s8151_s24 = smov %s6425_s27  ;;  %24 = sbr.rel (!%p22_p3) target bundleno = 5 (0x5), region = 109 }
 0x4c2   :  { %5495 = vsyncpa [#allocation5], 1 }
 0x4c3   :  { %5497 = vsyncpa [#allocation5 + $0x1], 1 }

</bundles_post_ra>
